<compile_context>
chip_gen: v7x
topology: tpu7x:2x2x1
jax: 0.10.0
libtpu: 0.0.40
codegen_flags: <defaults>
</compile_context>

<pallas_src>
import numpy as np
import jax
import jax.numpy as jnp
from jax.experimental import pallas as pl
from jax.experimental.pallas import tpu as pltpu

_EPS = 1e-5


# ----------------------------------------------------------------------------
# helpers
# ----------------------------------------------------------------------------
def _ln(x, axis):
    # layer_norm_process: biased mean/var, gamma=1, beta=0, eps=1e-5.
    # rsqrt routes to the EUP slot instead of a VALU divide + sqrt.
    mean = jnp.mean(x, axis=axis, keepdims=True)
    var = jnp.mean(jnp.square(x - mean), axis=axis, keepdims=True)
    return (x - mean) * jax.lax.rsqrt(var + _EPS)


# ----------------------------------------------------------------------------
# Pallas kernel: one (TB, W, C) tile = TB (batch, image-row) pairs
# ----------------------------------------------------------------------------
def _block_gating_unit_kernel(x_ref, wfc_ref, bfc_ref, wsfc_ref, bsfc_ref,
                              wsfc2_ref, bsfc2_ref, o_ref):
    x = x_ref[...]                              # (TB, W, C) float32
    TB, W, C = x.shape
    n2 = C // 2
    Wh = W // 2

    def dense(h2d, w_ref, b_ref):
        # 1x1 conv over channels == (M, in) @ (in, out) matmul, f32 accumulate.
        return jnp.dot(h2d, w_ref[...],
                       preferred_element_type=jnp.float32) + b_ref[...]

    # ---- channel-gating branch:  u * (fc(LN_W(v)) + 1) ----------------------
    # NOTE: lane-axis split; aligned (free) whenever n2 is a multiple of 128.
    u = x[:, :, :n2]                            # (TB, W, n2)
    v = _ln(x[:, :, n2:], axis=1)               # LN over the W positions
    v = dense(v.reshape(TB * W, n2), wfc_ref, bfc_ref).reshape(TB, W, n2)
    catt = u * (v + 1.0)                        # (TB, W, n2)

    # ---- spatial-gating branch ----------------------------------------------
    su = _ln(x[:, :Wh, :], axis=1)              # LN over left half-width
    sv = _ln(x[:, Wh:, :], axis=1)              # LN over right half-width
    sv1 = dense(sv.reshape(TB * Wh, C), wsfc_ref, bsfc_ref).reshape(TB, Wh, C)
    su1 = dense(su.reshape(TB * Wh, C), wsfc_ref, bsfc_ref).reshape(TB, Wh, C)
    satt1 = su * (sv1 + 1.0)                    # (TB, Wh, C)
    satt2 = sv * (su1 + 1.0)                    # (TB, Wh, C)

    # sfc2 per half, results written straight into the output halves
    # (avoids materializing cat(satt1, satt2) along the width axis).
    o1 = dense(satt1.reshape(TB * Wh, C), wsfc2_ref, bsfc2_ref).reshape(TB, Wh, n2)
    o2 = dense(satt2.reshape(TB * Wh, C), wsfc2_ref, bsfc2_ref).reshape(TB, Wh, n2)

    o_ref[:, :Wh, :] = (catt[:, :Wh, :] + o1).astype(o_ref.dtype)
    o_ref[:, Wh:, :] = (catt[:, Wh:, :] + o2).astype(o_ref.dtype)


# ----------------------------------------------------------------------------
# tile-size choice: largest divisor of num_rows whose working set fits budget
# ----------------------------------------------------------------------------
def _pick_block_rows(num_rows, w, c, budget_bytes=12 * 1024 * 1024):
    # ~12x the raw input row bytes covers double-buffered in/out tiles plus
    # the live fp32 intermediates (x, v, catt, su/sv, su1/sv1, satt1/2, o1/o2).
    # 12 MiB keeps comfortable headroom against v7x's 64 MiB physical VMEM.
    per_row = w * c * 4 * 12
    cap = max(1, budget_bytes // per_row)
    tb = 1
    for d in range(1, num_rows + 1):
        if num_rows % d == 0 and d <= cap:
            tb = d
    return tb


# ----------------------------------------------------------------------------
# wrapper: layout glue + pallas_call
# ----------------------------------------------------------------------------
def block_gating_unit(x_nchw, params):
    wfc, bfc, wsfc, bsfc, wsfc2, bsfc2 = params
    n, c, h, w = x_nchw.shape
    assert c % 2 == 0 and w % 2 == 0
    n2 = c // 2
    rows = n * h

    # NCHW -> (N*H, W, C): channels last => channel matmuls contract the lane dim
    xr = jnp.transpose(x_nchw, (0, 2, 3, 1)).reshape(rows, w, c)

    tb = _pick_block_rows(rows, w, c)
    grid = (rows // tb,)

    weight_args = [wfc, bfc, wsfc, bsfc, wsfc2, bsfc2]
    weight_specs = [pl.BlockSpec(a.shape, lambda i: (0, 0)) for a in weight_args]

    out = pl.pallas_call(
        _block_gating_unit_kernel,
        grid=grid,
        in_specs=[pl.BlockSpec((tb, w, c), lambda i: (i, 0, 0))] + weight_specs,
        out_specs=pl.BlockSpec((tb, w, n2), lambda i: (i, 0, 0)),
        out_shape=jax.ShapeDtypeStruct((rows, w, n2), x_nchw.dtype),
        compiler_params=pltpu.CompilerParams(
            # row blocks are fully independent -> shard across v7x's 2 TCs
            dimension_semantics=("parallel",),
            # above the 16/32 MiB scoped defaults, below v7x's 64 MiB physical
            vmem_limit_bytes=48 * 1024 * 1024,
        ),
        # TODO(synk): if DMA is still exposed at production sizes, add
        # pipeline_mode=pl.Buffered(3) on the input BlockSpec.
    )(xr, *weight_args)

    # (N*H, W, n2) -> (N, n2, H, W): module returns NCHW like its conv outputs
    return out.reshape(n, h, w, n2).transpose(0, 3, 1, 2)


# ----------------------------------------------------------------------------
# deterministic parameter init (conv weights (out, in, 1, 1) stored as (in, out))
# ----------------------------------------------------------------------------
def init_params(key, n2):
    c = 2 * n2
    ks = jax.random.split(key, 6)

    def W(k, i, o):
        return 0.1 * jax.random.normal(k, (i, o), jnp.float32)

    def B(k, o):
        return 0.1 * jax.random.normal(k, (1, o), jnp.float32)

    wfc, bfc = W(ks[0], n2, n2), B(ks[1], n2)        # fc  : n2  -> n2
    wsfc, bsfc = W(ks[2], c, c), B(ks[3], c)          # sfc : 2n2 -> 2n2
    wsfc2, bsfc2 = W(ks[4], c, n2), B(ks[5], n2)      # sfc2: 2n2 -> n2
    return wfc, bfc, wsfc, bsfc, wsfc2, bsfc2


# ----------------------------------------------------------------------------
# pure-JAX reference (f32 HIGHEST precision) for the sanity check
# ----------------------------------------------------------------------------
def _reference(x, params):
    wfc, bfc, wsfc, bsfc, wsfc2, bsfc2 = params
    n, c, h, w = x.shape
    n2, wh = c // 2, w // 2

    def ln_last(a):
        m = jnp.mean(a, axis=-1, keepdims=True)
        v = jnp.mean(jnp.square(a - m), axis=-1, keepdims=True)
        return (a - m) / jnp.sqrt(v + _EPS)

    def conv1x1(a, w_io, b):
        y = jnp.einsum('nchw,cd->ndhw', a, w_io,
                       precision=jax.lax.Precision.HIGHEST)
        return y + b.reshape(1, -1, 1, 1)

    u, v = x[:, :n2], x[:, n2:]
    v = conv1x1(ln_last(v), wfc, bfc)
    catt = u * (v + 1.0)
    su, sv = ln_last(x[..., :wh]), ln_last(x[..., wh:])
    sv1 = conv1x1(sv, wsfc, bsfc)
    su1 = conv1x1(su, wsfc, bsfc)
    satt = jnp.concatenate([su * (sv1 + 1.0), sv * (su1 + 1.0)], axis=3)
    satt = conv1x1(satt, wsfc2, bsfc2)
    return catt + satt


if __name__ == "__main__":
    batch, n2, H, W_sp = 2, 4, 16, 16           # x: (N, 2*n2, H, W)
    c = 2 * n2

    key = jax.random.PRNGKey(0)
    k_x, k_p = jax.random.split(key)
    x = jax.random.normal(k_x, (batch, c, H, W_sp), jnp.float32)  # NCHW
    params = init_params(k_p, n2)

    fwd = jax.jit(block_gating_unit)
    out = fwd(x, params)
    out = jax.block_until_ready(out)
    assert out.shape == (batch, n2, H, W_sp)

    ref = _reference(x, params)
    err = float(np.max(np.abs(np.asarray(out) - np.asarray(ref))))
    scale = float(np.max(np.abs(np.asarray(ref))))
    # Tolerance sized for default-precision MXU matmuls in the kernel vs an
    # f32 HIGHEST-precision reference: 2% of output range.
    assert err <= 2e-2 * scale, f"max abs err {err} vs scale {scale}"
    print("KERNEL_OK")
</pallas_src>

<mosaic_0001>
module attributes {stable_mosaic.version = 11 : i64} {
  func.func @_block_gating_unit_kernel(%arg0: i32, %arg1: memref<32x16x8xf32, #tpu.memory_space<vmem>>, %arg2: memref<4x4xf32, #tpu.memory_space<vmem>>, %arg3: memref<1x4xf32, #tpu.memory_space<vmem>>, %arg4: memref<8x8xf32, #tpu.memory_space<vmem>>, %arg5: memref<1x8xf32, #tpu.memory_space<vmem>>, %arg6: memref<8x4xf32, #tpu.memory_space<vmem>>, %arg7: memref<1x4xf32, #tpu.memory_space<vmem>>, %arg8: memref<32x16x4xf32, #tpu.memory_space<vmem>>) attributes {dimension_semantics = [#tpu.dimension_semantics<parallel>], iteration_bounds = array<i64: 1>, scalar_prefetch = 0 : i64, scratch_operands = 0 : i64, tpu.core_type = #tpu.core_type<tc>, window_params = [{transform_indices = @transform_0, window_bounds = array<i64: 32, 16, 8>}, {pipeline_mode = #tpu.pipeline_mode<synchronous>, transform_indices = @transform_1, window_bounds = array<i64: 4, 4>}, {pipeline_mode = #tpu.pipeline_mode<synchronous>, transform_indices = @transform_2, window_bounds = array<i64: 1, 4>}, {pipeline_mode = #tpu.pipeline_mode<synchronous>, transform_indices = @transform_3, window_bounds = array<i64: 8, 8>}, {pipeline_mode = #tpu.pipeline_mode<synchronous>, transform_indices = @transform_4, window_bounds = array<i64: 1, 8>}, {pipeline_mode = #tpu.pipeline_mode<synchronous>, transform_indices = @transform_5, window_bounds = array<i64: 8, 4>}, {pipeline_mode = #tpu.pipeline_mode<synchronous>, transform_indices = @transform_6, window_bounds = array<i64: 1, 4>}, {transform_indices = @transform_7, window_bounds = array<i64: 32, 16, 4>}]} {
    %c0 = arith.constant 0 : index
    %c0_0 = arith.constant 0 : index
    %c0_1 = arith.constant 0 : index
    %0 = vector.load %arg1[%c0, %c0_0, %c0_1] : memref<32x16x8xf32, #tpu.memory_space<vmem>>, vector<32x16x8xf32>
    %1 = vector.extract_strided_slice %0 {offsets = [0, 0, 0], sizes = [32, 16, 4], strides = [1, 1, 1]} : vector<32x16x8xf32> to vector<32x16x4xf32>
    %2 = vector.extract_strided_slice %0 {offsets = [0, 0, 4], sizes = [32, 16, 4], strides = [1, 1, 1]} : vector<32x16x8xf32> to vector<32x16x4xf32>
    %cst = arith.constant dense<0.000000e+00> : vector<32x4xf32>
    %3 = vector.multi_reduction <add>, %2, %cst [1] : vector<32x16x4xf32> to vector<32x4xf32>
    %4 = vector.shape_cast %3 : vector<32x4xf32> to vector<32x1x4xf32>
    %cst_2 = arith.constant 1.600000e+01 : f32
    %5 = vector.broadcast %cst_2 : f32 to vector<32x1x4xf32>
    %6 = arith.divf %4, %5 : vector<32x1x4xf32>
    %7 = vector.broadcast %6 : vector<32x1x4xf32> to vector<32x16x4xf32>
    %8 = arith.subf %2, %7 : vector<32x16x4xf32>
    %9 = arith.mulf %8, %8 : vector<32x16x4xf32>
    %cst_3 = arith.constant dense<0.000000e+00> : vector<32x4xf32>
    %10 = vector.multi_reduction <add>, %9, %cst_3 [1] : vector<32x16x4xf32> to vector<32x4xf32>
    %11 = vector.shape_cast %10 : vector<32x4xf32> to vector<32x1x4xf32>
    %cst_4 = arith.constant 1.600000e+01 : f32
    %12 = vector.broadcast %cst_4 : f32 to vector<32x1x4xf32>
    %13 = arith.divf %11, %12 : vector<32x1x4xf32>
    %14 = vector.broadcast %6 : vector<32x1x4xf32> to vector<32x16x4xf32>
    %15 = arith.subf %2, %14 : vector<32x16x4xf32>
    %cst_5 = arith.constant 9.99999974E-6 : f32
    %16 = vector.broadcast %cst_5 : f32 to vector<32x1x4xf32>
    %17 = arith.addf %13, %16 : vector<32x1x4xf32>
    %18 = math.rsqrt %17 : vector<32x1x4xf32>
    %19 = vector.broadcast %18 : vector<32x1x4xf32> to vector<32x16x4xf32>
    %20 = arith.mulf %15, %19 : vector<32x16x4xf32>
    %21 = vector.shape_cast %20 : vector<32x16x4xf32> to vector<512x4xf32>
    %c0_6 = arith.constant 0 : index
    %c0_7 = arith.constant 0 : index
    %22 = vector.load %arg2[%c0_6, %c0_7] : memref<4x4xf32, #tpu.memory_space<vmem>>, vector<4x4xf32>
    %cst_8 = arith.constant dense<0.000000e+00> : vector<512x4xf32>
    %23 = tpu.matmul %21, %22, %cst_8 {dimension_numbers = #tpu.dot_dimension_numbers<[1], [0], [0], [1], [0, 0, 1, 1], [], []>} : vector<512x4xf32>, vector<4x4xf32>, vector<512x4xf32> -> vector<512x4xf32>
    %c0_9 = arith.constant 0 : index
    %c0_10 = arith.constant 0 : index
    %24 = vector.load %arg3[%c0_9, %c0_10] : memref<1x4xf32, #tpu.memory_space<vmem>>, vector<1x4xf32>
    %25 = vector.broadcast %24 : vector<1x4xf32> to vector<512x4xf32>
    %26 = arith.addf %23, %25 : vector<512x4xf32>
    %27 = vector.shape_cast %26 : vector<512x4xf32> to vector<32x16x4xf32>
    %cst_11 = arith.constant 1.000000e+00 : f32
    %28 = vector.broadcast %cst_11 : f32 to vector<32x16x4xf32>
    %29 = arith.addf %27, %28 : vector<32x16x4xf32>
    %30 = arith.mulf %1, %29 : vector<32x16x4xf32>
    %31 = vector.extract_strided_slice %0 {offsets = [0, 0, 0], sizes = [32, 8, 8], strides = [1, 1, 1]} : vector<32x16x8xf32> to vector<32x8x8xf32>
    %cst_12 = arith.constant dense<0.000000e+00> : vector<32x8xf32>
    %32 = vector.multi_reduction <add>, %31, %cst_12 [1] : vector<32x8x8xf32> to vector<32x8xf32>
    %33 = vector.shape_cast %32 : vector<32x8xf32> to vector<32x1x8xf32>
    %cst_13 = arith.constant 8.000000e+00 : f32
    %34 = vector.broadcast %cst_13 : f32 to vector<32x1x8xf32>
    %35 = arith.divf %33, %34 : vector<32x1x8xf32>
    %36 = vector.broadcast %35 : vector<32x1x8xf32> to vector<32x8x8xf32>
    %37 = arith.subf %31, %36 : vector<32x8x8xf32>
    %38 = arith.mulf %37, %37 : vector<32x8x8xf32>
    %cst_14 = arith.constant dense<0.000000e+00> : vector<32x8xf32>
    %39 = vector.multi_reduction <add>, %38, %cst_14 [1] : vector<32x8x8xf32> to vector<32x8xf32>
    %40 = vector.shape_cast %39 : vector<32x8xf32> to vector<32x1x8xf32>
    %cst_15 = arith.constant 8.000000e+00 : f32
    %41 = vector.broadcast %cst_15 : f32 to vector<32x1x8xf32>
    %42 = arith.divf %40, %41 : vector<32x1x8xf32>
    %43 = vector.broadcast %35 : vector<32x1x8xf32> to vector<32x8x8xf32>
    %44 = arith.subf %31, %43 : vector<32x8x8xf32>
    %cst_16 = arith.constant 9.99999974E-6 : f32
    %45 = vector.broadcast %cst_16 : f32 to vector<32x1x8xf32>
    %46 = arith.addf %42, %45 : vector<32x1x8xf32>
    %47 = math.rsqrt %46 : vector<32x1x8xf32>
    %48 = vector.broadcast %47 : vector<32x1x8xf32> to vector<32x8x8xf32>
    %49 = arith.mulf %44, %48 : vector<32x8x8xf32>
    %50 = vector.extract_strided_slice %0 {offsets = [0, 8, 0], sizes = [32, 8, 8], strides = [1, 1, 1]} : vector<32x16x8xf32> to vector<32x8x8xf32>
    %cst_17 = arith.constant dense<0.000000e+00> : vector<32x8xf32>
    %51 = vector.multi_reduction <add>, %50, %cst_17 [1] : vector<32x8x8xf32> to vector<32x8xf32>
    %52 = vector.shape_cast %51 : vector<32x8xf32> to vector<32x1x8xf32>
    %cst_18 = arith.constant 8.000000e+00 : f32
    %53 = vector.broadcast %cst_18 : f32 to vector<32x1x8xf32>
    %54 = arith.divf %52, %53 : vector<32x1x8xf32>
    %55 = vector.broadcast %54 : vector<32x1x8xf32> to vector<32x8x8xf32>
    %56 = arith.subf %50, %55 : vector<32x8x8xf32>
    %57 = arith.mulf %56, %56 : vector<32x8x8xf32>
    %cst_19 = arith.constant dense<0.000000e+00> : vector<32x8xf32>
    %58 = vector.multi_reduction <add>, %57, %cst_19 [1] : vector<32x8x8xf32> to vector<32x8xf32>
    %59 = vector.shape_cast %58 : vector<32x8xf32> to vector<32x1x8xf32>
    %cst_20 = arith.constant 8.000000e+00 : f32
    %60 = vector.broadcast %cst_20 : f32 to vector<32x1x8xf32>
    %61 = arith.divf %59, %60 : vector<32x1x8xf32>
    %62 = vector.broadcast %54 : vector<32x1x8xf32> to vector<32x8x8xf32>
    %63 = arith.subf %50, %62 : vector<32x8x8xf32>
    %cst_21 = arith.constant 9.99999974E-6 : f32
    %64 = vector.broadcast %cst_21 : f32 to vector<32x1x8xf32>
    %65 = arith.addf %61, %64 : vector<32x1x8xf32>
    %66 = math.rsqrt %65 : vector<32x1x8xf32>
    %67 = vector.broadcast %66 : vector<32x1x8xf32> to vector<32x8x8xf32>
    %68 = arith.mulf %63, %67 : vector<32x8x8xf32>
    %69 = vector.shape_cast %68 : vector<32x8x8xf32> to vector<256x8xf32>
    %c0_22 = arith.constant 0 : index
    %c0_23 = arith.constant 0 : index
    %70 = vector.load %arg4[%c0_22, %c0_23] : memref<8x8xf32, #tpu.memory_space<vmem>>, vector<8x8xf32>
    %cst_24 = arith.constant dense<0.000000e+00> : vector<256x8xf32>
    %71 = tpu.matmul %69, %70, %cst_24 {dimension_numbers = #tpu.dot_dimension_numbers<[1], [0], [0], [1], [0, 0, 1, 1], [], []>} : vector<256x8xf32>, vector<8x8xf32>, vector<256x8xf32> -> vector<256x8xf32>
    %c0_25 = arith.constant 0 : index
    %c0_26 = arith.constant 0 : index
    %72 = vector.load %arg5[%c0_25, %c0_26] : memref<1x8xf32, #tpu.memory_space<vmem>>, vector<1x8xf32>
    %73 = vector.broadcast %72 : vector<1x8xf32> to vector<256x8xf32>
    %74 = arith.addf %71, %73 : vector<256x8xf32>
    %75 = vector.shape_cast %74 : vector<256x8xf32> to vector<32x8x8xf32>
    %76 = vector.shape_cast %49 : vector<32x8x8xf32> to vector<256x8xf32>
    %c0_27 = arith.constant 0 : index
    %c0_28 = arith.constant 0 : index
    %77 = vector.load %arg4[%c0_27, %c0_28] : memref<8x8xf32, #tpu.memory_space<vmem>>, vector<8x8xf32>
    %cst_29 = arith.constant dense<0.000000e+00> : vector<256x8xf32>
    %78 = tpu.matmul %76, %77, %cst_29 {dimension_numbers = #tpu.dot_dimension_numbers<[1], [0], [0], [1], [0, 0, 1, 1], [], []>} : vector<256x8xf32>, vector<8x8xf32>, vector<256x8xf32> -> vector<256x8xf32>
    %c0_30 = arith.constant 0 : index
    %c0_31 = arith.constant 0 : index
    %79 = vector.load %arg5[%c0_30, %c0_31] : memref<1x8xf32, #tpu.memory_space<vmem>>, vector<1x8xf32>
    %80 = vector.broadcast %79 : vector<1x8xf32> to vector<256x8xf32>
    %81 = arith.addf %78, %80 : vector<256x8xf32>
    %82 = vector.shape_cast %81 : vector<256x8xf32> to vector<32x8x8xf32>
    %cst_32 = arith.constant 1.000000e+00 : f32
    %83 = vector.broadcast %cst_32 : f32 to vector<32x8x8xf32>
    %84 = arith.addf %75, %83 : vector<32x8x8xf32>
    %85 = arith.mulf %49, %84 : vector<32x8x8xf32>
    %cst_33 = arith.constant 1.000000e+00 : f32
    %86 = vector.broadcast %cst_33 : f32 to vector<32x8x8xf32>
    %87 = arith.addf %82, %86 : vector<32x8x8xf32>
    %88 = arith.mulf %68, %87 : vector<32x8x8xf32>
    %89 = vector.shape_cast %85 : vector<32x8x8xf32> to vector<256x8xf32>
    %c0_34 = arith.constant 0 : index
    %c0_35 = arith.constant 0 : index
    %90 = vector.load %arg6[%c0_34, %c0_35] : memref<8x4xf32, #tpu.memory_space<vmem>>, vector<8x4xf32>
    %cst_36 = arith.constant dense<0.000000e+00> : vector<256x4xf32>
    %91 = tpu.matmul %89, %90, %cst_36 {dimension_numbers = #tpu.dot_dimension_numbers<[1], [0], [0], [1], [0, 0, 1, 1], [], []>} : vector<256x8xf32>, vector<8x4xf32>, vector<256x4xf32> -> vector<256x4xf32>
    %c0_37 = arith.constant 0 : index
    %c0_38 = arith.constant 0 : index
    %92 = vector.load %arg7[%c0_37, %c0_38] : memref<1x4xf32, #tpu.memory_space<vmem>>, vector<1x4xf32>
    %93 = vector.broadcast %92 : vector<1x4xf32> to vector<256x4xf32>
    %94 = arith.addf %91, %93 : vector<256x4xf32>
    %95 = vector.shape_cast %94 : vector<256x4xf32> to vector<32x8x4xf32>
    %96 = vector.shape_cast %88 : vector<32x8x8xf32> to vector<256x8xf32>
    %c0_39 = arith.constant 0 : index
    %c0_40 = arith.constant 0 : index
    %97 = vector.load %arg6[%c0_39, %c0_40] : memref<8x4xf32, #tpu.memory_space<vmem>>, vector<8x4xf32>
    %cst_41 = arith.constant dense<0.000000e+00> : vector<256x4xf32>
    %98 = tpu.matmul %96, %97, %cst_41 {dimension_numbers = #tpu.dot_dimension_numbers<[1], [0], [0], [1], [0, 0, 1, 1], [], []>} : vector<256x8xf32>, vector<8x4xf32>, vector<256x4xf32> -> vector<256x4xf32>
    %c0_42 = arith.constant 0 : index
    %c0_43 = arith.constant 0 : index
    %99 = vector.load %arg7[%c0_42, %c0_43] : memref<1x4xf32, #tpu.memory_space<vmem>>, vector<1x4xf32>
    %100 = vector.broadcast %99 : vector<1x4xf32> to vector<256x4xf32>
    %101 = arith.addf %98, %100 : vector<256x4xf32>
    %102 = vector.shape_cast %101 : vector<256x4xf32> to vector<32x8x4xf32>
    %103 = vector.extract_strided_slice %30 {offsets = [0, 0, 0], sizes = [32, 8, 4], strides = [1, 1, 1]} : vector<32x16x4xf32> to vector<32x8x4xf32>
    %104 = arith.addf %103, %95 : vector<32x8x4xf32>
    %c0_44 = arith.constant 0 : index
    %c0_45 = arith.constant 0 : index
    %c0_46 = arith.constant 0 : index
    %105 = vector.load %arg8[%c0_44, %c0_45, %c0_46] : memref<32x16x4xf32, #tpu.memory_space<vmem>>, vector<32x8x4xf32>
    tpu.vector_store %arg8[%c0_44, %c0_45, %c0_46], %104 {strides = array<i32>} : memref<32x16x4xf32, #tpu.memory_space<vmem>>, vector<32x8x4xf32>,
    %106 = vector.extract_strided_slice %30 {offsets = [0, 8, 0], sizes = [32, 8, 4], strides = [1, 1, 1]} : vector<32x16x4xf32> to vector<32x8x4xf32>
    %107 = arith.addf %106, %102 : vector<32x8x4xf32>
    %c0_47 = arith.constant 0 : index
    %c8 = arith.constant 8 : index
    %c0_48 = arith.constant 0 : index
    %108 = vector.load %arg8[%c0_47, %c8, %c0_48] : memref<32x16x4xf32, #tpu.memory_space<vmem>>, vector<32x8x4xf32>
    tpu.vector_store %arg8[%c0_47, %c8, %c0_48], %107 {strides = array<i32>} : memref<32x16x4xf32, #tpu.memory_space<vmem>>, vector<32x8x4xf32>,
    return
  }
  func.func @transform_0(%arg0: i32) -> (i32, i32, i32) {
    %c0_i32 = arith.constant 0 : i32
    %c0_i32_0 = arith.constant 0 : i32
    %c0_i32_1 = arith.constant 0 : i32
    return %arg0, %c0_i32, %c0_i32_0 : i32, i32, i32
  }
  func.func @transform_1(%arg0: i32) -> (i32, i32) {
    %c0_i32 = arith.constant 0 : i32
    %c0_i32_0 = arith.constant 0 : i32
    %c0_i32_1 = arith.constant 0 : i32
    return %c0_i32, %c0_i32_0 : i32, i32
  }
  func.func @transform_2(%arg0: i32) -> (i32, i32) {
    %c0_i32 = arith.constant 0 : i32
    %c0_i32_0 = arith.constant 0 : i32
    %c0_i32_1 = arith.constant 0 : i32
    return %c0_i32, %c0_i32_0 : i32, i32
  }
  func.func @transform_3(%arg0: i32) -> (i32, i32) {
    %c0_i32 = arith.constant 0 : i32
    %c0_i32_0 = arith.constant 0 : i32
    %c0_i32_1 = arith.constant 0 : i32
    return %c0_i32, %c0_i32_0 : i32, i32
  }
  func.func @transform_4(%arg0: i32) -> (i32, i32) {
    %c0_i32 = arith.constant 0 : i32
    %c0_i32_0 = arith.constant 0 : i32
    %c0_i32_1 = arith.constant 0 : i32
    return %c0_i32, %c0_i32_0 : i32, i32
  }
  func.func @transform_5(%arg0: i32) -> (i32, i32) {
    %c0_i32 = arith.constant 0 : i32
    %c0_i32_0 = arith.constant 0 : i32
    %c0_i32_1 = arith.constant 0 : i32
    return %c0_i32, %c0_i32_0 : i32, i32
  }
  func.func @transform_6(%arg0: i32) -> (i32, i32) {
    %c0_i32 = arith.constant 0 : i32
    %c0_i32_0 = arith.constant 0 : i32
    %c0_i32_1 = arith.constant 0 : i32
    return %c0_i32, %c0_i32_0 : i32, i32
  }
  func.func @transform_7(%arg0: i32) -> (i32, i32, i32) {
    %c0_i32 = arith.constant 0 : i32
    %c0_i32_0 = arith.constant 0 : i32
    %c0_i32_1 = arith.constant 0 : i32
    return %arg0, %c0_i32, %c0_i32_0 : i32, i32, i32
  }
}

</mosaic_0001>

<bundles_post_ra>
// kernel: block_gating_unit.1
= control target key start
LH: loop header
LB: loop body
LE: loop exit
PB: predicated region body
PF: predicated region fallthrough
CT: control target
= control target key end

     0   :  { %vm1834_vm0 = vcmask 64512   ;;  %vm90_vm1 = vcmask 64544   ;;  %vm1317_vm2 = vcmask 1043456   ;;  %vm1188_vm3 = vcmask 31744   ;;  %s9032_s3 = inlined_call_operand.vmem [shape: f32[8,8], index: 3, kind: input, shape index: {}]   ;;  %s9033_s0 = inlined_call_operand.vmem [shape: f32[32,16,8], index: 0, kind: input, shape index: {}]   ;;  %s9034_s5 = inlined_call_operand.vmem [shape: f32[8,4], index: 5, kind: input, shape index: {}]   ;;  %s9035_s1 = inlined_call_operand.vmem [shape: f32[4,4], index: 1, kind: input, shape index: {}]   ;;  %s9036_s4 = inlined_call_operand.vmem [shape: f32[1,8], index: 4, kind: input, shape index: {}]   ;;  %s9037_s2 = inlined_call_operand.vmem [shape: f32[1,4], index: 2, kind: input, shape index: {}]   ;;  %s9038_s6 = inlined_call_operand.vmem [shape: f32[1,4], index: 6, kind: input, shape index: {}]   ;;  %s9039_s7 = inlined_call_operand.vmem [shape: f32[32,16,4], index: 7, kind: output, shape index: {}]  }
   0x1   :  { %v5775_v0 = vld [vmem:[%s9032_s3] sm:$0xff]  ;;  %v5780_v1 = vld [vmem:[%s9033_s0 + $0x8] sm:$0xff]  ;;  %v5785_v2 = vld [vmem:[%s9033_s0 + $0x18] sm:$0xff]  ;;  %s5731_s3 = smov 124  }
   0x2   :  { %5231 = vmatprep.subr.mxu1 %v5775_v0  ;;  %v2508_v3 = vsel %vm1834_vm0, %v5780_v1, 0.0  ;;  %v2515_v4 = vsel %vm1834_vm0, %v5785_v2, 0.0  ;;  %v5795_v5 = vld [vmem:[%s9033_s0 + $0x28] sm:$0xff]  ;;  %v5800_v6 = vld [vmem:[%s9033_s0] sm:$0xff]  ;;  %v92_v7 = vsel %vm90_vm1, %v5780_v1, 0.0  ;;  %v5807_v8 = vld [vmem:[%s9033_s0 + $0x38] sm:$0xff] }
   0x3   :  { %5232 = vmatpush3.msra.mxu1 %v5775_v0  ;;  %v2509_v9 = vrot.slane %v2508_v3, 4  ;;  %v2516_v10 = vrot.slane %v2515_v4, 4  ;;  %v2522_v11 = vsel %vm1834_vm0, %v5795_v5, 0.0  ;;  %v91_v12 = vsel %vm90_vm1, %v5800_v6, 0.0  ;;  %v5817_v13 = vld [vmem:[%s9033_s0 + $0x10] sm:$0xff]  ;;  %v5830_v22 = vld [vmem:[%s9033_s0 + $0x48] sm:$0xff] }
   0x4   :  { %5281 = vmatprep.subr.mxu1 %v5775_v0  ;;  %v2523_v14 = vrot.slane %v2522_v11, 4  ;;  %v93_v15 = vadd.f32 %v92_v7, %v91_v12  ;;  %v5822_v16 = vsel %vm1834_vm0, %v5800_v6, 0.0  ;;  %v2529_v17 = vsel %vm1834_vm0, %v5807_v8, 0.0 }
   0x5   :  { %v2510_v18 = vadd.f32 %v2509_v9, %v2508_v3  ;;  %v2517_v19 = vadd.f32 %v2516_v10, %v2515_v4  ;;  %v2530_v21 = vrot.slane %v2529_v17, 4  ;;  %v100_v25 = vsel %vm90_vm1, %v5817_v13, 0.0 }
   0x6   :  { %v2524_v23 = vadd.f32 %v2523_v14, %v2522_v11  ;;  %v94_v24 = vrot.slane %v93_v15, 4  ;;  %v101_v26 = vsel %vm90_vm1, %v5785_v2, 0.0  ;;  %v1842_v33 = vsel %vm1834_vm0, %v5817_v13, 0.0 }
   0x7   :  { %v2511_v27 = vrot.slane %v2510_v18, 2  ;;  %v2518_v28 = vrot.slane %v2517_v19, 2  ;;  %v2531_v29 = vadd.f32 %v2530_v21, %v2529_v17  ;;  %v102_v30 = vadd.f32 %v101_v26, %v100_v25 }
   0x8   :  { %v2525_v31 = vrot.slane %v2524_v23, 2  ;;  %v95_v32 = vadd.f32 %v94_v24, %v93_v15  ;;  %v2536_v34 = vsel %vm1834_vm0, %v5830_v22, 0.0  ;;  %v1843_v41 = vrot.slane %v1842_v33, 4 }
   0x9   :  { %v2512_v35 = vadd.f32 %v2511_v27, %v2510_v18  ;;  %v2519_v36 = vadd.f32 %v2518_v28, %v2517_v19  ;;  %v2532_v37 = vrot.slane %v2531_v29, 2  ;;  %v103_v38 = vrot.slane %v102_v30, 4 }
   0xa   :  { %v2526_v39 = vadd.f32 %v2525_v31, %v2524_v23  ;;  %v96_v40 = vrot.slane %v95_v32, 2  ;;  %v2537_v42 = vrot.slane %v2536_v34, 4  ;;  %v1844_v49 = vadd.f32 %v1843_v41, %v1842_v33 }
   0xb   :  { %v2513_v43 = vrot.slane %v2512_v35, 1  ;;  %v2520_v44 = vrot.slane %v2519_v36, 1  ;;  %v2533_v45 = vadd.f32 %v2532_v37, %v2531_v29  ;;  %v104_v46 = vadd.f32 %v103_v38, %v102_v30 }
   0xc   :  { %v2527_v47 = vrot.slane %v2526_v39, 1  ;;  %v97_v48 = vadd.f32 %v96_v40, %v95_v32  ;;  %v2538_v50 = vadd.f32 %v2537_v42, %v2536_v34  ;;  %v1845_v57 = vrot.slane %v1844_v49, 2 }
   0xd   :  { %v2514_v51 = vadd.f32 %v2513_v43, %v2512_v35  ;;  %v2521_v52 = vadd.f32 %v2520_v44, %v2519_v36  ;;  %v2534_v53 = vrot.slane %v2533_v45, 1  ;;  %v105_v54 = vrot.slane %v104_v46, 2 }
   0xe   :  { %v2528_v55 = vadd.f32 %v2527_v47, %v2526_v39  ;;  %v98_v56 = vrot.slane %v97_v48, 1  ;;  %v2539_v58 = vrot.slane %v2538_v50, 2  ;;  %v1846_v4 = vadd.f32 %v1845_v57, %v1844_v49 }
   0xf   :  { %v2732_v59 = vmul.f32 0.125, %v2514_v51  ;;  %v2733_v60 = vmul.f32 0.125, %v2521_v52  ;;  %v2535_v61 = vadd.f32 %v2534_v53, %v2533_v45  ;;  %v106_v62 = vadd.f32 %v105_v54, %v104_v46 }
  0x10   :  { %v2734_v63 = vmul.f32 0.125, %v2528_v55  ;;  %v99_v3 = vadd.f32 %v98_v56, %v97_v48  ;;  %v2540_v7 = vadd.f32 %v2539_v58, %v2538_v50  ;;  %v1847_v17 = vrot.slane %v1846_v4, 1 }
  0x11   :  { %v5841_v9 = vsub.f32 %v5780_v1, %v2732_v59  ;;  %v5844_v10 = vsub.f32 %v5785_v2, %v2733_v60  ;;  %v2735_v11 = vmul.f32 0.125, %v2535_v61  ;;  %v107_v12 = vrot.slane %v106_v62, 1 }
  0x12   :  { %v5847_v14 = vsub.f32 %v5795_v5, %v2734_v63  ;;  %v380_v15 = vmul.f32 0.0625, %v99_v3  ;;  %v2541_v18 = vrot.slane %v2540_v7, 1  ;;  %v1848_v28 = vadd.f32 %v1847_v17, %v1846_v4 }
  0x13   :  { %v2796_v19 = vmul.f32 %v5841_v9, %v5841_v9  ;;  %v2797_v21 = vmul.f32 %v5844_v10, %v5844_v10  ;;  %v5854_v23 = vsub.f32 %v5807_v8, %v2735_v11  ;;  %v108_v24 = vadd.f32 %v107_v12, %v106_v62 }
  0x14   :  { %v2798_v25 = vmul.f32 %v5847_v14, %v5847_v14  ;;  %v5859_v26 = vsub.f32 %v5800_v6, %v380_v15  ;;  %v5862_v27 = vsub.f32 %v5780_v1, %v380_v15  ;;  %v2061_v54 = vmul.f32 0.125, %v1848_v28 }
  0x15   :  { %v2828_v29 = vsel %vm1834_vm0, %v2796_v19, 0.0  ;;  %v2835_v30 = vsel %vm1834_vm0, %v2797_v21, 0.0  ;;  %v2799_v31 = vmul.f32 %v5854_v23, %v5854_v23  ;;  %v381_v32 = vmul.f32 0.0625, %v108_v24 }
  0x16   :  { %v2829_v33 = vrot.slane %v2828_v29, 4  ;;  %v2836_v34 = vrot.slane %v2835_v30, 4  ;;  %v2842_v35 = vsel %vm1834_vm0, %v2798_v25, 0.0  ;;  %v476_v6 = vmul.f32 %v5859_v26, %v5859_v26 }
  0x17   :  { %v2843_v36 = vrot.slane %v2842_v35, 4  ;;  %v477_v1 = vmul.f32 %v5862_v27, %v5862_v27  ;;  %v2849_v37 = vsel %vm1834_vm0, %v2799_v31, 0.0  ;;  %v5875_v38 = vsub.f32 %v5817_v13, %v381_v32 }
  0x18   :  { %v2830_v39 = vadd.f32 %v2829_v33, %v2828_v29  ;;  %v2837_v40 = vadd.f32 %v2836_v34, %v2835_v30  ;;  %v540_v41 = vsel %vm90_vm1, %v476_v6, 0.0  ;;  %v2850_v42 = vrot.slane %v2849_v37, 4 }
  0x19   :  { %v2844_v43 = vadd.f32 %v2843_v36, %v2842_v35  ;;  %v541_v44 = vsel %vm90_vm1, %v477_v1, 0.0  ;;  %v5880_v45 = vsub.f32 %v5785_v2, %v381_v32  ;;  %v478_v46 = vmul.f32 %v5875_v38, %v5875_v38  ;;  %v5902_v36 = vld [vmem:[%s9033_s0 + $0x58] sm:$0xff] }
  0x1a   :  { %v2831_v47 = vrot.slane %v2830_v39, 2  ;;  %v2838_v48 = vrot.slane %v2837_v40, 2  ;;  %v542_v49 = vadd.f32 %v541_v44, %v540_v41  ;;  %v2851_v50 = vadd.f32 %v2850_v42, %v2849_v37 }
  0x1b   :  { %v2845_v51 = vrot.slane %v2844_v43, 2  ;;  %v479_v52 = vmul.f32 %v5880_v45, %v5880_v45  ;;  %v549_v53 = vsel %vm90_vm1, %v478_v46, 0.0  ;;  %v5889_v60 = vsub.f32 %v5817_v13, %v2061_v54 }
  0x1c   :  { %v2832_v55 = vadd.f32 %v2831_v47, %v2830_v39  ;;  %v2839_v56 = vadd.f32 %v2838_v48, %v2837_v40  ;;  %v543_v57 = vrot.slane %v542_v49, 4  ;;  %v2852_v58 = vrot.slane %v2851_v50, 2 }
  0x1d   :  { %v2846_v2 = vadd.f32 %v2845_v51, %v2844_v43  ;;  %v550_v59 = vsel %vm90_vm1, %v479_v52, 0.0  ;;  %v2542_v61 = vadd.f32 %v2541_v18, %v2540_v7  ;;  %v2125_v15 = vmul.f32 %v5889_v60, %v5889_v60 }
  0x1e   :  { %v2833_v62 = vrot.slane %v2832_v55, 1  ;;  %v2840_v63 = vrot.slane %v2839_v56, 1  ;;  %v544_v3 = vadd.f32 %v543_v57, %v542_v49  ;;  %v2853_v4 = vadd.f32 %v2852_v58, %v2851_v50  ;;  %v5908_v49 = vld [vmem:[%s9033_s0 + $0x68] sm:$0xff]  ;;  %v5920_v57 = vld [vmem:[%s9033_s0 + $0x20] sm:$0xff] }
  0x1f   :  { %v2847_v11 = vrot.slane %v2846_v2, 1  ;;  %v551_v12 = vadd.f32 %v550_v59, %v549_v53  ;;  %v2736_v17 = vmul.f32 0.125, %v2542_v61  ;;  %v2163_v13 = vsel %vm1834_vm0, %v2125_v15, 0.0 }
  0x20   :  { %v2834_v19 = vadd.f32 %v2833_v62, %v2832_v55  ;;  %v2841_v21 = vadd.f32 %v2840_v63, %v2839_v56  ;;  %v545_v24 = vrot.slane %v544_v3, 2  ;;  %v2854_v25 = vrot.slane %v2853_v4, 1  ;;  %v5915_v56 = vld [vmem:[%s9033_s0 + $0x78] sm:$0xff] }
  0x21   :  { %v2848_v28 = vadd.f32 %v2847_v11, %v2846_v2  ;;  %v552_v29 = vrot.slane %v551_v12, 4  ;;  %v5895_v7 = vsub.f32 %v5830_v22, %v2736_v17  ;;  %v2164_v35 = vrot.slane %v2163_v13, 4 }
  0x22   :  { %v3052_v18 = vmul.f32 0.125, %v2834_v19  ;;  %v3053_v30 = vmul.f32 0.125, %v2841_v21  ;;  %v546_v31 = vadd.f32 %v545_v24, %v544_v3  ;;  %v2855_v32 = vadd.f32 %v2854_v25, %v2853_v4  ;;  %v5931_v24 = vld [vmem:[%s9033_s0 + $0x88] sm:$0xff] }
  0x23   :  { %v3054_v33 = vmul.f32 0.125, %v2848_v28  ;;  %v553_v34 = vadd.f32 %v552_v29, %v551_v12  ;;  %v2800_v6 = vmul.f32 %v5895_v7, %v5895_v7  ;;  %v2165_v43 = vadd.f32 %v2164_v35, %v2163_v13 }
  0x24   :  { %v3084_v1 = vadd.f32 1e-05, %v3052_v18  ;;  %v3085_v37 = vadd.f32 1e-05, %v3053_v30  ;;  %v547_v39 = vrot.slane %v546_v31, 1  ;;  %v3055_v40 = vmul.f32 0.125, %v2855_v32 }
  0x25   :  { %v3086_v41 = vadd.f32 1e-05, %v3054_v33  ;;  %v554_v42 = vrot.slane %v553_v34, 2  ;;  %v2856_v44 = vsel %vm1834_vm0, %v2800_v6, 0.0  ;;  %v2166_v51 = vrot.slane %v2165_v43, 2 }
  0x26   :  { %5432 = vrsqrt.f32 %v3084_v1  ;;  %v548_v46 = vadd.f32 %v547_v39, %v546_v31  ;;  %v3087_v47 = vadd.f32 1e-05, %v3055_v40  ;;  %v2857_v48 = vrot.slane %v2856_v44, 4 }
  0x27   :  { %5434 = vrsqrt.f32 %v3085_v37  ;;  %v555_v50 = vadd.f32 %v554_v42, %v553_v34  ;;  %v2543_v52 = vsel %vm1834_vm0, %v5902_v36, 0.0  ;;  %v2167_v2 = vadd.f32 %v2166_v51, %v2165_v43 }
  0x28   :  { %5436 = vrsqrt.f32 %v3086_v41  ;;  %v828_v53 = vmul.f32 0.0625, %v548_v46  ;;  %v2858_v54 = vadd.f32 %v2857_v48, %v2856_v44  ;;  %v2544_v55 = vrot.slane %v2543_v52, 4 }
  0x29   :  { %5438 = vrsqrt.f32 %v3087_v47  ;;  %v556_v58 = vrot.slane %v555_v50, 1  ;;  %v2550_v59 = vsel %vm1834_vm0, %v5908_v49, 0.0  ;;  %v2168_v11 = vrot.slane %v2167_v2, 1 }
  0x2a   :  { %v860_v61 = vadd.f32 1e-05, %v828_v53  ;;  %v2859_v62 = vrot.slane %v2858_v54, 2  ;;  %v2545_v63 = vadd.f32 %v2544_v55, %v2543_v52  ;;  %v2551_v3 = vrot.slane %v2550_v59, 4  ;;  %v5946_v53 = vld [vmem:[%s9033_s0 + $0x98] sm:$0xff] }
  0x2b   :  { %v557_v4 = vadd.f32 %v556_v58, %v555_v50  ;;  %v2557_v12 = vsel %vm1834_vm0, %v5915_v56, 0.0  ;;  %v109_v15 = vsel %vm90_vm1, %v5920_v57, 0.0  ;;  %v2169_v28 = vadd.f32 %v2168_v11, %v2167_v2 }
  0x2c   :  { %5440 = vrsqrt.f32 %v860_v61  ;;  %v2860_v17 = vadd.f32 %v2859_v62, %v2858_v54  ;;  %v2546_v19 = vrot.slane %v2545_v63, 2  ;;  %v2552_v21 = vadd.f32 %v2551_v3, %v2550_v59 }
  0x2d   :  { %v829_v25 = vmul.f32 0.0625, %v557_v4  ;;  %v2558_v29 = vrot.slane %v2557_v12, 4  ;;  %v110_v13 = vsel %vm90_vm1, %v5795_v5, 0.0  ;;  %v2381_v34 = vmul.f32 0.125, %v2169_v28 }
  0x2e   :  { %v2861_v18 = vrot.slane %v2860_v17, 1  ;;  %v2547_v30 = vadd.f32 %v2546_v19, %v2545_v63  ;;  %v2553_v31 = vrot.slane %v2552_v21, 2  ;;  %v111_v32 = vadd.f32 %v110_v13, %v109_v15 }
  0x2f   :  { %v861_v33 = vadd.f32 1e-05, %v829_v25  ;;  %v2559_v35 = vadd.f32 %v2558_v29, %v2557_v12  ;;  %v2564_v6 = vsel %vm1834_vm0, %v5931_v24, 0.0  ;;  %v2413_v44 = vadd.f32 1e-05, %v2381_v34 }
  0x30   :  { %v5433_v1 = vpop.eup %5432  ;;  %v2862_v37 = vadd.f32 %v2861_v18, %v2860_v17  ;;  %v2548_v39 = vrot.slane %v2547_v30, 1  ;;  %v2554_v40 = vadd.f32 %v2553_v31, %v2552_v21  ;;  %v112_v41 = vrot.slane %v111_v32, 4 }
  0x31   :  { %v5435_v42 = vpop.eup %5434  ;;  %v5938_v43 = vmul.f32 %v5433_v1, %v5841_v9  ;;  %5442 = vrsqrt.f32 %v861_v33  ;;  %v2560_v46 = vrot.slane %v2559_v35, 2  ;;  %v2565_v63 = vrot.slane %v2564_v6, 4 }
  0x32   :  { %v5437_v47 = vpop.eup %5436  ;;  %v5941_v48 = vmul.f32 %v5435_v42, %v5844_v10  ;;  %v3056_v50 = vmul.f32 0.125, %v2862_v37  ;;  %v2549_v51 = vadd.f32 %v2548_v39, %v2547_v30  ;;  %v2555_v52 = vrot.slane %v2554_v40, 1 }
  0x33   :  { %v5439_v54 = vpop.eup %5438  ;;  %5233 = vmatprep.mubr.msk.f32.mxu1 %vm1834_vm0, %v5938_v43  ;;  %v5951_v9 = vmul.f32 %v5437_v47, %v5847_v14  ;;  %5444 = vrsqrt.f32 %v2413_v44  ;;  %v2561_v55 = vadd.f32 %v2560_v46, %v2559_v35  ;;  %v113_v58 = vadd.f32 %v112_v41, %v111_v32 }
  0x34   :  { %5234 = vmatmul.mubr.msk.f32.vlgmr.msra.gmra.mrb[0].mxu1 %vm1834_vm0, %v5941_v48  ;;  %v5956_v10 = vmul.f32 %v5439_v54, %v5854_v23  ;;  %v3088_v2 = vadd.f32 1e-05, %v3056_v50  ;;  %v2737_v59 = vmul.f32 0.125, %v2549_v51  ;;  %v2556_v61 = vadd.f32 %v2555_v52, %v2554_v40  ;;  %v5994_v40 = vld [vmem:[%s9033_s0 + $0xa8] sm:$0xff] }
  0x35   :  { %5282 = vmatpush3.msra.mxu1 %v5775_v0  ;;  %5236 = vmatprep.mubr.msk.f32.mxu1 %vm1834_vm0, %v5951_v9  ;;  %v2562_v62 = vrot.slane %v2561_v55, 1  ;;  %v114_v14 = vrot.slane %v113_v58, 2  ;;  %v2571_v3 = vsel %vm1834_vm0, %v5946_v53, 0.0  ;;  %v5969_v0 = vld [vmem:[%s9033_s0 + $0x30] sm:$0xff]  ;;  %v2566_v29 = vadd.f32 %v2565_v63, %v2564_v6 }
  0x36   :  { %v5441_v4 = vpop.eup %5440  ;;  %5446 = vrsqrt.f32 %v3088_v2  ;;  %v5964_v11 = vsub.f32 %v5902_v36, %v2737_v59  ;;  %v2738_v23 = vmul.f32 0.125, %v2556_v61  ;;  %v2572_v12 = vrot.slane %v2571_v3, 4 }
  0x37   :  { %v924_v15 = vmul.f32 %v5441_v4, %v5859_v26  ;;  %v925_v17 = vmul.f32 %v5441_v4, %v5862_v27  ;;  %v2563_v19 = vadd.f32 %v2562_v62, %v2561_v55  ;;  %v115_v21 = vadd.f32 %v114_v14, %v113_v58 }
  0x38   :  { %5237 = vmatmul.mubr.msk.f32.gmra.mrb[2].mxu1 %vm1834_vm0, %v5956_v10  ;;  %v2801_v25 = vmul.f32 %v5964_v11, %v5964_v11  ;;  %v5978_v28 = vsub.f32 %v5908_v49, %v2738_v23  ;;  %v2573_v13 = vadd.f32 %v2572_v12, %v2571_v3  ;;  %v118_v27 = vsel %vm90_vm1, %v5969_v0, 0.0 }
  0x39   :  { %1060 = vrot.lane.b32.xlu0 %v924_v15, %s5731_s3  ;;  %v2739_v18 = vmul.f32 0.125, %v2563_v19  ;;  %v116_v26 = vrot.slane %v115_v21, 1  ;;  %v119_v30 = vsel %vm90_vm1, %v5807_v8, 0.0  ;;  %v2567_v33 = vrot.slane %v2566_v29, 2 }
  0x3a   :  { %v2863_v31 = vsel %vm1834_vm0, %v2801_v25, 0.0  ;;  %v2802_v32 = vmul.f32 %v5978_v28, %v5978_v28  ;;  %v2574_v34 = vrot.slane %v2573_v13, 2  ;;  %v120_v39 = vadd.f32 %v119_v30, %v118_v27 }
  0x3b   :  { %v5443_v35 = vpop.eup %5442  ;;  %v2864_v6 = vrot.slane %v2863_v31, 4  ;;  %v5989_v1 = vsub.f32 %v5915_v56, %v2739_v18  ;;  %v117_v37 = vadd.f32 %v116_v26, %v115_v21  ;;  %v2568_v46 = vadd.f32 %v2567_v33, %v2566_v29 }
  0x3c   :  { %v926_v41 = vmul.f32 %v5443_v35, %v5875_v38  ;;  %v927_v42 = vmul.f32 %v5443_v35, %v5880_v45  ;;  %v2870_v44 = vsel %vm1834_vm0, %v2802_v32, 0.0  ;;  %v2575_v58 = vadd.f32 %v2574_v34, %v2573_v13 }
  0x3d   :  { %v5999_v47 = vpop.eup %5444  ;;  %1062 = vrot.lane.b32.xlu0 %v925_v17, %s5731_s3  ;;  %v2865_v50 = vadd.f32 %v2864_v6, %v2863_v31  ;;  %v2871_v51 = vrot.slane %v2870_v44, 4  ;;  %v2803_v52 = vmul.f32 %v5989_v1, %v5989_v1  ;;  %v382_v54 = vmul.f32 0.0625, %v117_v37 }
  0x3e   :  { %1064 = vrot.lane.b32.xlu1 %v926_v41, %s5731_s3  ;;  %v2569_v55 = vrot.slane %v2568_v46, 1  ;;  %v121_v38 = vrot.slane %v120_v39, 4  ;;  %v2578_v45 = vsel %vm1834_vm0, %v5994_v40, 0.0  ;;  %v2576_v23 = vrot.slane %v2575_v58, 1 }
  0x3f   :  { %v2866_v2 = vrot.slane %v2865_v50, 2  ;;  %v2872_v59 = vadd.f32 %v2871_v51, %v2870_v44  ;;  %v2877_v61 = vsel %vm1834_vm0, %v2803_v52, 0.0  ;;  %v6009_v62 = vsub.f32 %v5920_v57, %v382_v54 }
  0x40   :  { %v5447_v14 = vpop.eup %5446  ;;  %v2878_v63 = vrot.slane %v2877_v61, 4  ;;  %v6012_v3 = vsub.f32 %v5795_v5, %v382_v54  ;;  %v2570_v4 = vadd.f32 %v2569_v55, %v2568_v46  ;;  %v2577_v29 = vadd.f32 %v2576_v23, %v2575_v58 }
  0x41   :  { %v6015_v12 = vmul.f32 %v5447_v14, %v5895_v7  ;;  %v2867_v15 = vadd.f32 %v2866_v2, %v2865_v50  ;;  %v2873_v17 = vrot.slane %v2872_v59, 2  ;;  %v480_v19 = vmul.f32 %v6009_v62, %v6009_v62 }
  0x42   :  { %1066 = vrot.lane.b32.xlu1 %v927_v42, %s5731_s3  ;;  %v2879_v21 = vadd.f32 %v2878_v63, %v2877_v61  ;;  %v481_v57 = vmul.f32 %v6012_v3, %v6012_v3  ;;  %v2740_v25 = vmul.f32 0.125, %v2570_v4  ;;  %v122_v18 = vadd.f32 %v121_v38, %v120_v39  ;;  %v6041_v4 = vld [vmem:[%s9033_s0 + $0xb8] sm:$0xff] }
  0x43   :  { %5239 = vmatprep.mubr.msk.f32.mxu1 %vm1834_vm0, %v6015_v12  ;;  %v2868_v5 = vrot.slane %v2867_v15, 1  ;;  %v2874_v13 = vadd.f32 %v2873_v17, %v2872_v59  ;;  %v558_v7 = vsel %vm90_vm1, %v480_v19, 0.0  ;;  %v2741_v31 = vmul.f32 0.125, %v2577_v29 }
  0x44   :  { %v2880_v26 = vrot.slane %v2879_v21, 2  ;;  %v559_v27 = vsel %vm90_vm1, %v481_v57, 0.0  ;;  %v6027_v30 = vsub.f32 %v5931_v24, %v2740_v25  ;;  %v123_v35 = vrot.slane %v122_v18, 2  ;;  %v6046_v25 = vld [vmem:[%s9033_s0 + $0x40] sm:$0xff] }
  0x45   :  { %v2869_v32 = vadd.f32 %v2868_v5, %v2867_v15  ;;  %v2875_v33 = vrot.slane %v2874_v13, 1  ;;  %v560_v34 = vadd.f32 %v559_v27, %v558_v7  ;;  %v6032_v41 = vsub.f32 %v5946_v53, %v2741_v31 }
  0x46   :  { %v2881_v6 = vadd.f32 %v2880_v26, %v2879_v21  ;;  %v2804_v37 = vmul.f32 %v6027_v30, %v6027_v30  ;;  %v2579_v42 = vrot.slane %v2578_v45, 4  ;;  %v124_v50 = vadd.f32 %v123_v35, %v122_v18 }
  0x47   :  { %v3057_v39 = vmul.f32 0.125, %v2869_v32  ;;  %v2876_v44 = vadd.f32 %v2875_v33, %v2874_v13  ;;  %v561_v46 = vrot.slane %v560_v34, 4  ;;  %v2805_v54 = vmul.f32 %v6032_v41, %v6032_v41 }
  0x48   :  { %v2882_v51 = vrot.slane %v2881_v6, 1  ;;  %v2884_v52 = vsel %vm1834_vm0, %v2804_v37, 0.0  ;;  %v2580_v55 = vadd.f32 %v2579_v42, %v2578_v45  ;;  %v125_v14 = vrot.slane %v124_v50, 1 }
  0x49   :  { %v3089_v58 = vadd.f32 1e-05, %v3057_v39  ;;  %v3058_v38 = vmul.f32 0.125, %v2876_v44  ;;  %v562_v2 = vadd.f32 %v561_v46, %v560_v34  ;;  %v2885_v59 = vrot.slane %v2884_v52, 4 }
  0x4a   :  { %v2883_v61 = vadd.f32 %v2882_v51, %v2881_v6  ;;  %v2891_v53 = vsel %vm1834_vm0, %v2805_v54, 0.0  ;;  %v2581_v63 = vrot.slane %v2580_v55, 2  ;;  %v126_v21 = vadd.f32 %v125_v14, %v124_v50 }
  0x4b   :  { %5448 = vrsqrt.f32 %v3089_v58  ;;  %v3090_v23 = vadd.f32 1e-05, %v3058_v38  ;;  %v563_v15 = vrot.slane %v562_v2, 2  ;;  %v2886_v17 = vadd.f32 %v2885_v59, %v2884_v52 }
  0x4c   :  { %v3059_v19 = vmul.f32 0.125, %v2883_v61  ;;  %v2892_v45 = vrot.slane %v2891_v53, 4  ;;  %v2582_v57 = vadd.f32 %v2581_v63, %v2580_v55  ;;  %v2585_v13 = vsel %vm1834_vm0, %v6041_v4, 0.0 }
  0x4d   :  { %5450 = vrsqrt.f32 %v3090_v23  ;;  %v564_v29 = vadd.f32 %v563_v15, %v562_v2  ;;  %v2887_v5 = vrot.slane %v2886_v17, 2  ;;  %v383_v26 = vmul.f32 0.0625, %v126_v21 }
  0x4e   :  { %v3091_v7 = vadd.f32 1e-05, %v3059_v19  ;;  %v2893_v18 = vadd.f32 %v2892_v45, %v2891_v53  ;;  %v2583_v27 = vrot.slane %v2582_v57, 1  ;;  %v2586_v33 = vrot.slane %v2585_v13, 4 }
  0x4f   :  { %v565_v31 = vrot.slane %v564_v29, 1  ;;  %v2888_v32 = vadd.f32 %v2887_v5, %v2886_v17  ;;  %v127_v34 = vsel %vm90_vm1, %v6046_v25, 0.0  ;;  %v6053_v6 = vsub.f32 %v5969_v0, %v383_v26 }
  0x50   :  { %5452 = vrsqrt.f32 %v3091_v7  ;;  %v2894_v35 = vrot.slane %v2893_v18, 2  ;;  %v6056_v37 = vsub.f32 %v5807_v8, %v383_v26  ;;  %v2584_v44 = vadd.f32 %v2583_v27, %v2582_v57  ;;  %v6075_v57 = vld [vmem:[%s9033_s0 + $0xc8] sm:$0xff]  ;;  %v6087_v27 = vld [vmem:[%s9033_s0 + $0xd8] sm:$0xff] }
  0x51   :  { %v566_v42 = vadd.f32 %v565_v31, %v564_v29  ;;  %v2889_v39 = vrot.slane %v2888_v32, 1  ;;  %v2587_v46 = vadd.f32 %v2586_v33, %v2585_v13  ;;  %v482_v51 = vmul.f32 %v6053_v6, %v6053_v6 }
  0x52   :  { %v2895_v50 = vadd.f32 %v2894_v35, %v2893_v18  ;;  %v483_v52 = vmul.f32 %v6056_v37, %v6056_v37  ;;  %v128_v54 = vsel %vm90_vm1, %v5830_v22, 0.0  ;;  %v2742_v58 = vmul.f32 0.125, %v2584_v44  ;;  %v6097_v44 = vld [vmem:[%s9033_s0 + $0x50] sm:$0xff] }
  0x53   :  { %v830_v55 = vmul.f32 0.0625, %v566_v42  ;;  %v2890_v0 = vadd.f32 %v2889_v39, %v2888_v32  ;;  %v2588_v38 = vrot.slane %v2587_v46, 2  ;;  %v567_v2 = vsel %vm90_vm1, %v482_v51, 0.0 }
  0x54   :  { %v2896_v8 = vrot.slane %v2895_v50, 1  ;;  %v568_v59 = vsel %vm90_vm1, %v483_v52, 0.0  ;;  %v129_v61 = vadd.f32 %v128_v54, %v127_v34  ;;  %v6067_v15 = vsub.f32 %v5994_v40, %v2742_v58 }
  0x55   :  { %v5449_v53 = vpop.eup %5448  ;;  %v862_v14 = vadd.f32 1e-05, %v830_v55  ;;  %v3060_v63 = vmul.f32 0.125, %v2890_v0  ;;  %v569_v23 = vadd.f32 %v568_v59, %v567_v2  ;;  %v2589_v45 = vadd.f32 %v2588_v38, %v2587_v46 }
  0x56   :  { %v6070_v17 = vmul.f32 %v5449_v53, %v5964_v11  ;;  %v2897_v19 = vadd.f32 %v2896_v8, %v2895_v50  ;;  %v130_v21 = vrot.slane %v129_v61, 4  ;;  %v2806_v7 = vmul.f32 %v6067_v15, %v6067_v15 }
  0x57   :  { %v5451_v29 = vpop.eup %5450  ;;  %5454 = vrsqrt.f32 %v862_v14  ;;  %v3092_v5 = vadd.f32 1e-05, %v3060_v63  ;;  %v570_v13 = vrot.slane %v569_v23, 4  ;;  %v2590_v18 = vrot.slane %v2589_v45, 1 }
  0x58   :  { %5240 = vmatmul.mubr.msk.f32.gmra.mrb[4].mxu1 %vm1834_vm0, %v6070_v17  ;;  %v6082_v11 = vmul.f32 %v5451_v29, %v5978_v28  ;;  %v3061_v40 = vmul.f32 0.125, %v2897_v19  ;;  %v131_v26 = vadd.f32 %v130_v21, %v129_v61  ;;  %v2898_v32 = vsel %vm1834_vm0, %v2806_v7, 0.0 }
  0x59   :  { %5456 = vrsqrt.f32 %v3092_v5  ;;  %v571_v31 = vadd.f32 %v570_v13, %v569_v23  ;;  %v2592_v33 = vsel %vm1834_vm0, %v6075_v57, 0.0  ;;  %v2899_v35 = vrot.slane %v2898_v32, 4 }
  0x5a   :  { %v5453_v34 = vpop.eup %5452  ;;  %5242 = vmatprep.mubr.msk.f32.mxu1 %vm1834_vm0, %v6082_v11  ;;  %v3093_v28 = vadd.f32 1e-05, %v3061_v40  ;;  %v2591_v42 = vadd.f32 %v2590_v18, %v2589_v45  ;;  %v132_v39 = vrot.slane %v131_v26, 2  ;;  %v2593_v51 = vrot.slane %v2592_v33, 4 }
  0x5b   :  { %v6100_v46 = vmul.f32 %v5453_v34, %v5989_v1  ;;  %v572_v50 = vrot.slane %v571_v31, 2  ;;  %v2599_v52 = vsel %vm1834_vm0, %v6087_v27, 0.0  ;;  %v2900_v54 = vadd.f32 %v2899_v35, %v2898_v32  ;;  %v6111_v1 = vld [vmem:[%s9033_s0 + $0xe8] sm:$0xff] }
  0x5c   :  { %5458 = vrsqrt.f32 %v3093_v28  ;;  %v2743_v55 = vmul.f32 0.125, %v2591_v42  ;;  %v133_v0 = vadd.f32 %v132_v39, %v131_v26  ;;  %v2594_v38 = vadd.f32 %v2593_v51, %v2592_v33 }
  0x5d   :  { %5243 = vmatmul.mubr.msk.f32.gmra.mrb[6].mxu1 %vm1834_vm0, %v6100_v46  ;;  %v573_v58 = vadd.f32 %v572_v50, %v571_v31  ;;  %v2600_v8 = vrot.slane %v2599_v52, 4  ;;  %v136_v2 = vsel %vm90_vm1, %v6097_v44, 0.0  ;;  %v2901_v59 = vrot.slane %v2900_v54, 2 }
  0x5e   :  { %v6114_v61 = vsub.f32 %v6041_v4, %v2743_v55  ;;  %v134_v53 = vrot.slane %v133_v0, 1  ;;  %v137_v14 = vsel %vm90_vm1, %v5902_v36, 0.0  ;;  %v2595_v23 = vrot.slane %v2594_v38, 2 }
  0x5f   :  { %v574_v63 = vrot.slane %v573_v58, 1  ;;  %v2601_v19 = vadd.f32 %v2600_v8, %v2599_v52  ;;  %v138_v45 = vadd.f32 %v137_v14, %v136_v2  ;;  %v2902_v21 = vadd.f32 %v2901_v59, %v2900_v54 }
  0x60   :  { %v2807_v29 = vmul.f32 %v6114_v61, %v6114_v61  ;;  %v135_v5 = vadd.f32 %v134_v53, %v133_v0  ;;  %v2606_v13 = vsel %vm1834_vm0, %v6111_v1, 0.0  ;;  %v2596_v4 = vadd.f32 %v2595_v23, %v2594_v38 }
  0x61   :  { %v5455_v7 = vpop.eup %5454  ;;  %v575_v40 = vadd.f32 %v574_v63, %v573_v58  ;;  %v2602_v18 = vrot.slane %v2601_v19, 2  ;;  %v139_v26 = vrot.slane %v138_v45, 4  ;;  %v2903_v33 = vrot.slane %v2902_v21, 1 }
  0x62   :  { %v928_v31 = vmul.f32 %v5455_v7, %v6009_v62  ;;  %v929_v32 = vmul.f32 %v5455_v7, %v6012_v3  ;;  %v2905_v34 = vsel %vm1834_vm0, %v2807_v29, 0.0  ;;  %v384_v39 = vmul.f32 0.0625, %v135_v5  ;;  %v6151_v5 = vld [vmem:[%s9033_s0 + $0xf8] sm:$0xff]  ;;  %v6156_v7 = vld [vmem:[%s9033_s0 + $0x60] sm:$0xff] }
  0x63   :  { %v5457_v28 = vpop.eup %5456  ;;  %v831_v35 = vmul.f32 0.0625, %v575_v40  ;;  %v2906_v42 = vrot.slane %v2905_v34, 4  ;;  %v2597_v50 = vrot.slane %v2596_v4, 1  ;;  %v2904_v52 = vadd.f32 %v2903_v33, %v2902_v21 }
  0x64   :  { %1068 = vrot.lane.b32.xlu0 %v928_v31, %s5731_s3  ;;  %1070 = vrot.lane.b32.xlu1 %v929_v32, %s5731_s3  ;;  %v6128_v51 = vmul.f32 %v5457_v28, %v6027_v30  ;;  %v2603_v54 = vadd.f32 %v2602_v18, %v2601_v19  ;;  %v2607_v62 = vrot.slane %v2606_v13, 4  ;;  %v6131_v0 = vsub.f32 %v6046_v25, %v384_v39 }
  0x65   :  { %v863_v55 = vadd.f32 1e-05, %v831_v35  ;;  %v2907_v3 = vadd.f32 %v2906_v42, %v2905_v34  ;;  %v6134_v58 = vsub.f32 %v5830_v22, %v384_v39  ;;  %v3062_v8 = vmul.f32 0.125, %v2904_v52 }
  0x66   :  { %v5459_v38 = vpop.eup %5458  ;;  %5245 = vmatprep.mubr.msk.f32.mxu1 %vm1834_vm0, %v6128_v51  ;;  %v2598_v2 = vadd.f32 %v2597_v50, %v2596_v4  ;;  %v2604_v59 = vrot.slane %v2603_v54, 1  ;;  %v140_v30 = vadd.f32 %v139_v26, %v138_v45  ;;  %v484_v25 = vmul.f32 %v6131_v0, %v6131_v0 }
  0x67   :  { %v6139_v53 = vmul.f32 %v5459_v38, %v6032_v41  ;;  %5460 = vrsqrt.f32 %v863_v55  ;;  %v2908_v14 = vrot.slane %v2907_v3, 2  ;;  %v3094_v63 = vadd.f32 1e-05, %v3062_v8 }
  0x68   :  { %v485_v22 = vmul.f32 %v6134_v58, %v6134_v58  ;;  %v2744_v23 = vmul.f32 0.125, %v2598_v2  ;;  %v2605_v19 = vadd.f32 %v2604_v59, %v2603_v54  ;;  %v576_v45 = vsel %vm90_vm1, %v484_v25, 0.0 }
  0x69   :  { %5246 = vmatmul.mubr.msk.f32.gmra.mrb[8].mxu1 %vm1834_vm0, %v6139_v53  ;;  %v2909_v21 = vadd.f32 %v2908_v14, %v2907_v3  ;;  %v141_v29 = vrot.slane %v140_v30, 2  ;;  %v2608_v41 = vadd.f32 %v2607_v62, %v2606_v13  ;;  %5462 = vrsqrt.f32 %v3094_v63 }
  0x6a   :  { %v577_v40 = vsel %vm90_vm1, %v485_v22, 0.0  ;;  %v6160_v4 = vsub.f32 %v6075_v57, %v2744_v23  ;;  %v2745_v18 = vmul.f32 0.125, %v2605_v19  ;;  %v2613_v28 = vsel %vm1834_vm0, %v6151_v5, 0.0 }
  0x6b   :  { %v2910_v26 = vrot.slane %v2909_v21, 1  ;;  %v578_v31 = vadd.f32 %v577_v40, %v576_v45  ;;  %v142_v13 = vadd.f32 %v141_v29, %v140_v30  ;;  %v2609_v32 = vrot.slane %v2608_v41, 2 }
  0x6c   :  { %v2808_v33 = vmul.f32 %v6160_v4, %v6160_v4  ;;  %v6165_v34 = vsub.f32 %v6087_v27, %v2745_v18  ;;  %v145_v35 = vsel %vm90_vm1, %v6156_v7, 0.0  ;;  %v2614_v62 = vrot.slane %v2613_v28, 4 }
  0x6d   :  { %v2911_v42 = vadd.f32 %v2910_v26, %v2909_v21  ;;  %v579_v57 = vrot.slane %v578_v31, 4  ;;  %v143_v39 = vrot.slane %v142_v13, 1  ;;  %v2610_v50 = vadd.f32 %v2609_v32, %v2608_v41 }
  0x6e   :  { %v2912_v52 = vsel %vm1834_vm0, %v2808_v33, 0.0  ;;  %v2809_v54 = vmul.f32 %v6165_v34, %v6165_v34  ;;  %v146_v27 = vsel %vm90_vm1, %v5908_v49, 0.0  ;;  %v2615_v30 = vadd.f32 %v2614_v62, %v2613_v28  ;;  %v6202_v62 = vld [vmem:[%s9033_s0 + $0x108] sm:$0xff] }
  0x6f   :  { %v3063_v55 = vmul.f32 0.125, %v2911_v42  ;;  %v580_v3 = vadd.f32 %v579_v57, %v578_v31  ;;  %v2913_v38 = vrot.slane %v2912_v52, 4  ;;  %v144_v8 = vadd.f32 %v143_v39, %v142_v13 }
  0x70   :  { %v2919_v2 = vsel %vm1834_vm0, %v2809_v54, 0.0  ;;  %v2611_v59 = vrot.slane %v2610_v50, 1  ;;  %v147_v14 = vadd.f32 %v146_v27, %v145_v35  ;;  %v2616_v33 = vrot.slane %v2615_v30, 2 }
  0x71   :  { %v5461_v25 = vpop.eup %5460  ;;  %v3095_v63 = vadd.f32 1e-05, %v3063_v55  ;;  %v581_v22 = vrot.slane %v580_v3, 2  ;;  %v2914_v23 = vadd.f32 %v2913_v38, %v2912_v52  ;;  %v2920_v19 = vrot.slane %v2919_v2, 4 }
  0x72   :  { %v930_v21 = vmul.f32 %v5461_v25, %v6053_v6  ;;  %v931_v45 = vmul.f32 %v5461_v25, %v6056_v37  ;;  %v385_v29 = vmul.f32 0.0625, %v144_v8  ;;  %v2612_v41 = vadd.f32 %v2611_v59, %v2610_v50 }
  0x73   :  { %5464 = vrsqrt.f32 %v3095_v63  ;;  %v582_v40 = vadd.f32 %v581_v22, %v580_v3  ;;  %v2915_v18 = vrot.slane %v2914_v23, 2  ;;  %v2921_v26 = vadd.f32 %v2920_v19, %v2919_v2  ;;  %v5463_v31 = vpop.eup %5462 }
  0x74   :  { %1072 = vrot.lane.b32.xlu0 %v930_v21, %s5731_s3  ;;  %1074 = vrot.lane.b32.xlu1 %v931_v45, %s5731_s3  ;;  %v6182_v13 = vsub.f32 %v6097_v44, %v385_v29  ;;  %v6185_v32 = vsub.f32 %v5902_v36, %v385_v29  ;;  %v2746_v6 = vmul.f32 0.125, %v2612_v41  ;;  %v6188_v37 = vmul.f32 %v5463_v31, %v6067_v15 }
  0x75   :  { %v583_v28 = vrot.slane %v582_v40, 1  ;;  %v2916_v35 = vadd.f32 %v2915_v18, %v2914_v23  ;;  %v2922_v42 = vrot.slane %v2921_v26, 2  ;;  %v2617_v50 = vadd.f32 %v2616_v33, %v2615_v30 }
  0x76   :  { %v486_v57 = vmul.f32 %v6182_v13, %v6182_v13  ;;  %v487_v39 = vmul.f32 %v6185_v32, %v6185_v32  ;;  %v6195_v44 = vsub.f32 %v6111_v1, %v2746_v6  ;;  %5248 = vmatprep.mubr.msk.f32.mxu1 %vm1834_vm0, %v6188_v37  ;;  %v148_v54 = vrot.slane %v147_v14, 4 }
  0x77   :  { %v584_v36 = vadd.f32 %v583_v28, %v582_v40  ;;  %v2917_v52 = vrot.slane %v2916_v35, 1  ;;  %v2923_v15 = vadd.f32 %v2922_v42, %v2921_v26  ;;  %v2618_v3 = vrot.slane %v2617_v50, 1 }
  0x78   :  { %v585_v27 = vsel %vm90_vm1, %v486_v57, 0.0  ;;  %v586_v55 = vsel %vm90_vm1, %v487_v39, 0.0  ;;  %v2810_v1 = vmul.f32 %v6195_v44, %v6195_v44  ;;  %v149_v63 = vadd.f32 %v148_v54, %v147_v14  ;;  %v6214_v14 = vld [vmem:[%s9033_s0 + $0x118] sm:$0xff] }
  0x79   :  { %v832_v38 = vmul.f32 0.0625, %v584_v36  ;;  %v2918_v8 = vadd.f32 %v2917_v52, %v2916_v35  ;;  %v2924_v2 = vrot.slane %v2923_v15, 1  ;;  %v587_v59 = vadd.f32 %v586_v55, %v585_v27  ;;  %v6225_v52 = vld [vmem:[%s9033_s0 + $0x70] sm:$0xff] }
  0x7a   :  { %v2926_v30 = vsel %vm1834_vm0, %v2810_v1, 0.0  ;;  %v2619_v25 = vadd.f32 %v2618_v3, %v2617_v50  ;;  %v2620_v22 = vsel %vm1834_vm0, %v6202_v62, 0.0  ;;  %v150_v40 = vrot.slane %v149_v63, 2  ;;  %v6236_v3 = vld [vmem:[%s9033_s0 + $0x128] sm:$0xff] }
  0x7b   :  { %v864_v23 = vadd.f32 1e-05, %v832_v38  ;;  %v3064_v19 = vmul.f32 0.125, %v2918_v8  ;;  %v2925_v21 = vadd.f32 %v2924_v2, %v2923_v15  ;;  %v588_v45 = vrot.slane %v587_v59, 4 }
  0x7c   :  { %v2927_v29 = vrot.slane %v2926_v30, 4  ;;  %v2747_v41 = vmul.f32 0.125, %v2619_v25  ;;  %v2621_v18 = vrot.slane %v2620_v22, 4  ;;  %v151_v57 = vadd.f32 %v150_v40, %v149_v63 }
  0x7d   :  { %v5465_v26 = vpop.eup %5464  ;;  %5466 = vrsqrt.f32 %v864_v23  ;;  %v3096_v31 = vadd.f32 1e-05, %v3064_v19  ;;  %v3065_v6 = vmul.f32 0.125, %v2925_v21  ;;  %v589_v33 = vadd.f32 %v588_v45, %v587_v59 }
  0x7e   :  { %v6217_v28 = vmul.f32 %v5465_v26, %v6114_v61  ;;  %v2928_v35 = vadd.f32 %v2927_v29, %v2926_v30  ;;  %v6220_v42 = vsub.f32 %v6151_v5, %v2747_v41  ;;  %v2622_v36 = vadd.f32 %v2621_v18, %v2620_v22 }
  0x7f   :  { %5468 = vrsqrt.f32 %v3096_v31  ;;  %v3097_v39 = vadd.f32 1e-05, %v3065_v6  ;;  %v590_v50 = vrot.slane %v589_v33, 2  ;;  %v152_v54 = vrot.slane %v151_v57, 1 }
  0x80   :  { %9087 = vst [vmem:[#allocation2_spill] sm:$0xff] %v6217_v28  ;;  %5249 = vmatmul.mubr.msk.f32.gmra.mrb[10].mxu1 %vm1834_vm0, %v6217_v28  ;;  %v2929_v15 = vrot.slane %v2928_v35, 2  ;;  %v2811_v61 = vmul.f32 %v6220_v42, %v6220_v42  ;;  %v2627_v5 = vsel %vm1834_vm0, %v6214_v14, 0.0  ;;  %v2623_v55 = vrot.slane %v2622_v36, 2 }
  0x81   :  { %5470 = vrsqrt.f32 %v3097_v39  ;;  %v591_v27 = vadd.f32 %v590_v50, %v589_v33  ;;  %v2628_v1 = vrot.slane %v2627_v5, 4  ;;  %v153_v2 = vadd.f32 %v152_v54, %v151_v57 }
  0x82   :  { %v2930_v38 = vadd.f32 %v2929_v15, %v2928_v35  ;;  %v2933_v8 = vsel %vm1834_vm0, %v2811_v61, 0.0  ;;  %v154_v59 = vsel %vm90_vm1, %v6225_v52, 0.0  ;;  %v2624_v63 = vadd.f32 %v2623_v55, %v2622_v36 }
  0x83   :  { %v592_v30 = vrot.slane %v591_v27, 1  ;;  %v2934_v25 = vrot.slane %v2933_v8, 4  ;;  %v2629_v22 = vadd.f32 %v2628_v1, %v2627_v5  ;;  %v386_v19 = vmul.f32 0.0625, %v153_v2 }
  0x84   :  { %v2931_v23 = vrot.slane %v2930_v38, 1  ;;  %v155_v21 = vsel %vm90_vm1, %v5915_v56, 0.0  ;;  %v2634_v45 = vsel %vm1834_vm0, %v6236_v3, 0.0  ;;  %v2625_v40 = vrot.slane %v2624_v63, 1 }
  0x85   :  { %v593_v29 = vadd.f32 %v592_v30, %v591_v27  ;;  %v2935_v41 = vadd.f32 %v2934_v25, %v2933_v8  ;;  %v2630_v18 = vrot.slane %v2629_v22, 2  ;;  %v6246_v31 = vsub.f32 %v6156_v7, %v386_v19  ;;  %v6270_v25 = vld [vmem:[%s9033_s0 + $0x138] sm:$0xff] }
  0x86   :  { %v2932_v26 = vadd.f32 %v2931_v23, %v2930_v38  ;;  %v6249_v6 = vsub.f32 %v5908_v49, %v386_v19  ;;  %v156_v33 = vadd.f32 %v155_v21, %v154_v59  ;;  %v2626_v50 = vadd.f32 %v2625_v40, %v2624_v63 }
  0x87   :  { %v5467_v35 = vpop.eup %5466  ;;  %v833_v57 = vmul.f32 0.0625, %v593_v29  ;;  %v2936_v39 = vrot.slane %v2935_v41, 2  ;;  %v2631_v56 = vadd.f32 %v2630_v18, %v2629_v22  ;;  %v488_v54 = vmul.f32 %v6246_v31, %v6246_v31 }
  0x88   :  { %v932_v36 = vmul.f32 %v5467_v35, %v6131_v0  ;;  %v933_v15 = vmul.f32 %v5467_v35, %v6134_v58  ;;  %v3066_v61 = vmul.f32 0.125, %v2932_v26  ;;  %v489_v49 = vmul.f32 %v6249_v6, %v6249_v6 }
  0x89   :  { %v5469_v5 = vpop.eup %5468  ;;  %v865_v7 = vadd.f32 1e-05, %v833_v57  ;;  %v2937_v27 = vadd.f32 %v2936_v39, %v2935_v41  ;;  %v2748_v55 = vmul.f32 0.125, %v2626_v50  ;;  %v594_v58 = vsel %vm90_vm1, %v488_v54, 0.0 }
  0x8a   :  { %1076 = vrot.lane.b32.xlu0 %v932_v36, %s5731_s3  ;;  %1078 = vrot.lane.b32.xlu1 %v933_v15, %s5731_s3  ;;  %v6260_v1 = vmul.f32 %v5469_v5, %v6160_v4  ;;  %v3098_v0 = vadd.f32 1e-05, %v3066_v61  ;;  %v2632_v38 = vrot.slane %v2631_v56, 1  ;;  %v595_v59 = vsel %vm90_vm1, %v489_v49, 0.0  ;;  %v6275_v4 = vld [vmem:[%s9033_s0 + $0x80] sm:$0xff] }
  0x8b   :  { %v5471_v8 = vpop.eup %5470  ;;  %5472 = vrsqrt.f32 %v865_v7  ;;  %v2938_v2 = vrot.slane %v2937_v27, 1  ;;  %v6265_v30 = vsub.f32 %v6202_v62, %v2748_v55  ;;  %v596_v22 = vadd.f32 %v595_v59, %v594_v58 }
  0x8c   :  { %9088 = vst [vmem:[#allocation3_spill] sm:$0xff] %v6260_v1  ;;  %5251 = vmatprep.mubr.msk.f32.mxu1 %vm1834_vm0, %v6260_v1  ;;  %v6280_v63 = vmul.f32 %v5471_v8, %v6165_v34  ;;  %5474 = vrsqrt.f32 %v3098_v0  ;;  %v2633_v62 = vadd.f32 %v2632_v38, %v2631_v56  ;;  %v157_v21 = vrot.slane %v156_v33, 4 }
  0x8d   :  { %v2939_v23 = vadd.f32 %v2938_v2, %v2937_v27  ;;  %v2812_v19 = vmul.f32 %v6265_v30, %v6265_v30  ;;  %v2635_v29 = vrot.slane %v2634_v45, 4  ;;  %v597_v41 = vrot.slane %v596_v22, 4 }
  0x8e   :  { %9089 = vst [vmem:[#allocation4_spill] sm:$0xff] %v6280_v63  ;;  %5252 = vmatmul.mubr.msk.f32.gmra.mrb[12].mxu1 %vm1834_vm0, %v6280_v63  ;;  %v2749_v40 = vmul.f32 0.125, %v2633_v62  ;;  %v2641_v18 = vsel %vm1834_vm0, %v6270_v25, 0.0  ;;  %v163_v34 = vsel %vm90_vm1, %v6275_v4, 0.0  ;;  %v158_v57 = vadd.f32 %v157_v21, %v156_v33 }
  0x8f   :  { %v3067_v26 = vmul.f32 0.125, %v2939_v23  ;;  %v2940_v35 = vsel %vm1834_vm0, %v2812_v19, 0.0  ;;  %v2636_v39 = vadd.f32 %v2635_v29, %v2634_v45  ;;  %v598_v50 = vadd.f32 %v597_v41, %v596_v22 }
  0x90   :  { %v2941_v56 = vrot.slane %v2940_v35, 4  ;;  %v6292_v36 = vsub.f32 %v6214_v14, %v2749_v40  ;;  %v2642_v15 = vrot.slane %v2641_v18, 4  ;;  %v159_v54 = vrot.slane %v158_v57, 2 }
  0x91   :  { %v3099_v61 = vadd.f32 1e-05, %v3067_v26  ;;  %v2637_v5 = vrot.slane %v2636_v39, 2  ;;  %v164_v7 = vsel %vm90_vm1, %v5931_v24, 0.0  ;;  %v599_v27 = vrot.slane %v598_v50, 2 }
  0x92   :  { %v2942_v49 = vadd.f32 %v2941_v56, %v2940_v35  ;;  %v2813_v55 = vmul.f32 %v6292_v36, %v6292_v36  ;;  %v2643_v0 = vadd.f32 %v2642_v15, %v2641_v18  ;;  %v160_v45 = vadd.f32 %v159_v54, %v158_v57  ;;  %v6304_v18 = vld [vmem:[%s9033_s0 + $0x148] sm:$0xff] }
  0x93   :  { %5476 = vrsqrt.f32 %v3099_v61  ;;  %v2638_v33 = vadd.f32 %v2637_v5, %v2636_v39  ;;  %v165_v58 = vadd.f32 %v164_v7, %v163_v34  ;;  %v600_v38 = vadd.f32 %v599_v27, %v598_v50 }
  0x94   :  { %v2943_v14 = vrot.slane %v2942_v49, 2  ;;  %v2947_v8 = vsel %vm1834_vm0, %v2813_v55, 0.0  ;;  %v2644_v2 = vrot.slane %v2643_v0, 2  ;;  %v161_v62 = vrot.slane %v160_v45, 1 }
  0x95   :  { %v5473_v59 = vpop.eup %5472  ;;  %v2948_v22 = vrot.slane %v2947_v8, 4  ;;  %v2639_v23 = vrot.slane %v2638_v33, 1  ;;  %v166_v24 = vrot.slane %v165_v58, 4  ;;  %v601_v41 = vrot.slane %v600_v38, 1 }
  0x96   :  { %v5475_v19 = vpop.eup %5474  ;;  %v934_v21 = vmul.f32 %v5473_v59, %v6182_v13  ;;  %v935_v29 = vmul.f32 %v5473_v59, %v6185_v32  ;;  %v2944_v40 = vadd.f32 %v2943_v14, %v2942_v49  ;;  %v162_v35 = vadd.f32 %v161_v62, %v160_v45 }
  0x97   :  { %v6307_v34 = vmul.f32 %v5475_v19, %v6195_v44  ;;  %v2949_v26 = vadd.f32 %v2948_v22, %v2947_v8  ;;  %v2640_v57 = vadd.f32 %v2639_v23, %v2638_v33  ;;  %v602_v13 = vadd.f32 %v601_v41, %v600_v38  ;;  %v6338_v19 = vld [vmem:[%s9033_s0 + $0x158] sm:$0xff] }
  0x98   :  { %1080 = vrot.lane.b32.xlu0 %v934_v21, %s5731_s3  ;;  %1082 = vrot.lane.b32.xlu1 %v935_v29, %s5731_s3  ;;  %v2945_v39 = vrot.slane %v2944_v40, 1  ;;  %v2645_v32 = vadd.f32 %v2644_v2, %v2643_v0  ;;  %v167_v50 = vadd.f32 %v166_v24, %v165_v58  ;;  %v387_v15 = vmul.f32 0.0625, %v162_v35  ;;  %v5624_v0 = vld [vmem:[%s9033_s0 + $0x78] sm:$0xff] }
  0x99   :  { %9090 = vst [vmem:[#allocation5_spill] sm:$0xff] %v6307_v34  ;;  %5254 = vmatprep.mubr.msk.f32.mxu1 %vm1834_vm0, %v6307_v34  ;;  %v2950_v56 = vrot.slane %v2949_v26, 2  ;;  %v2750_v61 = vmul.f32 0.125, %v2640_v57  ;;  %v2648_v44 = vsel %vm1834_vm0, %v6304_v18, 0.0  ;;  %v834_v54 = vmul.f32 0.0625, %v602_v13  ;;  %v6351_v57 = vld [vmem:[%s9033_s0 + $0x90] sm:$0xff] }
  0x9a   :  { %v2946_v5 = vadd.f32 %v2945_v39, %v2944_v40  ;;  %v2646_v7 = vrot.slane %v2645_v32, 1  ;;  %v168_v27 = vrot.slane %v167_v50, 2  ;;  %v6316_v55 = vsub.f32 %v6225_v52, %v387_v15 }
  0x9b   :  { %v2951_v49 = vadd.f32 %v2950_v56, %v2949_v26  ;;  %v6321_v45 = vsub.f32 %v5624_v0, %v387_v15  ;;  %v6324_v33 = vsub.f32 %v6236_v3, %v2750_v61  ;;  %v866_v58 = vadd.f32 1e-05, %v834_v54 }
  0x9c   :  { %v3068_v38 = vmul.f32 0.125, %v2946_v5  ;;  %v2647_v14 = vadd.f32 %v2646_v7, %v2645_v32  ;;  %v169_v8 = vadd.f32 %v168_v27, %v167_v50  ;;  %v490_v22 = vmul.f32 %v6316_v55, %v6316_v55 }
  0x9d   :  { %v5477_v2 = vpop.eup %5476  ;;  %v2952_v59 = vrot.slane %v2951_v49, 1  ;;  %v491_v52 = vmul.f32 %v6321_v45, %v6321_v45  ;;  %v2814_v62 = vmul.f32 %v6324_v33, %v6324_v33  ;;  %5478 = vrsqrt.f32 %v866_v58 }
  0x9e   :  { %v6333_v23 = vmul.f32 %v5477_v2, %v6220_v42  ;;  %v3100_v3 = vadd.f32 1e-05, %v3068_v38  ;;  %v2751_v24 = vmul.f32 0.125, %v2647_v14  ;;  %v603_v29 = vsel %vm90_vm1, %v490_v22, 0.0 }
  0x9f   :  { %v2953_v21 = vadd.f32 %v2952_v59, %v2951_v49  ;;  %v604_v41 = vsel %vm90_vm1, %v491_v52, 0.0  ;;  %v2954_v40 = vsel %vm1834_vm0, %v2814_v62, 0.0  ;;  %v170_v39 = vrot.slane %v169_v8, 1 }
  0xa0   :  { %9091 = vst [vmem:[#allocation6_spill] sm:$0xff] %v6333_v23  ;;  %5255 = vmatmul.mubr.msk.f32.gmra.mrb[14].mxu1 %vm1834_vm0, %v6333_v23  ;;  %5480 = vrsqrt.f32 %v3100_v3  ;;  %v605_v42 = vadd.f32 %v604_v41, %v603_v29  ;;  %v2955_v26 = vrot.slane %v2954_v40, 4  ;;  %v6346_v35 = vsub.f32 %v6270_v25, %v2751_v24 }
  0xa1   :  { %v3069_v13 = vmul.f32 0.125, %v2953_v21  ;;  %v2649_v32 = vrot.slane %v2648_v44, 4  ;;  %v2655_v50 = vsel %vm1834_vm0, %v6338_v19, 0.0  ;;  %v171_v25 = vadd.f32 %v170_v39, %v169_v8  ;;  %v6363_v8 = vld [vmem:[%s9033_s0 + $0x98] sm:$0xff]  ;;  %v5626_v21 = vld [vmem:[%s9033_s0 + $0x88] sm:$0xff] }
  0xa2   :  { %v606_v56 = vrot.slane %v605_v42, 4  ;;  %v2956_v15 = vadd.f32 %v2955_v26, %v2954_v40  ;;  %v2815_v61 = vmul.f32 %v6346_v35, %v6346_v35  ;;  %v2656_v54 = vrot.slane %v2655_v50, 4 }
  0xa3   :  { %v3101_v5 = vadd.f32 1e-05, %v3069_v13  ;;  %v2650_v7 = vadd.f32 %v2649_v32, %v2648_v44  ;;  %v172_v27 = vsel %vm90_vm1, %v6351_v57, 0.0  ;;  %v388_v2 = vmul.f32 0.0625, %v171_v25 }
  0xa4   :  { %v607_v49 = vadd.f32 %v606_v56, %v605_v42  ;;  %v2957_v0 = vrot.slane %v2956_v15, 2  ;;  %v2961_v58 = vsel %vm1834_vm0, %v2815_v61, 0.0  ;;  %v2657_v38 = vadd.f32 %v2656_v54, %v2655_v50 }
  0xa5   :  { %5482 = vrsqrt.f32 %v3101_v5  ;;  %v2962_v14 = vrot.slane %v2961_v58, 4  ;;  %v2651_v59 = vrot.slane %v2650_v7, 2  ;;  %v173_v44 = vsel %vm90_vm1, %v6363_v8, 0.0 }
  0xa6   :  { %v608_v22 = vrot.slane %v607_v49, 2  ;;  %v2958_v52 = vadd.f32 %v2957_v0, %v2956_v15  ;;  %v2658_v62 = vrot.slane %v2657_v38, 2  ;;  %v6368_v24 = vsub.f32 %v6275_v4, %v388_v2 }
  0xa7   :  { %v2963_v3 = vadd.f32 %v2962_v14, %v2961_v58  ;;  %v6373_v29 = vsub.f32 %v5626_v21, %v388_v2  ;;  %v2652_v41 = vadd.f32 %v2651_v59, %v2650_v7  ;;  %v5479_v40 = vpop.eup %5478  ;;  %v174_v39 = vadd.f32 %v173_v44, %v172_v27 }
  0xa8   :  { %v609_v42 = vadd.f32 %v608_v22, %v607_v49  ;;  %v2959_v26 = vrot.slane %v2958_v52, 1  ;;  %v2659_v13 = vadd.f32 %v2658_v62, %v2657_v38  ;;  %v936_v32 = vmul.f32 %v5479_v40, %v6246_v31  ;;  %v6390_v49 = vld [vmem:[%s9033_s0 + $0x168] sm:$0xff] }
  0xa9   :  { %v937_v50 = vmul.f32 %v5479_v40, %v6249_v6  ;;  %v2964_v56 = vrot.slane %v2963_v3, 2  ;;  %v492_v4 = vmul.f32 %v6368_v24, %v6368_v24  ;;  %v493_v5 = vmul.f32 %v6373_v29, %v6373_v29 }
  0xaa   :  { %v5481_v15 = vpop.eup %5480  ;;  %v610_v61 = vrot.slane %v609_v42, 1  ;;  %v2960_v54 = vadd.f32 %v2959_v26, %v2958_v52  ;;  %v2653_v25 = vrot.slane %v2652_v41, 1  ;;  %1084 = vrot.lane.b32.xlu0 %v936_v32, %s5731_s3  ;;  %v2660_v27 = vrot.slane %v2659_v13, 1 }
  0xab   :  { %1086 = vrot.lane.b32.xlu1 %v937_v50, %s5731_s3  ;;  %v6384_v7 = vmul.f32 %v5481_v15, %v6265_v30  ;;  %v2965_v31 = vadd.f32 %v2964_v56, %v2963_v3  ;;  %v612_v6 = vsel %vm90_vm1, %v492_v4, 0.0  ;;  %v613_v38 = vsel %vm90_vm1, %v493_v5, 0.0 }
  0xac   :  { %v611_v0 = vadd.f32 %v610_v61, %v609_v42  ;;  %v3070_v58 = vmul.f32 0.125, %v2960_v54  ;;  %v2654_v14 = vadd.f32 %v2653_v25, %v2652_v41  ;;  %v614_v30 = vadd.f32 %v613_v38, %v612_v6  ;;  %v6400_v41 = vld [vmem:[%s9033_s0 + $0x178] sm:$0xff] }
  0xad   :  { %9092 = vst [vmem:[#allocation7_spill] sm:$0xff] %v6384_v7  ;;  %5257 = vmatprep.mubr.msk.f32.mxu1 %vm1834_vm0, %v6384_v7  ;;  %v2966_v2 = vrot.slane %v2965_v31, 1  ;;  %v2661_v59 = vadd.f32 %v2660_v27, %v2659_v13  ;;  %v175_v22 = vrot.slane %v174_v39, 4  ;;  %v2662_v3 = vsel %vm1834_vm0, %v6390_v49, 0.0 }
  0xae   :  { %v835_v52 = vmul.f32 0.0625, %v611_v0  ;;  %v3102_v62 = vadd.f32 1e-05, %v3070_v58  ;;  %v2752_v44 = vmul.f32 0.125, %v2654_v14  ;;  %v615_v42 = vrot.slane %v614_v30, 4  ;;  %v6430_v14 = vld [vmem:[%s9033_s0 + $0x188] sm:$0xff] }
  0xaf   :  { %v5483_v21 = vpop.eup %5482  ;;  %v2967_v40 = vadd.f32 %v2966_v2, %v2965_v31  ;;  %v2753_v26 = vmul.f32 0.125, %v2661_v59  ;;  %v176_v32 = vadd.f32 %v175_v22, %v174_v39  ;;  %v6414_v39 = vld [vmem:[%s9033_s0 + $0xa0] sm:$0xff]  ;;  %v2669_v5 = vsel %vm1834_vm0, %v6400_v41, 0.0 }
  0xb0   :  { %v6403_v50 = vmul.f32 %v5483_v21, %v6292_v36  ;;  %v867_v13 = vadd.f32 1e-05, %v835_v52  ;;  %5484 = vrsqrt.f32 %v3102_v62  ;;  %v6406_v56 = vsub.f32 %v6304_v18, %v2752_v44 }
  0xb1   :  { %v3071_v4 = vmul.f32 0.125, %v2967_v40  ;;  %v616_v15 = vadd.f32 %v615_v42, %v614_v30  ;;  %v6409_v61 = vsub.f32 %v6338_v19, %v2753_v26  ;;  %v177_v54 = vrot.slane %v176_v32, 2  ;;  %v6436_v40 = vld [vmem:[%s9033_s0 + $0xa8] sm:$0xff] }
  0xb2   :  { %9093 = vst [vmem:[#allocation8_spill] sm:$0xff] %v6403_v50  ;;  %5258 = vmatmul.mubr.msk.f32.gmra.mrb[16].mxu1 %vm1834_vm0, %v6403_v50  ;;  %5486 = vrsqrt.f32 %v867_v13  ;;  %v2816_v36 = vmul.f32 %v6406_v56, %v6406_v56  ;;  %v2663_v18 = vrot.slane %v2662_v3, 4  ;;  %v2670_v58 = vrot.slane %v2669_v5, 4 }
  0xb3   :  { %v3103_v25 = vadd.f32 1e-05, %v3071_v4  ;;  %v617_v19 = vrot.slane %v616_v15, 2  ;;  %v2817_v31 = vmul.f32 %v6409_v61, %v6409_v61  ;;  %v178_v6 = vadd.f32 %v177_v54, %v176_v32 }
  0xb4   :  { %v2968_v27 = vsel %vm1834_vm0, %v2816_v36, 0.0  ;;  %v2664_v0 = vadd.f32 %v2663_v18, %v2662_v3  ;;  %v181_v38 = vsel %vm90_vm1, %v6414_v39, 0.0  ;;  %v2671_v44 = vadd.f32 %v2670_v58, %v2669_v5 }
  0xb5   :  { %5488 = vrsqrt.f32 %v3103_v25  ;;  %v618_v2 = vadd.f32 %v617_v19, %v616_v15  ;;  %v2969_v30 = vrot.slane %v2968_v27, 4  ;;  %v2975_v59 = vsel %vm1834_vm0, %v2817_v31, 0.0 }
  0xb6   :  { %v2976_v22 = vrot.slane %v2975_v59, 4  ;;  %v179_v52 = vrot.slane %v178_v6, 1  ;;  %v2665_v62 = vrot.slane %v2664_v0, 2  ;;  %v182_v42 = vsel %vm90_vm1, %v6436_v40, 0.0 }
  0xb7   :  { %v619_v21 = vrot.slane %v618_v2, 1  ;;  %v2970_v3 = vadd.f32 %v2969_v30, %v2968_v27  ;;  %v2676_v26 = vsel %vm1834_vm0, %v6430_v14, 0.0  ;;  %v2672_v15 = vrot.slane %v2671_v44, 2 }
  0xb8   :  { %v2977_v32 = vadd.f32 %v2976_v22, %v2975_v59  ;;  %v180_v13 = vadd.f32 %v179_v52, %v178_v6  ;;  %v2666_v4 = vadd.f32 %v2665_v62, %v2664_v0  ;;  %v183_v18 = vadd.f32 %v182_v42, %v181_v38 }
  0xb9   :  { %v620_v54 = vadd.f32 %v619_v21, %v618_v2  ;;  %v2971_v36 = vrot.slane %v2970_v3, 2  ;;  %v2677_v5 = vrot.slane %v2676_v26, 4  ;;  %v2673_v58 = vadd.f32 %v2672_v15, %v2671_v44 }
  0xba   :  { %v5485_v25 = vpop.eup %5484  ;;  %v2978_v19 = vrot.slane %v2977_v32, 2  ;;  %v389_v31 = vmul.f32 0.0625, %v180_v13  ;;  %v2667_v27 = vrot.slane %v2666_v4, 1  ;;  %v184_v7 = vrot.slane %v183_v18, 4 }
  0xbb   :  { %v6443_v30 = vmul.f32 %v5485_v25, %v6324_v33  ;;  %v836_v20 = vmul.f32 0.0625, %v620_v54  ;;  %v2972_v50 = vadd.f32 %v2971_v36, %v2970_v3 }
  0xbc   :  { %v5487_v23 = vpop.eup %5486  ;;  %v2979_v59 = vadd.f32 %v2978_v19, %v2977_v32  ;;  %v6446_v6 = vsub.f32 %v6351_v57, %v389_v31  ;;  %v6449_v0 = vsub.f32 %v6363_v8, %v389_v31  ;;  %v2668_v38 = vadd.f32 %v2667_v27, %v2666_v4 }
  0xbd   :  { %9094 = vst [vmem:[#allocation9_spill] sm:$0xff] %v6443_v30  ;;  %v938_v2 = vmul.f32 %v5487_v23, %v6316_v55  ;;  %v939_v22 = vmul.f32 %v5487_v23, %v6321_v45  ;;  %5260 = vmatprep.mubr.msk.f32.mxu1 %vm1834_vm0, %v6443_v30  ;;  %v868_v33 = vadd.f32 1e-05, %v836_v20  ;;  %v2973_v52 = vrot.slane %v2972_v50, 1  ;;  %v6464_v20 = vld [vmem:[%s9033_s0 + $0x198] sm:$0xff] }
  0xbe   :  { %v2980_v62 = vrot.slane %v2979_v59, 1  ;;  %v494_v44 = vmul.f32 %v6446_v6, %v6446_v6  ;;  %v495_v57 = vmul.f32 %v6449_v0, %v6449_v0  ;;  %v2754_v21 = vmul.f32 0.125, %v2668_v38 }
  0xbf   :  { %v5489_v8 = vpop.eup %5488  ;;  %1088 = vrot.lane.b32.xlu0 %v938_v2, %s5731_s3  ;;  %1090 = vrot.lane.b32.xlu1 %v939_v22, %s5731_s3  ;;  %5490 = vrsqrt.f32 %v868_v33  ;;  %v2974_v55 = vadd.f32 %v2973_v52, %v2972_v50  ;;  %v2674_v45 = vrot.slane %v2673_v58, 1  ;;  %v185_v23 = vadd.f32 %v184_v7, %v183_v18 }
  0xc0   :  { %v6467_v3 = vmul.f32 %v5489_v8, %v6346_v35  ;;  %v2981_v42 = vadd.f32 %v2980_v62, %v2979_v59  ;;  %v621_v32 = vsel %vm90_vm1, %v494_v44, 0.0  ;;  %v622_v13 = vsel %vm90_vm1, %v495_v57, 0.0 }
  0xc1   :  { %v3072_v4 = vmul.f32 0.125, %v2974_v55  ;;  %v623_v15 = vadd.f32 %v622_v13, %v621_v32  ;;  %v6472_v54 = vsub.f32 %v6390_v49, %v2754_v21  ;;  %v2675_v50 = vadd.f32 %v2674_v45, %v2673_v58  ;;  %v6483_v58 = vld [vmem:[%s9033_s0 + $0xb0] sm:$0xff] }
  0xc2   :  { %9095 = vst [vmem:[#allocation10_spill] sm:$0xff] %v6467_v3  ;;  %5261 = vmatmul.mubr.msk.f32.gmra.mrb[18].mxu1 %vm1834_vm0, %v6467_v3  ;;  %v3073_v7 = vmul.f32 0.125, %v2981_v42  ;;  %v186_v36 = vrot.slane %v185_v23, 2  ;;  %v2678_v18 = vadd.f32 %v2677_v5, %v2676_v26  ;;  %v2683_v35 = vsel %vm1834_vm0, %v6464_v20, 0.0 }
  0xc3   :  { %v3104_v25 = vadd.f32 1e-05, %v3072_v4  ;;  %v624_v19 = vrot.slane %v623_v15, 4  ;;  %v2818_v31 = vmul.f32 %v6472_v54, %v6472_v54  ;;  %v2755_v27 = vmul.f32 0.125, %v2675_v50 }
  0xc4   :  { %v3105_v59 = vadd.f32 1e-05, %v3073_v7  ;;  %v187_v38 = vadd.f32 %v186_v36, %v185_v23  ;;  %v2679_v49 = vrot.slane %v2678_v18, 2  ;;  %v2684_v2 = vrot.slane %v2683_v35, 4  ;;  %v6504_v7 = vld [vmem:[%s9033_s0 + $0x1a8] sm:$0xff] }
  0xc5   :  { %5492 = vrsqrt.f32 %v3104_v25  ;;  %v625_v26 = vadd.f32 %v624_v19, %v623_v15  ;;  %v2982_v5 = vsel %vm1834_vm0, %v2818_v31, 0.0  ;;  %v6487_v22 = vsub.f32 %v6400_v41, %v2755_v27  ;;  %v6496_v41 = vld [vmem:[%s9033_s0 + $0xb8] sm:$0xff] }
  0xc6   :  { %5494 = vrsqrt.f32 %v3105_v59  ;;  %v2983_v33 = vrot.slane %v2982_v5, 4  ;;  %v188_v52 = vrot.slane %v187_v38, 1  ;;  %v2680_v62 = vadd.f32 %v2679_v49, %v2678_v18 }
  0xc7   :  { %v626_v44 = vrot.slane %v625_v26, 2  ;;  %v2819_v57 = vmul.f32 %v6487_v22, %v6487_v22  ;;  %v2685_v21 = vadd.f32 %v2684_v2, %v2683_v35  ;;  %v190_v8 = vsel %vm90_vm1, %v6483_v58, 0.0 }
  0xc8   :  { %v2984_v55 = vadd.f32 %v2983_v33, %v2982_v5  ;;  %v189_v45 = vadd.f32 %v188_v52, %v187_v38  ;;  %v2681_v23 = vrot.slane %v2680_v62, 1  ;;  %v191_v42 = vsel %vm90_vm1, %v6496_v41, 0.0 }
  0xc9   :  { %v5491_v32 = vpop.eup %5490  ;;  %v627_v13 = vadd.f32 %v626_v44, %v625_v26  ;;  %v2989_v4 = vsel %vm1834_vm0, %v2819_v57, 0.0  ;;  %v2686_v15 = vrot.slane %v2685_v21, 2  ;;  %v192_v50 = vadd.f32 %v191_v42, %v190_v8 }
  0xca   :  { %v940_v36 = vmul.f32 %v5491_v32, %v6368_v24  ;;  %v941_v18 = vmul.f32 %v5491_v32, %v6373_v29  ;;  %v2985_v35 = vrot.slane %v2984_v55, 2  ;;  %v2990_v25 = vrot.slane %v2989_v4, 4 }
  0xcb   :  { %v628_v19 = vrot.slane %v627_v13, 1  ;;  %v390_v31 = vmul.f32 0.0625, %v189_v45  ;;  %v2682_v27 = vadd.f32 %v2681_v23, %v2680_v62  ;;  %v2687_v59 = vadd.f32 %v2686_v15, %v2685_v21 }
  0xcc   :  { %1092 = vrot.lane.b32.xlu0 %v940_v36, %s5731_s3  ;;  %1094 = vrot.lane.b32.xlu1 %v941_v18, %s5731_s3  ;;  %v2986_v38 = vadd.f32 %v2985_v35, %v2984_v55  ;;  %v2991_v49 = vadd.f32 %v2990_v25, %v2989_v4  ;;  %v193_v2 = vrot.slane %v192_v50, 4  ;;  %v2690_v26 = vsel %vm1834_vm0, %v6504_v7, 0.0 }
  0xcd   :  { %v629_v5 = vadd.f32 %v628_v19, %v627_v13  ;;  %v6513_v24 = vsub.f32 %v6414_v39, %v390_v31  ;;  %v6516_v29 = vsub.f32 %v6436_v40, %v390_v31  ;;  %v2756_v33 = vmul.f32 0.125, %v2682_v27  ;;  %v6542_v31 = vld [vmem:[%s9033_s0 + $0x1b8] sm:$0xff] }
  0xce   :  { %v2987_v52 = vrot.slane %v2986_v38, 1  ;;  %v2992_v62 = vrot.slane %v2991_v49, 2  ;;  %v2688_v44 = vrot.slane %v2687_v59, 1  ;;  %v194_v57 = vadd.f32 %v193_v2, %v192_v50 }
  0xcf   :  { %v5493_v21 = vpop.eup %5492  ;;  %v837_v8 = vmul.f32 0.0625, %v629_v5  ;;  %v496_v55 = vmul.f32 %v6513_v24, %v6513_v24  ;;  %v497_v45 = vmul.f32 %v6516_v29, %v6516_v29  ;;  %v6523_v23 = vsub.f32 %v6430_v14, %v2756_v33 }
  0xd0   :  { %v5495_v39 = vpop.eup %5494  ;;  %v6526_v40 = vmul.f32 %v5493_v21, %v6406_v56  ;;  %v2988_v42 = vadd.f32 %v2987_v52, %v2986_v38  ;;  %v2993_v32 = vadd.f32 %v2992_v62, %v2991_v49  ;;  %v2689_v13 = vadd.f32 %v2688_v44, %v2687_v59  ;;  %v6551_v62 = vld [vmem:[%s9033_s0 + $0xc0] sm:$0xff] }
  0xd1   :  { %v6529_v4 = vmul.f32 %v5495_v39, %v6409_v61  ;;  %v869_v15 = vadd.f32 1e-05, %v837_v8  ;;  %v630_v50 = vsel %vm90_vm1, %v496_v55, 0.0  ;;  %v631_v36 = vsel %vm90_vm1, %v497_v45, 0.0 }
  0xd2   :  { %9096 = vst [vmem:[#allocation11_spill] sm:$0xff] %v6526_v40  ;;  %5263 = vmatprep.mubr.msk.f32.mxu1 %vm1834_vm0, %v6526_v40  ;;  %v3074_v14 = vmul.f32 0.125, %v2988_v42  ;;  %v2994_v18 = vrot.slane %v2993_v32, 1  ;;  %v632_v35 = vadd.f32 %v631_v36, %v630_v50  ;;  %v2820_v56 = vmul.f32 %v6523_v23, %v6523_v23 }
  0xd3   :  { %9097 = vst [vmem:[#allocation12_spill] sm:$0xff] %v6529_v4  ;;  %5264 = vmatmul.mubr.msk.f32.gmra.mrb[20].mxu1 %vm1834_vm0, %v6529_v4  ;;  %5496 = vrsqrt.f32 %v869_v15  ;;  %v2757_v61 = vmul.f32 0.125, %v2689_v13  ;;  %v195_v25 = vrot.slane %v194_v57, 2  ;;  %v2691_v19 = vrot.slane %v2690_v26, 4 }
  0xd4   :  { %v3106_v27 = vadd.f32 1e-05, %v3074_v14  ;;  %v2995_v59 = vadd.f32 %v2994_v18, %v2993_v32  ;;  %v633_v38 = vrot.slane %v632_v35, 4  ;;  %v2996_v49 = vsel %vm1834_vm0, %v2820_v56, 0.0 }
  0xd5   :  { %v2997_v2 = vrot.slane %v2996_v49, 4  ;;  %v6546_v5 = vsub.f32 %v6464_v20, %v2757_v61  ;;  %v196_v33 = vadd.f32 %v195_v25, %v194_v57  ;;  %v2692_v52 = vadd.f32 %v2691_v19, %v2690_v26  ;;  %v6563_v19 = vld [vmem:[%s9033_s0 + $0xc8] sm:$0xff] }
  0xd6   :  { %5498 = vrsqrt.f32 %v3106_v27  ;;  %v3075_v44 = vmul.f32 0.125, %v2995_v59  ;;  %v634_v21 = vadd.f32 %v633_v38, %v632_v35  ;;  %v2697_v8 = vsel %vm1834_vm0, %v6542_v31, 0.0 }
  0xd7   :  { %v2998_v55 = vadd.f32 %v2997_v2, %v2996_v49  ;;  %v2821_v45 = vmul.f32 %v6546_v5, %v6546_v5  ;;  %v197_v39 = vrot.slane %v196_v33, 1  ;;  %v2693_v20 = vrot.slane %v2692_v52, 2 }
  0xd8   :  { %v3107_v42 = vadd.f32 1e-05, %v3075_v44  ;;  %v635_v57 = vrot.slane %v634_v21, 2  ;;  %v2698_v26 = vrot.slane %v2697_v8, 4  ;;  %v199_v32 = vsel %vm90_vm1, %v6551_v62, 0.0 }
  0xd9   :  { %v2999_v13 = vrot.slane %v2998_v55, 2  ;;  %v3003_v15 = vsel %vm1834_vm0, %v2821_v45, 0.0  ;;  %v198_v50 = vadd.f32 %v197_v39, %v196_v33  ;;  %v2694_v36 = vadd.f32 %v2693_v20, %v2692_v52 }
  0xda   :  { %5500 = vrsqrt.f32 %v3107_v42  ;;  %v636_v14 = vadd.f32 %v635_v57, %v634_v21  ;;  %v3004_v18 = vrot.slane %v3003_v15, 4  ;;  %v2699_v35 = vadd.f32 %v2698_v26, %v2697_v8 }
  0xdb   :  { %v3000_v56 = vadd.f32 %v2999_v13, %v2998_v55  ;;  %v391_v61 = vmul.f32 0.0625, %v198_v50  ;;  %v2695_v25 = vrot.slane %v2694_v36, 1  ;;  %v200_v27 = vsel %vm90_vm1, %v6563_v19, 0.0 }
  0xdc   :  { %v637_v59 = vrot.slane %v636_v14, 1  ;;  %v3005_v38 = vadd.f32 %v3004_v18, %v3003_v15  ;;  %v2700_v49 = vrot.slane %v2699_v35, 2  ;;  %v201_v2 = vadd.f32 %v200_v27, %v199_v32 }
  0xdd   :  { %v5497_v33 = vpop.eup %5496  ;;  %v3001_v52 = vrot.slane %v3000_v56, 1  ;;  %v6568_v44 = vsub.f32 %v6483_v58, %v391_v61  ;;  %v6571_v21 = vsub.f32 %v6496_v41, %v391_v61  ;;  %v2696_v8 = vadd.f32 %v2695_v25, %v2694_v36 }
  0xde   :  { %v942_v55 = vmul.f32 %v5497_v33, %v6446_v6  ;;  %v943_v45 = vmul.f32 %v5497_v33, %v6449_v0  ;;  %v638_v39 = vadd.f32 %v637_v59, %v636_v14  ;;  %v3006_v20 = vrot.slane %v3005_v38, 2  ;;  %v6584_v0 = vld [vmem:[%s9033_s0 + $0x1c8] sm:$0xff] }
  0xdf   :  { %v3002_v42 = vadd.f32 %v3001_v52, %v3000_v56  ;;  %v498_v57 = vmul.f32 %v6568_v44, %v6568_v44  ;;  %v499_v26 = vmul.f32 %v6571_v21, %v6571_v21  ;;  %v2758_v32 = vmul.f32 0.125, %v2696_v8 }
  0xe0   :  { %v5499_v58 = vpop.eup %5498  ;;  %1096 = vrot.lane.b32.xlu0 %v942_v55, %s5731_s3  ;;  %1098 = vrot.lane.b32.xlu1 %v943_v45, %s5731_s3  ;;  %v838_v41 = vmul.f32 0.0625, %v638_v39  ;;  %v3007_v13 = vadd.f32 %v3006_v20, %v3005_v38  ;;  %v2701_v6 = vadd.f32 %v2700_v49, %v2699_v35  ;;  %v202_v15 = vrot.slane %v201_v2, 4 }
  0xe1   :  { %v6587_v50 = vmul.f32 %v5499_v58, %v6472_v54  ;;  %v3076_v36 = vmul.f32 0.125, %v3002_v42  ;;  %v639_v14 = vsel %vm90_vm1, %v498_v57, 0.0  ;;  %v640_v18 = vsel %vm90_vm1, %v499_v26, 0.0  ;;  %v6612_v26 = vld [vmem:[%s9033_s0 + $0xd0] sm:$0xff] }
  0xe2   :  { %v870_v56 = vadd.f32 1e-05, %v838_v41  ;;  %v3008_v61 = vrot.slane %v3007_v13, 1  ;;  %v641_v25 = vadd.f32 %v640_v18, %v639_v14  ;;  %v6592_v27 = vsub.f32 %v6504_v7, %v2758_v32  ;;  %v6603_v7 = vld [vmem:[%s9033_s0 + $0x1d8] sm:$0xff] }
  0xe3   :  { %9098 = vst [vmem:[#allocation13_spill] sm:$0xff] %v6587_v50  ;;  %5266 = vmatprep.mubr.msk.f32.mxu1 %vm1834_vm0, %v6587_v50  ;;  %v3108_v35 = vadd.f32 1e-05, %v3076_v36  ;;  %v2702_v59 = vrot.slane %v2701_v6, 1  ;;  %v203_v38 = vadd.f32 %v202_v15, %v201_v2  ;;  %v2704_v54 = vsel %vm1834_vm0, %v6584_v0, 0.0 }
  0xe4   :  { %v5501_v49 = vpop.eup %5500  ;;  %5502 = vrsqrt.f32 %v870_v56  ;;  %v3009_v33 = vadd.f32 %v3008_v61, %v3007_v13  ;;  %v642_v52 = vrot.slane %v641_v25, 4  ;;  %v2822_v8 = vmul.f32 %v6592_v27, %v6592_v27 }
  0xe5   :  { %v6606_v55 = vmul.f32 %v5501_v49, %v6487_v22  ;;  %5504 = vrsqrt.f32 %v3108_v35  ;;  %v2703_v2 = vadd.f32 %v2702_v59, %v2701_v6  ;;  %v204_v45 = vrot.slane %v203_v38, 2 }
  0xe6   :  { %v3077_v39 = vmul.f32 0.125, %v3009_v33  ;;  %v643_v20 = vadd.f32 %v642_v52, %v641_v25  ;;  %v3010_v42 = vsel %vm1834_vm0, %v2822_v8, 0.0  ;;  %v2705_v57 = vrot.slane %v2704_v54, 4 }
  0xe7   :  { %9099 = vst [vmem:[#allocation14_spill] sm:$0xff] %v6606_v55  ;;  %5267 = vmatmul.mubr.msk.f32.gmra.mrb[22].mxu1 %vm1834_vm0, %v6606_v55  ;;  %v3011_v32 = vrot.slane %v3010_v42, 4  ;;  %v2759_v58 = vmul.f32 0.125, %v2703_v2  ;;  %v205_v22 = vadd.f32 %v204_v45, %v203_v38  ;;  %v2711_v41 = vsel %vm1834_vm0, %v6603_v7, 0.0  ;;  %v6626_v38 = vld [vmem:[%s9033_s0 + $0x1e8] sm:$0xff] }
  0xe8   :  { %v3109_v13 = vadd.f32 1e-05, %v3077_v39  ;;  %v644_v6 = vrot.slane %v643_v20, 2  ;;  %v2706_v15 = vadd.f32 %v2705_v57, %v2704_v54  ;;  %v2712_v36 = vrot.slane %v2711_v41, 4 }
  0xe9   :  { %v3012_v14 = vadd.f32 %v3011_v32, %v3010_v42  ;;  %v6619_v18 = vsub.f32 %v6542_v31, %v2759_v58  ;;  %v206_v56 = vrot.slane %v205_v22, 1  ;;  %v208_v61 = vsel %vm90_vm1, %v6612_v26, 0.0  ;;  %v6633_v31 = vld [vmem:[%s9033_s0 + $0xd8] sm:$0xff] }
  0xea   :  { %5506 = vrsqrt.f32 %v3109_v13  ;;  %v645_v25 = vadd.f32 %v644_v6, %v643_v20  ;;  %v2707_v35 = vrot.slane %v2706_v15, 2  ;;  %v2713_v59 = vadd.f32 %v2712_v36, %v2711_v41 }
  0xeb   :  { %v3013_v49 = vrot.slane %v3012_v14, 2  ;;  %v2823_v54 = vmul.f32 %v6619_v18, %v6619_v18  ;;  %v207_v33 = vadd.f32 %v206_v56, %v205_v22  ;;  %v209_v52 = vsel %vm90_vm1, %v6633_v31, 0.0 }
  0xec   :  { %v646_v8 = vrot.slane %v645_v25, 1  ;;  %v2708_v2 = vadd.f32 %v2707_v35, %v2706_v15  ;;  %v2714_v45 = vrot.slane %v2713_v59, 2  ;;  %v210_v39 = vadd.f32 %v209_v52, %v208_v61 }
  0xed   :  { %v3014_v20 = vadd.f32 %v3013_v49, %v3012_v14  ;;  %v3017_v42 = vsel %vm1834_vm0, %v2823_v54, 0.0  ;;  %v392_v57 = vmul.f32 0.0625, %v207_v33  ;;  %v2718_v32 = vsel %vm1834_vm0, %v6626_v38, 0.0 }
  0xee   :  { %v5503_v58 = vpop.eup %5502  ;;  %v647_v22 = vadd.f32 %v646_v8, %v645_v25  ;;  %v3018_v41 = vrot.slane %v3017_v42, 4  ;;  %v2709_v13 = vrot.slane %v2708_v2, 1  ;;  %v2715_v6 = vadd.f32 %v2714_v45, %v2713_v59 }
  0xef   :  { %v5505_v36 = vpop.eup %5504  ;;  %v944_v56 = vmul.f32 %v5503_v58, %v6513_v24  ;;  %v945_v55 = vmul.f32 %v5503_v58, %v6516_v29  ;;  %v3015_v15 = vrot.slane %v3014_v20, 1  ;;  %v6643_v61 = vsub.f32 %v6551_v62, %v392_v57  ;;  %v6664_v58 = vld [vmem:[%s9033_s0 + $0x1f8] sm:$0xff] }
  0xf0   :  { %v6646_v14 = vmul.f32 %v5505_v36, %v6523_v23  ;;  %v839_v35 = vmul.f32 0.0625, %v647_v22  ;;  %v3019_v49 = vadd.f32 %v3018_v41, %v3017_v42  ;;  %v6649_v54 = vsub.f32 %v6563_v19, %v392_v57 }
  0xf1   :  { %1100 = vrot.lane.b32.xlu0 %v944_v56, %s5731_s3  ;;  %1102 = vrot.lane.b32.xlu1 %v945_v55, %s5731_s3  ;;  %v3016_v25 = vadd.f32 %v3015_v15, %v3014_v20  ;;  %v500_v24 = vmul.f32 %v6643_v61, %v6643_v61  ;;  %v2710_v29 = vadd.f32 %v2709_v13, %v2708_v2  ;;  %v2716_v59 = vrot.slane %v2715_v6, 1 }
  0xf2   :  { %9100 = vst [vmem:[#allocation15_spill] sm:$0xff] %v6646_v14  ;;  %5269 = vmatprep.mubr.msk.f32.mxu1 %vm1834_vm0, %v6646_v14  ;;  %v871_v23 = vadd.f32 1e-05, %v839_v35  ;;  %v3020_v62 = vrot.slane %v3019_v49, 2  ;;  %v501_v33 = vmul.f32 %v6649_v54, %v6649_v54  ;;  %v211_v19 = vrot.slane %v210_v39, 4 }
  0xf3   :  { %v3078_v52 = vmul.f32 0.125, %v3016_v25  ;;  %v648_v8 = vsel %vm90_vm1, %v500_v24, 0.0  ;;  %v2760_v45 = vmul.f32 0.125, %v2710_v29  ;;  %v2717_v55 = vadd.f32 %v2716_v59, %v2715_v6 }
  0xf4   :  { %v5507_v20 = vpop.eup %5506  ;;  %5508 = vrsqrt.f32 %v871_v23  ;;  %v3021_v42 = vadd.f32 %v3020_v62, %v3019_v49  ;;  %v649_v2 = vsel %vm90_vm1, %v501_v33, 0.0  ;;  %v212_v57 = vadd.f32 %v211_v19, %v210_v39  ;;  %v6675_v39 = vld [vmem:[%s9033_s0 + $0xe0] sm:$0xff] }
  0xf5   :  { %v6667_v22 = vmul.f32 %v5507_v20, %v6546_v5  ;;  %v3110_v41 = vadd.f32 1e-05, %v3078_v52  ;;  %v650_v13 = vadd.f32 %v649_v2, %v648_v8  ;;  %v6670_v36 = vsub.f32 %v6584_v0, %v2760_v45 }
  0xf6   :  { %v3022_v6 = vrot.slane %v3021_v42, 1  ;;  %v2761_v56 = vmul.f32 0.125, %v2717_v55  ;;  %v213_v15 = vrot.slane %v212_v57, 2  ;;  %v2719_v35 = vrot.slane %v2718_v32, 4 }
  0xf7   :  { %9101 = vst [vmem:[#allocation16_spill] sm:$0xff] %v6667_v22  ;;  %5270 = vmatmul.mubr.msk.f32.gmra.mrb[24].mxu1 %vm1834_vm0, %v6667_v22  ;;  %5510 = vrsqrt.f32 %v3110_v41  ;;  %v651_v5 = vrot.slane %v650_v13, 4  ;;  %v2824_v49 = vmul.f32 %v6670_v36, %v6670_v36  ;;  %v2725_v0 = vsel %vm1834_vm0, %v6664_v58, 0.0 }
  0xf8   :  { %v3023_v25 = vadd.f32 %v3022_v6, %v3021_v42  ;;  %v6684_v24 = vsub.f32 %v6603_v7, %v2761_v56  ;;  %v214_v29 = vadd.f32 %v213_v15, %v212_v57  ;;  %v2720_v59 = vadd.f32 %v2719_v35, %v2718_v32  ;;  %v6694_v7 = vld [vmem:[%s9033_s0 + $0xe8] sm:$0xff] }
  0xf9   :  { %v652_v23 = vadd.f32 %v651_v5, %v650_v13  ;;  %v3024_v62 = vsel %vm1834_vm0, %v2824_v49, 0.0  ;;  %v2726_v33 = vrot.slane %v2725_v0, 4  ;;  %v217_v19 = vsel %vm90_vm1, %v6675_v39, 0.0 }
  0xfa   :  { %v3079_v52 = vmul.f32 0.125, %v3023_v25  ;;  %v3025_v8 = vrot.slane %v3024_v62, 4  ;;  %v2825_v45 = vmul.f32 %v6684_v24, %v6684_v24  ;;  %v215_v55 = vrot.slane %v214_v29, 1 }
  0xfb   :  { %v653_v20 = vrot.slane %v652_v23, 2  ;;  %v2721_v42 = vrot.slane %v2720_v59, 2  ;;  %v2727_v2 = vadd.f32 %v2726_v33, %v2725_v0  ;;  %v218_v32 = vsel %vm90_vm1, %v6694_v7, 0.0 }
  0xfc   :  { %v3111_v57 = vadd.f32 1e-05, %v3079_v52  ;;  %v3026_v41 = vadd.f32 %v3025_v8, %v3024_v62  ;;  %v3031_v13 = vsel %vm1834_vm0, %v2825_v45, 0.0  ;;  %v216_v6 = vadd.f32 %v215_v55, %v214_v29 }
  0xfd   :  { %v654_v56 = vadd.f32 %v653_v20, %v652_v23  ;;  %v3032_v15 = vrot.slane %v3031_v13, 4  ;;  %v2722_v35 = vadd.f32 %v2721_v42, %v2720_v59  ;;  %v2728_v5 = vrot.slane %v2727_v2, 2 }
  0xfe   :  { %v5509_v49 = vpop.eup %5508  ;;  %5512 = vrsqrt.f32 %v3111_v57  ;;  %v3027_v0 = vrot.slane %v3026_v41, 2  ;;  %v393_v25 = vmul.f32 0.0625, %v216_v6  ;;  %v219_v33 = vadd.f32 %v218_v32, %v217_v19 }
  0xff   :  { %v946_v22 = vmul.f32 %v5509_v49, %v6568_v44  ;;  %v947_v14 = vmul.f32 %v5509_v49, %v6571_v21  ;;  %v655_v50 = vrot.slane %v654_v56, 1  ;;  %v3033_v4 = vadd.f32 %v3032_v15, %v3031_v13 }
 0x100   :  { %v3028_v52 = vadd.f32 %v3027_v0, %v3026_v41  ;;  %v6702_v62 = vsub.f32 %v6612_v26, %v393_v25  ;;  %v6705_v29 = vsub.f32 %v6633_v31, %v393_v25  ;;  %v2723_v59 = vrot.slane %v2722_v35, 1 }
 0x101   :  { %v5511_v23 = vpop.eup %5510  ;;  %1104 = vrot.lane.b32.xlu0 %v946_v22, %s5731_s3  ;;  %1106 = vrot.lane.b32.xlu1 %v947_v14, %s5731_s3  ;;  %v656_v19 = vadd.f32 %v655_v50, %v654_v56  ;;  %v3034_v8 = vrot.slane %v3033_v4, 2  ;;  %v2729_v44 = vadd.f32 %v2728_v5, %v2727_v2  ;;  %v220_v45 = vrot.slane %v219_v33, 4 }
 0x102   :  { %v6710_v21 = vmul.f32 %v5511_v23, %v6592_v27  ;;  %v3029_v55 = vrot.slane %v3028_v52, 1  ;;  %v502_v26 = vmul.f32 %v6702_v62, %v6702_v62  ;;  %v503_v31 = vmul.f32 %v6705_v29, %v6705_v29 }
 0x103   :  { %v840_v20 = vmul.f32 0.0625, %v656_v19  ;;  %v3035_v42 = vadd.f32 %v3034_v8, %v3033_v4  ;;  %v2724_v32 = vadd.f32 %v2723_v59, %v2722_v35  ;;  %v2730_v22 = vrot.slane %v2729_v44, 1 }
 0x104   :  { %9102 = vst [vmem:[#allocation17_spill] sm:$0xff] %v6710_v21  ;;  %5272 = vmatprep.mubr.msk.f32.mxu1 %vm1834_vm0, %v6710_v21  ;;  %v3030_v50 = vadd.f32 %v3029_v55, %v3028_v52  ;;  %v657_v14 = vsel %vm90_vm1, %v502_v26, 0.0  ;;  %v658_v27 = vsel %vm90_vm1, %v503_v31, 0.0  ;;  %v221_v2 = vadd.f32 %v220_v45, %v219_v33  ;;  %v6737_v31 = vld [vmem:[%s9033_s0 + $0xf0] sm:$0xff] }
 0x105   :  { %v872_v57 = vadd.f32 1e-05, %v840_v20  ;;  %v3036_v41 = vrot.slane %v3035_v42, 1  ;;  %v659_v13 = vadd.f32 %v658_v27, %v657_v14  ;;  %v2762_v6 = vmul.f32 0.125, %v2724_v32 }
 0x106   :  { %v3080_v56 = vmul.f32 0.125, %v3030_v50  ;;  %v2731_v15 = vadd.f32 %v2730_v22, %v2729_v44  ;;  %v222_v5 = vrot.slane %v221_v2, 2  ;;  %v9103_v4 = vrot.slane %v5822_v16, 4 }
 0x107   :  { %5514 = vrsqrt.f32 %v872_v57  ;;  %v3037_v49 = vadd.f32 %v3036_v41, %v3035_v42  ;;  %v660_v0 = vrot.slane %v659_v13, 4  ;;  %v6724_v25 = vsub.f32 %v6626_v38, %v2762_v6  ;;  %v6753_v57 = vld [vmem:[%s9033_s0 + $0xf8] sm:$0xff] }
 0x108   :  { %v1837_v35 = vadd.f32 %v9103_v4, %v5822_v16  ;;  %v5513_v52 = vpop.eup %5512  ;;  %v3112_v59 = vadd.f32 1e-05, %v3080_v56  ;;  %v2763_v33 = vmul.f32 0.125, %v2731_v15  ;;  %v223_v23 = vadd.f32 %v222_v5, %v221_v2  ;;  %v6761_v4 = vld [vmem:[%s9033_s0 + $0x20] sm:$0xff] }
 0x109   :  { %v6727_v8 = vmul.f32 %v5513_v52, %v6619_v18  ;;  %v3081_v44 = vmul.f32 0.125, %v3037_v49  ;;  %v661_v45 = vadd.f32 %v660_v0, %v659_v13  ;;  %v2826_v55 = vmul.f32 %v6724_v25, %v6724_v25 }
 0x10a   :  { %v1838_v19 = vrot.slane %v1837_v35, 2  ;;  %5516 = vrsqrt.f32 %v3112_v59  ;;  %v6732_v16 = vsub.f32 %v6664_v58, %v2763_v33  ;;  %v224_v26 = vrot.slane %v223_v23, 1 }
 0x10b   :  { %9104 = vst [vmem:[#allocation18_spill] sm:$0xff] %v6727_v8  ;;  %5273 = vmatmul.mubr.msk.f32.gmra.mrb[26].mxu1 %vm1834_vm0, %v6727_v8  ;;  %v3113_v18 = vadd.f32 1e-05, %v3081_v44  ;;  %v662_v20 = vrot.slane %v661_v45, 2  ;;  %v3038_v42 = vsel %vm1834_vm0, %v2826_v55, 0.0  ;;  %v6744_v32 = vmul.f32 %v5999_v47, %v5889_v60 }
 0x10c   :  { %v1839_v38 = vadd.f32 %v1838_v19, %v1837_v35  ;;  %v3039_v58 = vrot.slane %v3038_v42, 4  ;;  %v2827_v22 = vmul.f32 %v6732_v16, %v6732_v16  ;;  %v225_v50 = vadd.f32 %v224_v26, %v223_v23 }
 0x10d   :  { %9105 = vst [vmem:[#allocation19_spill] sm:$0xff] %v6744_v32  ;;  %5518 = vrsqrt.f32 %v3113_v18  ;;  %v663_v27 = vadd.f32 %v662_v20, %v661_v45  ;;  %v226_v2 = vsel %vm90_vm1, %v6737_v31, 0.0  ;;  %v227_v60 = vsel %vm90_vm1, %v6753_v57, 0.0 }
 0x10e   :  { %v1840_v14 = vrot.slane %v1839_v38, 1  ;;  %v3040_v47 = vadd.f32 %v3039_v58, %v3038_v42  ;;  %v3045_v41 = vsel %vm1834_vm0, %v2827_v22, 0.0  ;;  %v394_v13 = vmul.f32 0.0625, %v225_v50  ;;  %v5634_v42 = vld [vmem:[%s9033_s0] sm:$0xff] }
 0x10f   :  { %v664_v56 = vrot.slane %v663_v27, 1  ;;  %v3046_v15 = vrot.slane %v3045_v41, 4  ;;  %v228_v5 = vadd.f32 %v227_v60, %v226_v2  ;;  %v1849_v35 = vsel %vm1834_vm0, %v6761_v4, 0.0 }
 0x110   :  { %v1841_v6 = vadd.f32 %v1840_v14, %v1839_v38  ;;  %v3041_v49 = vrot.slane %v3040_v47, 2  ;;  %v6766_v0 = vsub.f32 %v6675_v39, %v394_v13  ;;  %v6769_v52 = vsub.f32 %v6694_v7, %v394_v13 }
 0x111   :  { %v5515_v33 = vpop.eup %5514  ;;  %v665_v23 = vadd.f32 %v664_v56, %v663_v27  ;;  %v3047_v19 = vadd.f32 %v3046_v15, %v3045_v41  ;;  %v229_v44 = vrot.slane %v228_v5, 4  ;;  %v1850_v45 = vrot.slane %v1849_v35, 4 }
 0x112   :  { %v2060_v59 = vmul.f32 0.125, %v1841_v6  ;;  %v948_v55 = vmul.f32 %v5515_v33, %v6643_v61  ;;  %v949_v26 = vmul.f32 %v5515_v33, %v6649_v54  ;;  %v3042_v38 = vadd.f32 %v3041_v49, %v3040_v47 }
 0x113   :  { %v504_v18 = vmul.f32 %v6766_v0, %v6766_v0  ;;  %v841_v20 = vmul.f32 0.0625, %v665_v23  ;;  %v3048_v39 = vrot.slane %v3047_v19, 2  ;;  %v505_v7 = vmul.f32 %v6769_v52, %v6769_v52 }
 0x114   :  { %v6780_v58 = vsub.f32 %v5634_v42, %v2060_v59  ;;  %v5517_v22 = vpop.eup %5516  ;;  %1108 = vrot.lane.b32.xlu0 %v948_v55, %s5731_s3  ;;  %1110 = vrot.lane.b32.xlu1 %v949_v26, %s5731_s3  ;;  %v3043_v61 = vrot.slane %v3042_v38, 1  ;;  %v230_v50 = vadd.f32 %v229_v44, %v228_v5  ;;  %v1851_v14 = vadd.f32 %v1850_v45, %v1849_v35  ;;  %v6803_v59 = vld [vmem:[%s9033_s0 + $0x100] sm:$0xff] }
 0x115   :  { %v666_v54 = vsel %vm90_vm1, %v504_v18, 0.0  ;;  %v6786_v27 = vmul.f32 %v5517_v22, %v6670_v36  ;;  %v873_v2 = vadd.f32 1e-05, %v841_v20  ;;  %v3049_v60 = vadd.f32 %v3048_v39, %v3047_v19  ;;  %v6796_v36 = vld [vmem:[%s9033_s0 + $0x30] sm:$0xff] }
 0x116   :  { %v667_v47 = vsel %vm90_vm1, %v505_v7, 0.0  ;;  %v3044_v41 = vadd.f32 %v3043_v61, %v3042_v38  ;;  %v2124_v6 = vmul.f32 %v6780_v58, %v6780_v58  ;;  %v231_v56 = vrot.slane %v230_v50, 2 }
 0x117   :  { %9106 = vst [vmem:[#allocation20_spill] sm:$0xff] %v6786_v27  ;;  %v668_v13 = vadd.f32 %v667_v47, %v666_v54  ;;  %v5519_v15 = vpop.eup %5518  ;;  %5275 = vmatprep.mubr.msk.f32.mxu1 %vm1834_vm0, %v6786_v27  ;;  %5520 = vrsqrt.f32 %v873_v2  ;;  %v3050_v5 = vrot.slane %v3049_v60, 1  ;;  %v1852_v35 = vrot.slane %v1851_v14, 2 }
 0x118   :  { %v1856_v49 = vsel %vm1834_vm0, %v6796_v36, 0.0  ;;  %v6806_v33 = vmul.f32 %v5519_v15, %v6684_v24  ;;  %v3082_v23 = vmul.f32 0.125, %v3044_v41  ;;  %v2156_v44 = vsel %vm1834_vm0, %v2124_v6, 0.0 }
 0x119   :  { %v669_v19 = vrot.slane %v668_v13, 4  ;;  %v3051_v45 = vadd.f32 %v3050_v5, %v3049_v60  ;;  %v2157_v55 = vrot.slane %v2156_v44, 4  ;;  %v232_v26 = vadd.f32 %v231_v56, %v230_v50  ;;  %v6816_v50 = vld [vmem:[%s9033_s0 + $0x108] sm:$0xff]  ;;  %v6823_v5 = vld [vmem:[%s9033_s0 + $0x40] sm:$0xff] }
 0x11a   :  { %9107 = vst [vmem:[#allocation21_spill] sm:$0xff] %v6806_v33  ;;  %v1853_v38 = vadd.f32 %v1852_v35, %v1851_v14  ;;  %5276 = vmatmul.mubr.msk.f32.gmra.mrb[28].mxu1 %vm1834_vm0, %v6806_v33  ;;  %v3114_v18 = vadd.f32 1e-05, %v3082_v23  ;;  %v1857_v39 = vrot.slane %v1856_v49, 4  ;;  %v235_v7 = vsel %vm90_vm1, %v6803_v59, 0.0 }
 0x11b   :  { %v670_v20 = vadd.f32 %v669_v19, %v668_v13  ;;  %v3083_v42 = vmul.f32 0.125, %v3051_v45  ;;  %v2158_v24 = vadd.f32 %v2157_v55, %v2156_v44  ;;  %v233_v22 = vrot.slane %v232_v26, 1 }
 0x11c   :  { %v1854_v61 = vrot.slane %v1853_v38, 1  ;;  %5522 = vrsqrt.f32 %v3114_v18  ;;  %v1858_v2 = vadd.f32 %v1857_v39, %v1856_v49  ;;  %v236_v14 = vsel %vm90_vm1, %v6816_v50, 0.0 }
 0x11d   :  { %v671_v54 = vrot.slane %v670_v20, 2  ;;  %v3115_v60 = vadd.f32 1e-05, %v3083_v42  ;;  %v2159_v47 = vrot.slane %v2158_v24, 2  ;;  %v234_v41 = vadd.f32 %v233_v22, %v232_v26 }
 0x11e   :  { %v1855_v13 = vadd.f32 %v1854_v61, %v1853_v38  ;;  %v1859_v56 = vrot.slane %v1858_v2, 2  ;;  %v237_v15 = vadd.f32 %v236_v14, %v235_v7  ;;  %v1863_v35 = vsel %vm1834_vm0, %v6823_v5, 0.0 }
 0x11f   :  { %v672_v6 = vadd.f32 %v671_v54, %v670_v20  ;;  %5524 = vrsqrt.f32 %v3115_v60  ;;  %v2160_v49 = vadd.f32 %v2159_v47, %v2158_v24  ;;  %v395_v23 = vmul.f32 0.0625, %v234_v41 }
 0x120   :  { %v2062_v19 = vmul.f32 0.125, %v1855_v13  ;;  %v1860_v45 = vadd.f32 %v1859_v56, %v1858_v2  ;;  %v238_v55 = vrot.slane %v237_v15, 4  ;;  %v1864_v26 = vrot.slane %v1863_v35, 4 }
 0x121   :  { %v673_v44 = vrot.slane %v672_v6, 1  ;;  %v5521_v38 = vpop.eup %5520  ;;  %v2161_v18 = vrot.slane %v2160_v49, 1  ;;  %v6828_v20 = vsub.f32 %v6737_v31, %v395_v23  ;;  %v6831_v39 = vsub.f32 %v6753_v57, %v395_v23 }
 0x122   :  { %v6834_v7 = vsub.f32 %v6761_v4, %v2062_v19  ;;  %v950_v42 = vmul.f32 %v5521_v38, %v6702_v62  ;;  %v951_v24 = vmul.f32 %v5521_v38, %v6705_v29  ;;  %v1861_v61 = vrot.slane %v1860_v45, 1 }
 0x123   :  { %v674_v22 = vadd.f32 %v673_v44, %v672_v6  ;;  %v2162_v54 = vadd.f32 %v2161_v18, %v2160_v49  ;;  %v506_v2 = vmul.f32 %v6828_v20, %v6828_v20  ;;  %v507_v31 = vmul.f32 %v6831_v39, %v6831_v39 }
 0x124   :  { %v2126_v57 = vmul.f32 %v6834_v7, %v6834_v7  ;;  %1112 = vrot.lane.b32.xlu0 %v950_v42, %s5731_s3  ;;  %1114 = vrot.lane.b32.xlu1 %v951_v24, %s5731_s3  ;;  %v1862_v62 = vadd.f32 %v1861_v61, %v1860_v45  ;;  %v239_v14 = vadd.f32 %v238_v55, %v237_v15 }
 0x125   :  { %v842_v4 = vmul.f32 0.0625, %v674_v22  ;;  %v1865_v29 = vadd.f32 %v1864_v26, %v1863_v35  ;;  %v2380_v60 = vmul.f32 0.125, %v2162_v54  ;;  %v675_v47 = vsel %vm90_vm1, %v506_v2, 0.0  ;;  %v6858_v26 = vld [vmem:[%s9033_s0 + $0x110] sm:$0xff] }
 0x126   :  { %v676_v41 = vsel %vm90_vm1, %v507_v31, 0.0  ;;  %v2170_v13 = vsel %vm1834_vm0, %v2126_v57, 0.0  ;;  %v5523_v6 = vpop.eup %5522  ;;  %v2063_v19 = vmul.f32 0.125, %v1862_v62  ;;  %v240_v18 = vrot.slane %v239_v14, 2  ;;  %v6865_v22 = vld [vmem:[%s9033_s0 + $0x50] sm:$0xff] }
 0x127   :  { %v874_v56 = vadd.f32 1e-05, %v842_v4  ;;  %v677_v49 = vadd.f32 %v676_v41, %v675_v47  ;;  %v2171_v23 = vrot.slane %v2170_v13, 4  ;;  %v6850_v44 = vmul.f32 %v5523_v6, %v6724_v25 }
 0x128   :  { %v2412_v38 = vadd.f32 1e-05, %v2380_v60  ;;  %v1866_v45 = vrot.slane %v1865_v29, 2  ;;  %v6853_v55 = vsub.f32 %v6796_v36, %v2063_v19  ;;  %v241_v25 = vadd.f32 %v240_v18, %v239_v14  ;;  %v6889_v18 = vld [vmem:[%s9033_s0 + $0x60] sm:$0xff] }
 0x129   :  { %9108 = vst [vmem:[#allocation22_spill] sm:$0xff] %v6850_v44  ;;  %5526 = vrsqrt.f32 %v874_v56  ;;  %v678_v15 = vrot.slane %v677_v49, 4  ;;  %v2172_v35 = vadd.f32 %v2171_v23, %v2170_v13  ;;  %v5525_v42 = vpop.eup %5524  ;;  %5278 = vmatprep.mubr.msk.f32.mxu1 %vm1834_vm0, %v6850_v44  ;;  %v1870_v36 = vsel %vm1834_vm0, %v6865_v22, 0.0 }
 0x12a   :  { %5528 = vrsqrt.f32 %v2412_v38  ;;  %v1867_v24 = vadd.f32 %v1866_v45, %v1865_v29  ;;  %v6870_v61 = vmul.f32 %v5525_v42, %v6732_v16  ;;  %v2127_v31 = vmul.f32 %v6853_v55, %v6853_v55  ;;  %v6882_v16 = vld [vmem:[%s9033_s0 + $0x118] sm:$0xff] }
 0x12b   :  { %v679_v54 = vadd.f32 %v678_v15, %v677_v49  ;;  %v2173_v2 = vrot.slane %v2172_v35, 2  ;;  %v242_v57 = vrot.slane %v241_v25, 1  ;;  %v1871_v62 = vrot.slane %v1870_v36, 4 }
 0x12c   :  { %9109 = vst [vmem:[#allocation23_spill] sm:$0xff] %v6870_v61  ;;  %v1868_v4 = vrot.slane %v1867_v24, 1  ;;  %v244_v14 = vsel %vm90_vm1, %v6858_v26, 0.0  ;;  %5279 = vmatmul.mubr.msk.f32.gmra.mrb[30].mxu1 %vm1834_vm0, %v6870_v61  ;;  %v2177_v47 = vsel %vm1834_vm0, %v2127_v31, 0.0  ;;  %v245_v41 = vsel %vm90_vm1, %v6882_v16, 0.0 }
 0x12d   :  { %v680_v29 = vrot.slane %v679_v54, 2  ;;  %v2174_v60 = vadd.f32 %v2173_v2, %v2172_v35  ;;  %v2178_v13 = vrot.slane %v2177_v47, 4  ;;  %v243_v6 = vadd.f32 %v242_v57, %v241_v25 }
 0x12e   :  { %v1869_v56 = vadd.f32 %v1868_v4, %v1867_v24  ;;  %v1872_v49 = vadd.f32 %v1871_v62, %v1870_v36  ;;  %v246_v38 = vadd.f32 %v245_v41, %v244_v14  ;;  %v1877_v45 = vsel %vm1834_vm0, %v6889_v18, 0.0 }
 0x12f   :  { %v681_v23 = vadd.f32 %v680_v29, %v679_v54  ;;  %v2175_v19 = vrot.slane %v2174_v60, 1  ;;  %v2179_v15 = vadd.f32 %v2178_v13, %v2177_v47  ;;  %v396_v35 = vmul.f32 0.0625, %v243_v6 }
 0x130   :  { %v2064_v42 = vmul.f32 0.125, %v1869_v56  ;;  %v1873_v2 = vrot.slane %v1872_v49, 2  ;;  %v247_v25 = vrot.slane %v246_v38, 4  ;;  %v1878_v24 = vrot.slane %v1877_v45, 4 }
 0x131   :  { %v682_v31 = vrot.slane %v681_v23, 1  ;;  %v2176_v61 = vadd.f32 %v2175_v19, %v2174_v60  ;;  %v2180_v36 = vrot.slane %v2179_v15, 2  ;;  %v6894_v54 = vsub.f32 %v6803_v59, %v396_v35 }
 0x132   :  { %v6897_v57 = vsub.f32 %v6816_v50, %v396_v35  ;;  %v6900_v4 = vsub.f32 %v6823_v5, %v2064_v42  ;;  %v1874_v47 = vadd.f32 %v1873_v2, %v1872_v49  ;;  %v248_v41 = vadd.f32 %v247_v25, %v246_v38 }
 0x133   :  { %v5527_v62 = vpop.eup %5526  ;;  %v683_v14 = vadd.f32 %v682_v31, %v681_v23  ;;  %v2382_v29 = vmul.f32 0.125, %v2176_v61  ;;  %v2181_v56 = vadd.f32 %v2180_v36, %v2179_v15  ;;  %v508_v19 = vmul.f32 %v6894_v54, %v6894_v54 }
 0x134   :  { %v5529_v13 = vpop.eup %5528  ;;  %v952_v60 = vmul.f32 %v5527_v62, %v6766_v0  ;;  %v953_v6 = vmul.f32 %v5527_v62, %v6769_v52  ;;  %v509_v23 = vmul.f32 %v6897_v57, %v6897_v57  ;;  %v2128_v52 = vmul.f32 %v6900_v4, %v6900_v4 }
 0x135   :  { %v6907_v50 = vmul.f32 %v5529_v13, %v6780_v58  ;;  %v843_v35 = vmul.f32 0.0625, %v683_v14  ;;  %v2414_v5 = vadd.f32 1e-05, %v2382_v29  ;;  %v2182_v61 = vrot.slane %v2181_v56, 1  ;;  %v6925_v29 = vld [vmem:[%s9033_s0 + $0x120] sm:$0xff] }
 0x136   :  { %1116 = vrot.lane.b32.xlu0 %v952_v60, %s5731_s3  ;;  %1118 = vrot.lane.b32.xlu1 %v953_v6, %s5731_s3  ;;  %v684_v0 = vsel %vm90_vm1, %v508_v19, 0.0  ;;  %v1875_v49 = vrot.slane %v1874_v47, 1  ;;  %v685_v38 = vsel %vm90_vm1, %v509_v23, 0.0  ;;  %v249_v15 = vrot.slane %v248_v41, 2 }
 0x137   :  { %9110 = vst [vmem:[#allocation24_spill] sm:$0xff] %v6907_v50  ;;  %5283 = vmatprep.mubr.msk.f32.mxu1 %vm1834_vm0, %v6907_v50  ;;  %v875_v58 = vadd.f32 1e-05, %v843_v35  ;;  %5530 = vrsqrt.f32 %v2414_v5  ;;  %v2183_v42 = vadd.f32 %v2182_v61, %v2181_v56  ;;  %v686_v2 = vadd.f32 %v685_v38, %v684_v0  ;;  %v6930_v56 = vld [vmem:[%s9033_s0 + $0x70] sm:$0xff] }
 0x138   :  { %5284 = vmatmul.mubr.msk.f32.vlgmr.msra.gmra.mrb[32].mxu1 %vm1834_vm0, %v6744_v32  ;;  %v2184_v31 = vsel %vm1834_vm0, %v2128_v52, 0.0  ;;  %v1876_v25 = vadd.f32 %v1875_v49, %v1874_v47  ;;  %v250_v62 = vadd.f32 %v249_v15, %v248_v41  ;;  %v1879_v14 = vadd.f32 %v1878_v24, %v1877_v45 }
 0x139   :  { %5532 = vrsqrt.f32 %v875_v58  ;;  %v2185_v36 = vrot.slane %v2184_v31, 4  ;;  %v2383_v13 = vmul.f32 0.125, %v2183_v42  ;;  %v687_v60 = vrot.slane %v686_v2, 4  ;;  %v6944_v42 = vld [vmem:[%s9033_s0 + $0x128] sm:$0xff] }
 0x13a   :  { %v2065_v6 = vmul.f32 0.125, %v1876_v25  ;;  %v1884_v47 = vsel %vm1834_vm0, %v6930_v56, 0.0  ;;  %v251_v35 = vrot.slane %v250_v62, 1  ;;  %v1880_v41 = vrot.slane %v1879_v14, 2 }
 0x13b   :  { %v2186_v19 = vadd.f32 %v2185_v36, %v2184_v31  ;;  %v1885_v45 = vrot.slane %v1884_v47, 4  ;;  %v2415_v24 = vadd.f32 1e-05, %v2383_v13  ;;  %v688_v5 = vadd.f32 %v687_v60, %v686_v2  ;;  %v6952_v60 = vld [vmem:[%s9033_s0 + $0x80] sm:$0xff] }
 0x13c   :  { %v6935_v23 = vsub.f32 %v6865_v22, %v2065_v6  ;;  %v253_v61 = vsel %vm90_vm1, %v6925_v29, 0.0  ;;  %v252_v52 = vadd.f32 %v251_v35, %v250_v62  ;;  %v1881_v49 = vadd.f32 %v1880_v41, %v1879_v14 }
 0x13d   :  { %v2187_v0 = vrot.slane %v2186_v19, 2  ;;  %v1886_v58 = vadd.f32 %v1885_v45, %v1884_v47  ;;  %5534 = vrsqrt.f32 %v2415_v24  ;;  %v689_v38 = vrot.slane %v688_v5, 2 }
 0x13e   :  { %v2129_v15 = vmul.f32 %v6935_v23, %v6935_v23  ;;  %v254_v22 = vsel %vm90_vm1, %v6944_v42, 0.0  ;;  %v397_v31 = vmul.f32 0.0625, %v252_v52  ;;  %v1882_v25 = vrot.slane %v1881_v49, 1 }
 0x13f   :  { %v2188_v2 = vadd.f32 %v2187_v0, %v2186_v19  ;;  %v1887_v36 = vrot.slane %v1886_v58, 2  ;;  %v690_v62 = vadd.f32 %v689_v38, %v688_v5  ;;  %v255_v13 = vadd.f32 %v254_v22, %v253_v61 }
 0x140   :  { %v2191_v14 = vsel %vm1834_vm0, %v2129_v15, 0.0  ;;  %v1891_v6 = vsel %vm1834_vm0, %v6952_v60, 0.0  ;;  %v6957_v19 = vsub.f32 %v6858_v26, %v397_v31  ;;  %v6960_v45 = vsub.f32 %v6882_v16, %v397_v31 }
 0x141   :  { %v5531_v47 = vpop.eup %5530  ;;  %v2189_v35 = vrot.slane %v2188_v2, 1  ;;  %v2192_v41 = vrot.slane %v2191_v14, 4  ;;  %v691_v5 = vrot.slane %v690_v62, 1  ;;  %v1883_v61 = vadd.f32 %v1882_v25, %v1881_v49 }
 0x142   :  { %v6963_v24 = vmul.f32 %v5531_v47, %v6834_v7  ;;  %v1888_v0 = vadd.f32 %v1887_v36, %v1886_v58  ;;  %v510_v22 = vmul.f32 %v6957_v19, %v6957_v19  ;;  %v511_v44 = vmul.f32 %v6960_v45, %v6960_v45 }
 0x143   :  { %v5533_v52 = vpop.eup %5532  ;;  %v2190_v38 = vadd.f32 %v2189_v35, %v2188_v2  ;;  %v2193_v15 = vadd.f32 %v2192_v41, %v2191_v14  ;;  %v692_v7 = vadd.f32 %v691_v5, %v690_v62  ;;  %v2066_v31 = vmul.f32 0.125, %v1883_v61 }
 0x144   :  { %9111 = vst [vmem:[#allocation25_spill] sm:$0xff] %v6963_v24  ;;  %v954_v33 = vmul.f32 %v5533_v52, %v6828_v20  ;;  %v955_v16 = vmul.f32 %v5533_v52, %v6831_v39  ;;  %5286 = vmatprep.mubr.msk.f32.mxu1 %vm1834_vm0, %v6963_v24  ;;  %v693_v2 = vsel %vm90_vm1, %v510_v22, 0.0  ;;  %v694_v25 = vsel %vm90_vm1, %v511_v44, 0.0 }
 0x145   :  { %v2384_v49 = vmul.f32 0.125, %v2190_v38  ;;  %v2194_v58 = vrot.slane %v2193_v15, 2  ;;  %v844_v36 = vmul.f32 0.0625, %v692_v7  ;;  %v695_v14 = vadd.f32 %v694_v25, %v693_v2  ;;  %v6999_v25 = vld [vmem:[%s9033_s0 + $0x90] sm:$0xff] }
 0x146   :  { %1120 = vrot.lane.b32.xlu0 %v954_v33, %s5731_s3  ;;  %1122 = vrot.lane.b32.xlu1 %v955_v16, %s5731_s3  ;;  %v6978_v20 = vsub.f32 %v6889_v18, %v2066_v31  ;;  %v1889_v39 = vrot.slane %v1888_v0, 1  ;;  %v256_v62 = vrot.slane %v255_v13, 4  ;;  %v1892_v41 = vrot.slane %v1891_v6, 4  ;;  %v6988_v18 = vld [vmem:[%s9033_s0 + $0x130] sm:$0xff] }
 0x147   :  { %v2416_v47 = vadd.f32 1e-05, %v2384_v49  ;;  %v2195_v35 = vadd.f32 %v2194_v58, %v2193_v15  ;;  %v5535_v5 = vpop.eup %5534  ;;  %v876_v61 = vadd.f32 1e-05, %v844_v36  ;;  %v696_v52 = vrot.slane %v695_v14, 4 }
 0x148   :  { %v2130_v44 = vmul.f32 %v6978_v20, %v6978_v20  ;;  %v1890_v38 = vadd.f32 %v1889_v39, %v1888_v0  ;;  %v6983_v33 = vmul.f32 %v5535_v5, %v6853_v55  ;;  %v257_v16 = vadd.f32 %v256_v62, %v255_v13  ;;  %v7010_v5 = vld [vmem:[%s9033_s0 + $0x138] sm:$0xff] }
 0x149   :  { %5536 = vrsqrt.f32 %v2416_v47  ;;  %v2196_v22 = vrot.slane %v2195_v35, 1  ;;  %v697_v15 = vadd.f32 %v696_v52, %v695_v14  ;;  %v1893_v58 = vadd.f32 %v1892_v41, %v1891_v6 }
 0x14a   :  { %9112 = vst [vmem:[#allocation26_spill] sm:$0xff] %v6983_v33  ;;  %5538 = vrsqrt.f32 %v876_v61  ;;  %v2198_v7 = vsel %vm1834_vm0, %v2130_v44, 0.0  ;;  %v2067_v31 = vmul.f32 0.125, %v1890_v38  ;;  %5287 = vmatmul.mubr.msk.f32.gmra.mrb[34].mxu1 %vm1834_vm0, %v6983_v33  ;;  %v258_v55 = vrot.slane %v257_v16, 2 }
 0x14b   :  { %v2197_v0 = vadd.f32 %v2196_v22, %v2195_v35  ;;  %v2199_v49 = vrot.slane %v2198_v7, 4  ;;  %v698_v2 = vrot.slane %v697_v15, 2  ;;  %v1898_v36 = vsel %vm1834_vm0, %v6999_v25, 0.0 }
 0x14c   :  { %v6994_v13 = vsub.f32 %v6930_v56, %v2067_v31  ;;  %v262_v14 = vsel %vm90_vm1, %v6988_v18, 0.0  ;;  %v259_v35 = vadd.f32 %v258_v55, %v257_v16  ;;  %v1894_v62 = vrot.slane %v1893_v58, 2 }
 0x14d   :  { %v2385_v39 = vmul.f32 0.125, %v2197_v0  ;;  %v2200_v47 = vadd.f32 %v2199_v49, %v2198_v7  ;;  %v699_v6 = vadd.f32 %v698_v2, %v697_v15  ;;  %v1899_v41 = vrot.slane %v1898_v36, 4 }
 0x14e   :  { %v2131_v56 = vmul.f32 %v6994_v13, %v6994_v13  ;;  %v263_v61 = vsel %vm90_vm1, %v7010_v5, 0.0  ;;  %v260_v38 = vrot.slane %v259_v35, 1  ;;  %v1895_v22 = vadd.f32 %v1894_v62, %v1893_v58  ;;  %v7018_v58 = vld [vmem:[%s9033_s0 + $0xa0] sm:$0xff] }
 0x14f   :  { %v2417_v52 = vadd.f32 1e-05, %v2385_v39  ;;  %v2201_v44 = vrot.slane %v2200_v47, 2  ;;  %v700_v7 = vrot.slane %v699_v6, 1  ;;  %v1900_v15 = vadd.f32 %v1899_v41, %v1898_v36 }
 0x150   :  { %v2205_v16 = vsel %vm1834_vm0, %v2131_v56, 0.0  ;;  %v264_v31 = vadd.f32 %v263_v61, %v262_v14  ;;  %v261_v55 = vadd.f32 %v260_v38, %v259_v35  ;;  %v1896_v27 = vrot.slane %v1895_v22, 1 }
 0x151   :  { %5540 = vrsqrt.f32 %v2417_v52  ;;  %v2202_v0 = vadd.f32 %v2201_v44, %v2200_v47  ;;  %v2206_v49 = vrot.slane %v2205_v16, 4  ;;  %v701_v2 = vadd.f32 %v700_v7, %v699_v6 }
 0x152   :  { %v1901_v8 = vrot.slane %v1900_v15, 2  ;;  %v265_v21 = vrot.slane %v264_v31, 4  ;;  %v398_v39 = vmul.f32 0.0625, %v261_v55  ;;  %v1905_v36 = vsel %vm1834_vm0, %v7018_v58, 0.0 }
 0x153   :  { %v5537_v33 = vpop.eup %5536  ;;  %v2203_v24 = vrot.slane %v2202_v0, 1  ;;  %v2207_v32 = vadd.f32 %v2206_v49, %v2205_v16  ;;  %v845_v35 = vmul.f32 0.0625, %v701_v2  ;;  %v1897_v62 = vadd.f32 %v1896_v27, %v1895_v22 }
 0x154   :  { %v5539_v14 = vpop.eup %5538  ;;  %v7023_v47 = vmul.f32 %v5537_v33, %v6900_v4  ;;  %v1902_v6 = vadd.f32 %v1901_v8, %v1900_v15  ;;  %v7030_v38 = vsub.f32 %v6925_v29, %v398_v39  ;;  %v7033_v7 = vsub.f32 %v6944_v42, %v398_v39 }
 0x155   :  { %v956_v56 = vmul.f32 %v5539_v14, %v6894_v54  ;;  %v957_v41 = vmul.f32 %v5539_v14, %v6897_v57  ;;  %v2204_v61 = vadd.f32 %v2203_v24, %v2202_v0  ;;  %v2208_v52 = vrot.slane %v2207_v32, 2 }
 0x156   :  { %9113 = vst [vmem:[#allocation27_spill] sm:$0xff] %v7023_v47  ;;  %5289 = vmatprep.mubr.msk.f32.mxu1 %vm1834_vm0, %v7023_v47  ;;  %v877_v44 = vadd.f32 1e-05, %v845_v35  ;;  %v2068_v4 = vmul.f32 0.125, %v1897_v62  ;;  %v1903_v54 = vrot.slane %v1902_v6, 1  ;;  %v266_v57 = vadd.f32 %v265_v21, %v264_v31 }
 0x157   :  { %1124 = vrot.lane.b32.xlu0 %v956_v56, %s5731_s3  ;;  %1126 = vrot.lane.b32.xlu1 %v957_v41, %s5731_s3  ;;  %v2386_v8 = vmul.f32 0.125, %v2204_v61  ;;  %v2209_v27 = vadd.f32 %v2208_v52, %v2207_v32  ;;  %v512_v24 = vmul.f32 %v7030_v38, %v7030_v38  ;;  %v513_v33 = vmul.f32 %v7033_v7, %v7033_v7 }
 0x158   :  { %5542 = vrsqrt.f32 %v877_v44  ;;  %v7042_v22 = vsub.f32 %v6952_v60, %v2068_v4  ;;  %v1904_v15 = vadd.f32 %v1903_v54, %v1902_v6  ;;  %v267_v0 = vrot.slane %v266_v57, 2  ;;  %v7051_v60 = vld [vmem:[%s9033_s0 + $0x140] sm:$0xff] }
 0x159   :  { %v2418_v42 = vadd.f32 1e-05, %v2386_v8  ;;  %v2210_v16 = vrot.slane %v2209_v27, 1  ;;  %v702_v49 = vsel %vm90_vm1, %v512_v24, 0.0  ;;  %v703_v32 = vsel %vm90_vm1, %v513_v33, 0.0 }
 0x15a   :  { %v2132_v21 = vmul.f32 %v7042_v22, %v7042_v22  ;;  %v1906_v31 = vrot.slane %v1905_v36, 4  ;;  %v704_v39 = vadd.f32 %v703_v32, %v702_v49  ;;  %v2069_v14 = vmul.f32 0.125, %v1904_v15  ;;  %v7076_v15 = vld [vmem:[%s9033_s0 + $0x148] sm:$0xff] }
 0x15b   :  { %v5541_v55 = vpop.eup %5540  ;;  %5544 = vrsqrt.f32 %v2418_v42  ;;  %v2211_v2 = vadd.f32 %v2210_v16, %v2209_v27  ;;  %v268_v6 = vadd.f32 %v267_v0, %v266_v57  ;;  %v272_v0 = vsel %vm90_vm1, %v7076_v15, 0.0 }
 0x15c   :  { %v7054_v35 = vmul.f32 %v5541_v55, %v6935_v23  ;;  %v2212_v62 = vsel %vm1834_vm0, %v2132_v21, 0.0  ;;  %v1907_v56 = vadd.f32 %v1906_v31, %v1905_v36  ;;  %v705_v61 = vrot.slane %v704_v39, 4  ;;  %v7065_v23 = vld [vmem:[%s9033_s0 + $0xb0] sm:$0xff] }
 0x15d   :  { %v2387_v41 = vmul.f32 0.125, %v2211_v2  ;;  %v2213_v52 = vrot.slane %v2212_v62, 4  ;;  %v7058_v44 = vsub.f32 %v6999_v25, %v2069_v14  ;;  %v269_v4 = vrot.slane %v268_v6, 1 }
 0x15e   :  { %9114 = vst [vmem:[#allocation28_spill] sm:$0xff] %v7054_v35  ;;  %5290 = vmatmul.mubr.msk.f32.gmra.mrb[36].mxu1 %vm1834_vm0, %v7054_v35  ;;  %v1908_v8 = vrot.slane %v1907_v56, 2  ;;  %v1912_v27 = vsel %vm1834_vm0, %v7065_v23, 0.0  ;;  %v271_v36 = vsel %vm90_vm1, %v7051_v60, 0.0  ;;  %v706_v57 = vadd.f32 %v705_v61, %v704_v39 }
 0x15f   :  { %v2419_v54 = vadd.f32 1e-05, %v2387_v41  ;;  %v2214_v25 = vadd.f32 %v2213_v52, %v2212_v62  ;;  %v2133_v24 = vmul.f32 %v7058_v44, %v7058_v44  ;;  %v270_v33 = vadd.f32 %v269_v4, %v268_v6 }
 0x160   :  { %v1909_v42 = vadd.f32 %v1908_v8, %v1907_v56  ;;  %v1913_v16 = vrot.slane %v1912_v27, 4  ;;  %v707_v49 = vrot.slane %v706_v57, 2 }
 0x161   :  { %5546 = vrsqrt.f32 %v2419_v54  ;;  %v2215_v32 = vrot.slane %v2214_v25, 2  ;;  %v2219_v21 = vsel %vm1834_vm0, %v2133_v24, 0.0  ;;  %v399_v2 = vmul.f32 0.0625, %v270_v33 }
 0x162   :  { %v5543_v31 = vpop.eup %5542  ;;  %v2220_v55 = vrot.slane %v2219_v21, 4  ;;  %v1910_v39 = vrot.slane %v1909_v42, 1  ;;  %v1914_v14 = vadd.f32 %v1913_v16, %v1912_v27  ;;  %v708_v56 = vadd.f32 %v707_v49, %v706_v57 }
 0x163   :  { %v958_v62 = vmul.f32 %v5543_v31, %v6957_v19  ;;  %v959_v6 = vmul.f32 %v5543_v31, %v6960_v45  ;;  %v2216_v41 = vadd.f32 %v2215_v32, %v2214_v25  ;;  %v7084_v52 = vsub.f32 %v6988_v18, %v399_v2 }
 0x164   :  { %v2221_v61 = vadd.f32 %v2220_v55, %v2219_v21  ;;  %v7087_v4 = vsub.f32 %v7010_v5, %v399_v2  ;;  %v1911_v8 = vadd.f32 %v1910_v39, %v1909_v42  ;;  %v709_v27 = vrot.slane %v708_v56, 1 }
 0x165   :  { %v5545_v54 = vpop.eup %5544  ;;  %1128 = vrot.lane.b32.xlu0 %v958_v62, %s5731_s3  ;;  %1130 = vrot.lane.b32.xlu1 %v959_v6, %s5731_s3  ;;  %v2217_v24 = vrot.slane %v2216_v41, 1  ;;  %v1915_v19 = vrot.slane %v1914_v14, 2  ;;  %v273_v33 = vadd.f32 %v272_v0, %v271_v36  ;;  %v514_v25 = vmul.f32 %v7084_v52, %v7084_v52 }
 0x166   :  { %v7092_v45 = vmul.f32 %v5545_v54, %v6978_v20  ;;  %v2222_v57 = vrot.slane %v2221_v61, 2  ;;  %v515_v5 = vmul.f32 %v7087_v4, %v7087_v4  ;;  %v710_v42 = vadd.f32 %v709_v27, %v708_v56 }
 0x167   :  { %v2218_v16 = vadd.f32 %v2217_v24, %v2216_v41  ;;  %v2070_v49 = vmul.f32 0.125, %v1911_v8  ;;  %v1916_v32 = vadd.f32 %v1915_v19, %v1914_v14  ;;  %v711_v36 = vsel %vm90_vm1, %v514_v25, 0.0  ;;  %v7108_v14 = vld [vmem:[%s9033_s0 + $0xc0] sm:$0xff] }
 0x168   :  { %9115 = vst [vmem:[#allocation29_spill] sm:$0xff] %v7092_v45  ;;  %5292 = vmatprep.mubr.msk.f32.mxu1 %vm1834_vm0, %v7092_v45  ;;  %v2223_v21 = vadd.f32 %v2222_v57, %v2221_v61  ;;  %v712_v20 = vsel %vm90_vm1, %v515_v5, 0.0  ;;  %v274_v0 = vrot.slane %v273_v33, 4  ;;  %v846_v31 = vmul.f32 0.0625, %v710_v42 }
 0x169   :  { %v2388_v55 = vmul.f32 0.125, %v2218_v16  ;;  %v713_v2 = vadd.f32 %v712_v20, %v711_v36  ;;  %v7103_v39 = vsub.f32 %v7018_v58, %v2070_v49  ;;  %v1917_v6 = vrot.slane %v1916_v32, 1 }
 0x16a   :  { %v2224_v62 = vrot.slane %v2223_v21, 1  ;;  %v275_v56 = vadd.f32 %v274_v0, %v273_v33  ;;  %v1919_v41 = vsel %vm1834_vm0, %v7108_v14, 0.0  ;;  %v878_v8 = vadd.f32 1e-05, %v846_v31  ;;  %v7128_v0 = vld [vmem:[%s9033_s0 + $0xd0] sm:$0xff] }
 0x16b   :  { %v5547_v61 = vpop.eup %5546  ;;  %v2420_v54 = vadd.f32 1e-05, %v2388_v55  ;;  %v714_v27 = vrot.slane %v713_v2, 4  ;;  %v2134_v24 = vmul.f32 %v7103_v39, %v7103_v39  ;;  %v1918_v33 = vadd.f32 %v1917_v6, %v1916_v32 }
 0x16c   :  { %v7115_v58 = vmul.f32 %v5547_v61, %v6994_v13  ;;  %v2225_v19 = vadd.f32 %v2224_v62, %v2223_v21  ;;  %v276_v57 = vrot.slane %v275_v56, 2  ;;  %5548 = vrsqrt.f32 %v878_v8  ;;  %v7123_v13 = vld [vmem:[%s9033_s0 + $0x150] sm:$0xff] }
 0x16d   :  { %v715_v25 = vadd.f32 %v714_v27, %v713_v2  ;;  %v2226_v5 = vsel %vm1834_vm0, %v2134_v24, 0.0  ;;  %v1920_v42 = vrot.slane %v1919_v41, 4  ;;  %5550 = vrsqrt.f32 %v2420_v54 }
 0x16e   :  { %9116 = vst [vmem:[#allocation30_spill] sm:$0xff] %v7115_v58  ;;  %5293 = vmatmul.mubr.msk.f32.gmra.mrb[38].mxu1 %vm1834_vm0, %v7115_v58  ;;  %v2389_v16 = vmul.f32 0.125, %v2225_v19  ;;  %v2227_v49 = vrot.slane %v2226_v5, 4  ;;  %v2071_v36 = vmul.f32 0.125, %v1918_v33  ;;  %v277_v32 = vadd.f32 %v276_v57, %v275_v56 }
 0x16f   :  { %v716_v21 = vrot.slane %v715_v25, 2  ;;  %v1921_v20 = vadd.f32 %v1920_v42, %v1919_v41  ;;  %v1926_v31 = vsel %vm1834_vm0, %v7128_v0, 0.0  ;;  %v280_v56 = vsel %vm90_vm1, %v7123_v13, 0.0 }
 0x170   :  { %v2421_v55 = vadd.f32 1e-05, %v2389_v16  ;;  %v2228_v2 = vadd.f32 %v2227_v49, %v2226_v5  ;;  %v7133_v62 = vsub.f32 %v7065_v23, %v2071_v36  ;;  %v1927_v6 = vrot.slane %v1926_v31, 4  ;;  %v7142_v23 = vld [vmem:[%s9033_s0 + $0x158] sm:$0xff] }
 0x171   :  { %v717_v61 = vadd.f32 %v716_v21, %v715_v25  ;;  %v278_v8 = vrot.slane %v277_v32, 1  ;;  %v1922_v54 = vrot.slane %v1921_v20, 2  ;;  %v281_v25 = vsel %vm90_vm1, %v7142_v23, 0.0 }
 0x172   :  { %5552 = vrsqrt.f32 %v2421_v55  ;;  %v2229_v41 = vrot.slane %v2228_v2, 2  ;;  %v2135_v27 = vmul.f32 %v7133_v62, %v7133_v62  ;;  %v1928_v24 = vadd.f32 %v1927_v6, %v1926_v31 }
 0x173   :  { %v718_v19 = vrot.slane %v717_v61, 1  ;;  %v279_v33 = vadd.f32 %v278_v8, %v277_v32  ;;  %v1923_v57 = vadd.f32 %v1922_v54, %v1921_v20  ;;  %v282_v49 = vadd.f32 %v281_v25, %v280_v56  ;;  %v7150_v8 = vld [vmem:[%s9033_s0 + $0xe0] sm:$0xff] }
 0x174   :  { %v2230_v5 = vadd.f32 %v2229_v41, %v2228_v2  ;;  %v2233_v42 = vsel %vm1834_vm0, %v2135_v27, 0.0  ;;  %v1929_v16 = vrot.slane %v1928_v24, 2  ;;  %v1933_v54 = vsel %vm1834_vm0, %v7150_v8, 0.0 }
 0x175   :  { %v719_v36 = vadd.f32 %v718_v19, %v717_v61  ;;  %v2234_v21 = vrot.slane %v2233_v42, 4  ;;  %v400_v55 = vmul.f32 0.0625, %v279_v33  ;;  %v1924_v31 = vrot.slane %v1923_v57, 1 }
 0x176   :  { %v2231_v6 = vrot.slane %v2230_v5, 1  ;;  %v1930_v32 = vadd.f32 %v1929_v16, %v1928_v24  ;;  %v283_v20 = vrot.slane %v282_v49, 4  ;;  %v5549_v2 = vpop.eup %5548 }
 0x177   :  { %v847_v41 = vmul.f32 0.0625, %v719_v36  ;;  %v2235_v27 = vadd.f32 %v2234_v21, %v2233_v42  ;;  %v7155_v56 = vsub.f32 %v7051_v60, %v400_v55  ;;  %v7158_v61 = vsub.f32 %v7076_v15, %v400_v55  ;;  %v5551_v19 = vpop.eup %5550 }
 0x178   :  { %v960_v24 = vmul.f32 %v5549_v2, %v7030_v38  ;;  %v961_v33 = vmul.f32 %v5549_v2, %v7033_v7  ;;  %v2232_v25 = vadd.f32 %v2231_v6, %v2230_v5  ;;  %v1925_v16 = vadd.f32 %v1924_v31, %v1923_v57 }
 0x179   :  { %v7163_v58 = vmul.f32 %v5551_v19, %v7042_v22  ;;  %v879_v45 = vadd.f32 1e-05, %v847_v41  ;;  %v2236_v35 = vrot.slane %v2235_v27, 2  ;;  %v516_v42 = vmul.f32 %v7155_v56, %v7155_v56 }
 0x17a   :  { %1132 = vrot.lane.b32.xlu0 %v960_v24, %s5731_s3  ;;  %1134 = vrot.lane.b32.xlu1 %v961_v33, %s5731_s3  ;;  %v2390_v15 = vmul.f32 0.125, %v2232_v25  ;;  %v517_v38 = vmul.f32 %v7158_v61, %v7158_v61  ;;  %v2072_v36 = vmul.f32 0.125, %v1925_v16  ;;  %v1931_v7 = vrot.slane %v1930_v32, 1  ;;  %v7195_v25 = vld [vmem:[%s9033_s0 + $0x160] sm:$0xff] }
 0x17b   :  { %9117 = vst [vmem:[#allocation31_spill] sm:$0xff] %v7163_v58  ;;  %5295 = vmatprep.mubr.msk.f32.mxu1 %vm1834_vm0, %v7163_v58  ;;  %5554 = vrsqrt.f32 %v879_v45  ;;  %v2237_v22 = vadd.f32 %v2236_v35, %v2235_v27  ;;  %v720_v57 = vsel %vm90_vm1, %v516_v42, 0.0  ;;  %v284_v5 = vadd.f32 %v283_v20, %v282_v49 }
 0x17c   :  { %v5553_v21 = vpop.eup %5552  ;;  %v2422_v55 = vadd.f32 1e-05, %v2390_v15  ;;  %v721_v31 = vsel %vm90_vm1, %v517_v38, 0.0  ;;  %v7176_v6 = vsub.f32 %v7108_v14, %v2072_v36  ;;  %v1932_v2 = vadd.f32 %v1931_v7, %v1930_v32 }
 0x17d   :  { %v7179_v41 = vmul.f32 %v5553_v21, %v7058_v44  ;;  %v2238_v19 = vrot.slane %v2237_v22, 1  ;;  %v722_v24 = vadd.f32 %v721_v31, %v720_v57  ;;  %v285_v33 = vrot.slane %v284_v5, 2  ;;  %v7188_v44 = vld [vmem:[%s9033_s0 + $0xf0] sm:$0xff] }
 0x17e   :  { %5556 = vrsqrt.f32 %v2422_v55  ;;  %v2136_v35 = vmul.f32 %v7176_v6, %v7176_v6  ;;  %v2073_v45 = vmul.f32 0.125, %v1932_v2  ;;  %v1934_v49 = vrot.slane %v1933_v54, 4 }
 0x17f   :  { %9118 = vst [vmem:[#allocation32_spill] sm:$0xff] %v7179_v41  ;;  %5296 = vmatmul.mubr.msk.f32.gmra.mrb[40].mxu1 %vm1834_vm0, %v7179_v41  ;;  %v2239_v20 = vadd.f32 %v2238_v19, %v2237_v22  ;;  %v723_v27 = vrot.slane %v722_v24, 4  ;;  %v286_v14 = vadd.f32 %v285_v33, %v284_v5  ;;  %v1940_v32 = vsel %vm1834_vm0, %v7188_v44, 0.0 }
 0x180   :  { %v2240_v16 = vsel %vm1834_vm0, %v2136_v35, 0.0  ;;  %v7199_v42 = vsub.f32 %v7128_v0, %v2073_v45  ;;  %v1935_v15 = vadd.f32 %v1934_v49, %v1933_v54  ;;  %v1941_v38 = vrot.slane %v1940_v32, 4 }
 0x181   :  { %v2391_v36 = vmul.f32 0.125, %v2239_v20  ;;  %v724_v7 = vadd.f32 %v723_v27, %v722_v24  ;;  %v2241_v22 = vrot.slane %v2240_v16, 4  ;;  %v287_v57 = vrot.slane %v286_v14, 1  ;;  %v7209_v24 = vld [vmem:[%s9033_s0 + $0x168] sm:$0xff] }
 0x182   :  { %v2137_v5 = vmul.f32 %v7199_v42, %v7199_v42  ;;  %v1936_v21 = vrot.slane %v1935_v15, 2  ;;  %v1942_v55 = vadd.f32 %v1941_v38, %v1940_v32  ;;  %v289_v31 = vsel %vm90_vm1, %v7195_v25, 0.0 }
 0x183   :  { %v2423_v2 = vadd.f32 1e-05, %v2391_v36  ;;  %v725_v19 = vrot.slane %v724_v7, 2  ;;  %v2242_v33 = vadd.f32 %v2241_v22, %v2240_v16  ;;  %v288_v35 = vadd.f32 %v287_v57, %v286_v14 }
 0x184   :  { %v2247_v0 = vsel %vm1834_vm0, %v2137_v5, 0.0  ;;  %v1937_v54 = vadd.f32 %v1936_v21, %v1935_v15  ;;  %v1943_v45 = vrot.slane %v1942_v55, 2  ;;  %v290_v49 = vsel %vm90_vm1, %v7209_v24, 0.0 }
 0x185   :  { %v5555_v20 = vpop.eup %5554  ;;  %5558 = vrsqrt.f32 %v2423_v2  ;;  %v726_v27 = vadd.f32 %v725_v19, %v724_v7  ;;  %v2243_v32 = vrot.slane %v2242_v33, 2  ;;  %v2248_v38 = vrot.slane %v2247_v0, 4 }
 0x186   :  { %v962_v16 = vmul.f32 %v5555_v20, %v7084_v52  ;;  %v963_v14 = vmul.f32 %v5555_v20, %v7087_v4  ;;  %v401_v36 = vmul.f32 0.0625, %v288_v35  ;;  %v1938_v15 = vrot.slane %v1937_v54, 1 }
 0x187   :  { %v727_v22 = vrot.slane %v726_v27, 1  ;;  %v2244_v57 = vadd.f32 %v2243_v32, %v2242_v33  ;;  %v2249_v5 = vadd.f32 %v2248_v38, %v2247_v0  ;;  %v1944_v21 = vadd.f32 %v1943_v45, %v1942_v55 }
 0x188   :  { %v5557_v41 = vpop.eup %5556  ;;  %1136 = vrot.lane.b32.xlu0 %v962_v16, %s5731_s3  ;;  %1138 = vrot.lane.b32.xlu1 %v963_v14, %s5731_s3  ;;  %v7218_v2 = vsub.f32 %v7123_v13, %v401_v36  ;;  %v7221_v7 = vsub.f32 %v7142_v23, %v401_v36  ;;  %v1939_v52 = vadd.f32 %v1938_v15, %v1937_v54  ;;  %v1947_v4 = vsel %vm1834_vm0, %v6803_v59, 0.0 }
 0x189   :  { %v7226_v19 = vmul.f32 %v5557_v41, %v7103_v39  ;;  %v728_v33 = vadd.f32 %v727_v22, %v726_v27  ;;  %v2245_v55 = vrot.slane %v2244_v57, 1  ;;  %v2250_v35 = vrot.slane %v2249_v5, 2 }
 0x18a   :  { %v518_v0 = vmul.f32 %v7218_v2, %v7218_v2  ;;  %v519_v45 = vmul.f32 %v7221_v7, %v7221_v7  ;;  %v2074_v20 = vmul.f32 0.125, %v1939_v52  ;;  %v1945_v32 = vrot.slane %v1944_v21, 1 }
 0x18b   :  { %9119 = vst [vmem:[#allocation33_spill] sm:$0xff] %v7226_v19  ;;  %5298 = vmatprep.mubr.msk.f32.mxu1 %vm1834_vm0, %v7226_v19  ;;  %v848_v23 = vmul.f32 0.0625, %v728_v33  ;;  %v2246_v54 = vadd.f32 %v2245_v55, %v2244_v57  ;;  %v2251_v59 = vadd.f32 %v2250_v35, %v2249_v5  ;;  %v291_v38 = vadd.f32 %v290_v49, %v289_v31 }
 0x18c   :  { %v729_v39 = vsel %vm90_vm1, %v518_v0, 0.0  ;;  %v730_v41 = vsel %vm90_vm1, %v519_v45, 0.0  ;;  %v7237_v27 = vsub.f32 %v7150_v8, %v2074_v20  ;;  %v1946_v16 = vadd.f32 %v1945_v32, %v1944_v21 }
 0x18d   :  { %v880_v14 = vadd.f32 1e-05, %v848_v23  ;;  %v2392_v36 = vmul.f32 0.125, %v2246_v54  ;;  %v2252_v15 = vrot.slane %v2251_v59, 1  ;;  %v731_v22 = vadd.f32 %v730_v41, %v729_v39  ;;  %v7251_v23 = vld [vmem:[%s9033_s0 + $0x170] sm:$0xff] }
 0x18e   :  { %v2138_v52 = vmul.f32 %v7237_v27, %v7237_v27  ;;  %v2075_v19 = vmul.f32 0.125, %v1946_v16  ;;  %v292_v33 = vrot.slane %v291_v38, 4  ;;  %v1948_v57 = vrot.slane %v1947_v4, 4 }
 0x18f   :  { %v5559_v5 = vpop.eup %5558  ;;  %5560 = vrsqrt.f32 %v880_v14  ;;  %v2424_v31 = vadd.f32 1e-05, %v2392_v36  ;;  %v2253_v49 = vadd.f32 %v2252_v15, %v2251_v59  ;;  %v732_v55 = vrot.slane %v731_v22, 4 }
 0x190   :  { %v7242_v35 = vmul.f32 %v5559_v5, %v7133_v62  ;;  %v2254_v8 = vsel %vm1834_vm0, %v2138_v52, 0.0  ;;  %v7246_v21 = vsub.f32 %v7188_v44, %v2075_v19  ;;  %v293_v0 = vadd.f32 %v292_v33, %v291_v38 }
 0x191   :  { %5562 = vrsqrt.f32 %v2424_v31  ;;  %v2393_v45 = vmul.f32 0.125, %v2253_v49  ;;  %v733_v20 = vadd.f32 %v732_v55, %v731_v22  ;;  %v2255_v32 = vrot.slane %v2254_v8, 4 }
 0x192   :  { %9120 = vst [vmem:[#allocation34_spill] sm:$0xff] %v7242_v35  ;;  %5299 = vmatmul.mubr.msk.f32.gmra.mrb[42].mxu1 %vm1834_vm0, %v7242_v35  ;;  %v2139_v62 = vmul.f32 %v7246_v21, %v7246_v21  ;;  %v294_v54 = vrot.slane %v293_v0, 2  ;;  %v1949_v59 = vadd.f32 %v1948_v57, %v1947_v4  ;;  %v1954_v44 = vsel %vm1834_vm0, %v6858_v26, 0.0  ;;  %v7265_v26 = vld [vmem:[%s9033_s0 + $0x178] sm:$0xff] }
 0x193   :  { %v2425_v19 = vadd.f32 1e-05, %v2393_v45  ;;  %v734_v38 = vrot.slane %v733_v20, 2  ;;  %v2256_v39 = vadd.f32 %v2255_v32, %v2254_v8  ;;  %v1955_v41 = vrot.slane %v1954_v44, 4 }
 0x194   :  { %v2261_v16 = vsel %vm1834_vm0, %v2139_v62, 0.0  ;;  %v295_v14 = vadd.f32 %v294_v54, %v293_v0  ;;  %v1950_v36 = vrot.slane %v1949_v59, 2  ;;  %v298_v15 = vsel %vm90_vm1, %v7251_v23, 0.0 }
 0x195   :  { %5564 = vrsqrt.f32 %v2425_v19  ;;  %v735_v22 = vadd.f32 %v734_v38, %v733_v20  ;;  %v2257_v52 = vrot.slane %v2256_v39, 2  ;;  %v2262_v33 = vrot.slane %v2261_v16, 4 }
 0x196   :  { %v296_v5 = vrot.slane %v295_v14, 1  ;;  %v1951_v4 = vadd.f32 %v1950_v36, %v1949_v59  ;;  %v1956_v57 = vadd.f32 %v1955_v41, %v1954_v44  ;;  %v299_v31 = vsel %vm90_vm1, %v7265_v26, 0.0 }
 0x197   :  { %v736_v49 = vrot.slane %v735_v22, 1  ;;  %v2258_v55 = vadd.f32 %v2257_v52, %v2256_v39  ;;  %v2263_v8 = vadd.f32 %v2262_v33, %v2261_v16  ;;  %v300_v0 = vadd.f32 %v299_v31, %v298_v15 }
 0x198   :  { %v297_v45 = vadd.f32 %v296_v5, %v295_v14  ;;  %v1952_v32 = vrot.slane %v1951_v4, 1  ;;  %v1957_v20 = vrot.slane %v1956_v57, 2  ;;  %v1961_v62 = vsel %vm1834_vm0, %v6925_v29, 0.0 }
 0x199   :  { %v5561_v54 = vpop.eup %5560  ;;  %v737_v59 = vadd.f32 %v736_v49, %v735_v22  ;;  %v2259_v44 = vrot.slane %v2258_v55, 1  ;;  %v2264_v19 = vrot.slane %v2263_v8, 2  ;;  %v301_v38 = vrot.slane %v300_v0, 4  ;;  %v5656_v49 = vld [vmem:[%s9033_s0 + $0x100] sm:$0xff] }
 0x19a   :  { %v964_v41 = vmul.f32 %v5561_v54, %v7155_v56  ;;  %v965_v36 = vmul.f32 %v5561_v54, %v7158_v61  ;;  %v402_v35 = vmul.f32 0.0625, %v297_v45  ;;  %v1953_v58 = vadd.f32 %v1952_v32, %v1951_v4 }
 0x19b   :  { %v5563_v39 = vpop.eup %5562  ;;  %v849_v16 = vmul.f32 0.0625, %v737_v59  ;;  %v2260_v15 = vadd.f32 %v2259_v44, %v2258_v55  ;;  %v2265_v14 = vadd.f32 %v2264_v19, %v2263_v8  ;;  %v1958_v52 = vadd.f32 %v1957_v20, %v1956_v57 }
 0x19c   :  { %1140 = vrot.lane.b32.xlu0 %v964_v41, %s5731_s3  ;;  %1142 = vrot.lane.b32.xlu1 %v965_v36, %s5731_s3  ;;  %v7276_v29 = vmul.f32 %v5563_v39, %v7176_v6  ;;  %v7279_v22 = vsub.f32 %v7195_v25, %v402_v35  ;;  %v7282_v56 = vsub.f32 %v7209_v24, %v402_v35  ;;  %v2076_v61 = vmul.f32 0.125, %v1953_v58 }
 0x19d   :  { %v881_v33 = vadd.f32 1e-05, %v849_v16  ;;  %v2394_v5 = vmul.f32 0.125, %v2260_v15  ;;  %v2266_v4 = vrot.slane %v2265_v14, 1  ;;  %v1959_v31 = vrot.slane %v1958_v52, 1 }
 0x19e   :  { %9121 = vst [vmem:[#allocation35_spill] sm:$0xff] %v7276_v29  ;;  %5301 = vmatprep.mubr.msk.f32.mxu1 %vm1834_vm0, %v7276_v29  ;;  %v520_v57 = vmul.f32 %v7279_v22, %v7279_v22  ;;  %v521_v6 = vmul.f32 %v7282_v56, %v7282_v56  ;;  %v7293_v24 = vsub.f32 %v5656_v49, %v2076_v61  ;;  %v1962_v36 = vrot.slane %v1961_v62, 4 }
 0x19f   :  { %v302_v58 = vadd.f32 %v301_v38, %v300_v0  ;;  %v5565_v35 = vpop.eup %5564  ;;  %5566 = vrsqrt.f32 %v881_v33  ;;  %v2426_v55 = vadd.f32 1e-05, %v2394_v5  ;;  %v2267_v8 = vadd.f32 %v2266_v4, %v2265_v14  ;;  %v7305_v0 = vld [vmem:[%s9033_s0 + $0x180] sm:$0xff] }
 0x1a0   :  { %v1960_v45 = vadd.f32 %v1959_v31, %v1958_v52  ;;  %v7296_v32 = vmul.f32 %v5565_v35, %v7199_v42  ;;  %v738_v20 = vsel %vm90_vm1, %v520_v57, 0.0  ;;  %v739_v54 = vsel %vm90_vm1, %v521_v6, 0.0  ;;  %v5657_v52 = vld [vmem:[%s9033_s0 + $0x110] sm:$0xff] }
 0x1a1   :  { %v2140_v59 = vmul.f32 %v7293_v24, %v7293_v24  ;;  %5568 = vrsqrt.f32 %v2426_v55  ;;  %v2395_v44 = vmul.f32 0.125, %v2267_v8  ;;  %v740_v19 = vadd.f32 %v739_v54, %v738_v20 }
 0x1a2   :  { %9122 = vst [vmem:[#allocation36_spill] sm:$0xff] %v7296_v32  ;;  %v2077_v41 = vmul.f32 0.125, %v1960_v45  ;;  %5302 = vmatmul.mubr.msk.f32.gmra.mrb[44].mxu1 %vm1834_vm0, %v7296_v32  ;;  %v303_v38 = vrot.slane %v302_v58, 2  ;;  %v1968_v39 = vsel %vm1834_vm0, %v6988_v18, 0.0  ;;  %v1963_v5 = vadd.f32 %v1962_v36, %v1961_v62  ;;  %v7324_v45 = vld [vmem:[%s9033_s0 + $0x188] sm:$0xff] }
 0x1a3   :  { %v2268_v42 = vsel %vm1834_vm0, %v2140_v59, 0.0  ;;  %v2427_v16 = vadd.f32 1e-05, %v2395_v44  ;;  %v741_v15 = vrot.slane %v740_v19, 4  ;;  %v1969_v4 = vrot.slane %v1968_v39, 4 }
 0x1a4   :  { %v2269_v14 = vrot.slane %v2268_v42, 4  ;;  %v7315_v61 = vsub.f32 %v5657_v52, %v2077_v41  ;;  %v304_v33 = vadd.f32 %v303_v38, %v302_v58  ;;  %v307_v31 = vsel %vm90_vm1, %v7305_v0, 0.0 }
 0x1a5   :  { %5570 = vrsqrt.f32 %v2427_v16  ;;  %v742_v57 = vadd.f32 %v741_v15, %v740_v19  ;;  %v1964_v55 = vrot.slane %v1963_v5, 2  ;;  %v1970_v8 = vadd.f32 %v1969_v4, %v1968_v39 }
 0x1a6   :  { %v2270_v6 = vadd.f32 %v2269_v14, %v2268_v42  ;;  %v2141_v49 = vmul.f32 %v7315_v61, %v7315_v61  ;;  %v305_v35 = vrot.slane %v304_v33, 1  ;;  %v308_v62 = vsel %vm90_vm1, %v7324_v45, 0.0 }
 0x1a7   :  { %v743_v58 = vrot.slane %v742_v57, 2  ;;  %v309_v59 = vadd.f32 %v308_v62, %v307_v31  ;;  %v1965_v41 = vadd.f32 %v1964_v55, %v1963_v5  ;;  %v1971_v42 = vrot.slane %v1970_v8, 2 }
 0x1a8   :  { %v2271_v20 = vrot.slane %v2270_v6, 2  ;;  %v2275_v54 = vsel %vm1834_vm0, %v2141_v49, 0.0  ;;  %v306_v19 = vadd.f32 %v305_v35, %v304_v33  ;;  %v1975_v15 = vsel %vm1834_vm0, %v7051_v60, 0.0 }
 0x1a9   :  { %v2276_v44 = vrot.slane %v2275_v54, 4  ;;  %v5567_v38 = vpop.eup %5566  ;;  %v744_v36 = vadd.f32 %v743_v58, %v742_v57  ;;  %v310_v16 = vrot.slane %v309_v59, 4  ;;  %v1966_v62 = vrot.slane %v1965_v41, 1 }
 0x1aa   :  { %v2272_v39 = vadd.f32 %v2271_v20, %v2270_v6  ;;  %v966_v14 = vmul.f32 %v5567_v38, %v7218_v2  ;;  %v967_v52 = vmul.f32 %v5567_v38, %v7221_v7  ;;  %v403_v32 = vmul.f32 0.0625, %v306_v19 }
 0x1ab   :  { %v2277_v4 = vadd.f32 %v2276_v44, %v2275_v54  ;;  %v5569_v29 = vpop.eup %5568  ;;  %v745_v49 = vrot.slane %v744_v36, 1  ;;  %v1972_v33 = vadd.f32 %v1971_v42, %v1970_v8  ;;  %v1967_v55 = vadd.f32 %v1966_v62, %v1965_v41 }
 0x1ac   :  { %v2273_v31 = vrot.slane %v2272_v39, 1  ;;  %1144 = vrot.lane.b32.xlu0 %v966_v14, %s5731_s3  ;;  %1146 = vrot.lane.b32.xlu1 %v967_v52, %s5731_s3  ;;  %v7336_v5 = vmul.f32 %v5569_v29, %v7237_v27  ;;  %v7339_v6 = vsub.f32 %v7251_v23, %v403_v32  ;;  %v7342_v2 = vsub.f32 %v7265_v26, %v403_v32 }
 0x1ad   :  { %v2278_v57 = vrot.slane %v2277_v4, 2  ;;  %v746_v7 = vadd.f32 %v745_v49, %v744_v36  ;;  %v1973_v58 = vrot.slane %v1972_v33, 1  ;;  %v311_v29 = vadd.f32 %v310_v16, %v309_v59  ;;  %v5659_v59 = vld [vmem:[%s9033_s0 + $0x120] sm:$0xff] }
 0x1ae   :  { %9123 = vst [vmem:[#allocation37_spill] sm:$0xff] %v7336_v5  ;;  %v2274_v35 = vadd.f32 %v2273_v31, %v2272_v39  ;;  %5304 = vmatprep.mubr.msk.f32.mxu1 %vm1834_vm0, %v7336_v5  ;;  %v522_v20 = vmul.f32 %v7339_v6, %v7339_v6  ;;  %v523_v27 = vmul.f32 %v7342_v2, %v7342_v2  ;;  %v2078_v26 = vmul.f32 0.125, %v1967_v55 }
 0x1af   :  { %v2279_v8 = vadd.f32 %v2278_v57, %v2277_v4  ;;  %v5571_v54 = vpop.eup %5570  ;;  %v850_v44 = vmul.f32 0.0625, %v746_v7  ;;  %v1974_v32 = vadd.f32 %v1973_v58, %v1972_v33  ;;  %v312_v49 = vrot.slane %v311_v29, 2  ;;  %v7372_v58 = vld [vmem:[%s9033_s0 + $0x190] sm:$0xff] }
 0x1b0   :  { %v2396_v19 = vmul.f32 0.125, %v2274_v35  ;;  %v7351_v42 = vmul.f32 %v5571_v54, %v7246_v21  ;;  %v747_v38 = vsel %vm90_vm1, %v522_v20, 0.0  ;;  %v748_v36 = vsel %vm90_vm1, %v523_v27, 0.0 }
 0x1b1   :  { %v2280_v41 = vrot.slane %v2279_v8, 1  ;;  %v882_v39 = vadd.f32 1e-05, %v850_v44  ;;  %v749_v52 = vadd.f32 %v748_v36, %v747_v38  ;;  %v7358_v16 = vsub.f32 %v5659_v59, %v2078_v26 }
 0x1b2   :  { %9124 = vst [vmem:[#allocation38_spill] sm:$0xff] %v7351_v42  ;;  %v2428_v14 = vadd.f32 1e-05, %v2396_v19  ;;  %5305 = vmatmul.mubr.msk.f32.gmra.mrb[46].mxu1 %vm1834_vm0, %v7351_v42  ;;  %v2079_v21 = vmul.f32 0.125, %v1974_v32  ;;  %v1976_v31 = vrot.slane %v1975_v15, 4  ;;  %v1982_v57 = vsel %vm1834_vm0, %v7123_v13, 0.0 }
 0x1b3   :  { %v2281_v4 = vadd.f32 %v2280_v41, %v2279_v8  ;;  %5572 = vrsqrt.f32 %v882_v39  ;;  %v750_v62 = vrot.slane %v749_v52, 4  ;;  %v2142_v33 = vmul.f32 %v7358_v16, %v7358_v16 }
 0x1b4   :  { %5574 = vrsqrt.f32 %v2428_v14  ;;  %v7367_v35 = vsub.f32 %v6988_v18, %v2079_v21  ;;  %v313_v55 = vadd.f32 %v312_v49, %v311_v29  ;;  %v1977_v27 = vadd.f32 %v1976_v31, %v1975_v15  ;;  %v7383_v31 = vld [vmem:[%s9033_s0 + $0x198] sm:$0xff] }
 0x1b5   :  { %v2397_v7 = vmul.f32 0.125, %v2281_v4  ;;  %v751_v8 = vadd.f32 %v750_v62, %v749_v52  ;;  %v2282_v20 = vsel %vm1834_vm0, %v2142_v33, 0.0  ;;  %v1983_v54 = vrot.slane %v1982_v57, 4 }
 0x1b6   :  { %v2283_v19 = vrot.slane %v2282_v20, 4  ;;  %v2143_v26 = vmul.f32 %v7367_v35, %v7367_v35  ;;  %v314_v32 = vrot.slane %v313_v55, 1  ;;  %v1978_v18 = vrot.slane %v1977_v27, 2 }
 0x1b7   :  { %v2429_v44 = vadd.f32 1e-05, %v2397_v7  ;;  %v752_v41 = vrot.slane %v751_v8, 2  ;;  %v1984_v38 = vadd.f32 %v1983_v54, %v1982_v57  ;;  %v316_v29 = vsel %vm90_vm1, %v7372_v58, 0.0 }
 0x1b8   :  { %v2284_v36 = vadd.f32 %v2283_v19, %v2282_v20  ;;  %v2289_v39 = vsel %vm1834_vm0, %v2143_v26, 0.0  ;;  %v315_v14 = vadd.f32 %v314_v32, %v313_v55  ;;  %v1979_v59 = vadd.f32 %v1978_v18, %v1977_v27 }
 0x1b9   :  { %5576 = vrsqrt.f32 %v2429_v44  ;;  %v753_v52 = vadd.f32 %v752_v41, %v751_v8  ;;  %v2290_v15 = vrot.slane %v2289_v39, 4  ;;  %v1985_v4 = vrot.slane %v1984_v38, 2 }
 0x1ba   :  { %v2285_v21 = vrot.slane %v2284_v36, 2  ;;  %v404_v49 = vmul.f32 0.0625, %v315_v14  ;;  %v317_v62 = vsel %vm90_vm1, %v7383_v31, 0.0  ;;  %v1989_v33 = vsel %vm1834_vm0, %v7195_v25, 0.0 }
 0x1bb   :  { %v754_v57 = vrot.slane %v753_v52, 1  ;;  %v2291_v7 = vadd.f32 %v2290_v15, %v2289_v39  ;;  %v1980_v55 = vrot.slane %v1979_v59, 1  ;;  %v1986_v8 = vadd.f32 %v1985_v4, %v1984_v38 }
 0x1bc   :  { %v2286_v20 = vadd.f32 %v2285_v21, %v2284_v36  ;;  %v7390_v27 = vsub.f32 %v7305_v0, %v404_v49  ;;  %v7393_v54 = vsub.f32 %v7324_v45, %v404_v49  ;;  %v318_v44 = vadd.f32 %v317_v62, %v316_v29 }
 0x1bd   :  { %v5573_v19 = vpop.eup %5572  ;;  %v755_v26 = vadd.f32 %v754_v57, %v753_v52  ;;  %v2292_v32 = vrot.slane %v2291_v7, 2  ;;  %v1981_v41 = vadd.f32 %v1980_v55, %v1979_v59  ;;  %v1987_v18 = vrot.slane %v1986_v8, 1 }
 0x1be   :  { %v5575_v14 = vpop.eup %5574  ;;  %v968_v42 = vmul.f32 %v5573_v19, %v7279_v22  ;;  %v969_v39 = vmul.f32 %v5573_v19, %v7282_v56  ;;  %v2287_v15 = vrot.slane %v2286_v20, 1  ;;  %v524_v38 = vmul.f32 %v7390_v27, %v7390_v27 }
 0x1bf   :  { %v7400_v36 = vmul.f32 %v5575_v14, %v7293_v24  ;;  %v851_v45 = vmul.f32 0.0625, %v755_v26  ;;  %v2293_v4 = vadd.f32 %v2292_v32, %v2291_v7  ;;  %v525_v29 = vmul.f32 %v7393_v54, %v7393_v54 }
 0x1c0   :  { %1148 = vrot.lane.b32.xlu0 %v968_v42, %s5731_s3  ;;  %1150 = vrot.lane.b32.xlu1 %v969_v39, %s5731_s3  ;;  %v2288_v52 = vadd.f32 %v2287_v15, %v2286_v20  ;;  %v756_v22 = vsel %vm90_vm1, %v524_v38, 0.0  ;;  %v2080_v56 = vmul.f32 0.125, %v1981_v41  ;;  %v1988_v59 = vadd.f32 %v1987_v18, %v1986_v8 }
 0x1c1   :  { %9125 = vst [vmem:[#allocation39_spill] sm:$0xff] %v7400_v36  ;;  %5307 = vmatprep.mubr.msk.f32.mxu1 %vm1834_vm0, %v7400_v36  ;;  %v883_v21 = vadd.f32 1e-05, %v851_v45  ;;  %v2294_v24 = vrot.slane %v2293_v4, 1  ;;  %v757_v49 = vsel %vm90_vm1, %v525_v29, 0.0  ;;  %v319_v62 = vrot.slane %v318_v44, 4 }
 0x1c2   :  { %v2398_v7 = vmul.f32 0.125, %v2288_v52  ;;  %v758_v55 = vadd.f32 %v757_v49, %v756_v22  ;;  %v7411_v42 = vsub.f32 %v7051_v60, %v2080_v56  ;;  %v2081_v19 = vmul.f32 0.125, %v1988_v59 }
 0x1c3   :  { %v5577_v57 = vpop.eup %5576  ;;  %5578 = vrsqrt.f32 %v883_v21  ;;  %v2295_v8 = vadd.f32 %v2294_v24, %v2293_v4  ;;  %v320_v26 = vadd.f32 %v319_v62, %v318_v44  ;;  %v1990_v15 = vrot.slane %v1989_v33, 4  ;;  %v7428_v44 = vld [vmem:[%s9033_s0 + $0x1a0] sm:$0xff] }
 0x1c4   :  { %v7414_v20 = vmul.f32 %v5577_v57, %v7315_v61  ;;  %v2430_v32 = vadd.f32 1e-05, %v2398_v7  ;;  %v759_v41 = vrot.slane %v758_v55, 4  ;;  %v2144_v18 = vmul.f32 %v7411_v42, %v7411_v42 }
 0x1c5   :  { %v7419_v14 = vsub.f32 %v7123_v13, %v2081_v19  ;;  %v2399_v60 = vmul.f32 0.125, %v2295_v8  ;;  %v321_v39 = vrot.slane %v320_v26, 2  ;;  %v1996_v61 = vsel %vm1834_vm0, %v7251_v23, 0.0  ;;  %v7439_v8 = vld [vmem:[%s9033_s0 + $0x1a8] sm:$0xff] }
 0x1c6   :  { %9126 = vst [vmem:[#allocation40_spill] sm:$0xff] %v7414_v20  ;;  %5308 = vmatmul.mubr.msk.f32.gmra.mrb[48].mxu1 %vm1834_vm0, %v7414_v20  ;;  %5580 = vrsqrt.f32 %v2430_v32  ;;  %v760_v38 = vadd.f32 %v759_v41, %v758_v55  ;;  %v2296_v45 = vsel %vm1834_vm0, %v2144_v18, 0.0  ;;  %v1991_v22 = vadd.f32 %v1990_v15, %v1989_v33 }
 0x1c7   :  { %v2145_v13 = vmul.f32 %v7419_v14, %v7419_v14  ;;  %v2431_v4 = vadd.f32 1e-05, %v2399_v60  ;;  %v2297_v29 = vrot.slane %v2296_v45, 4  ;;  %v322_v52 = vadd.f32 %v321_v39, %v320_v26  ;;  %v7443_v60 = vpop.permute.xlu0 %1060 }
 0x1c8   :  { %v761_v56 = vrot.slane %v760_v38, 2  ;;  %v1997_v21 = vrot.slane %v1996_v61, 4  ;;  %v325_v24 = vsel %vm90_vm1, %v7428_v44, 0.0  ;;  %v1992_v55 = vrot.slane %v1991_v22, 2  ;;  %5135 = vmatprep.mubr.msk.f32.mxu0 %vm1188_vm3, %v7443_v60 }
 0x1c9   :  { %v2303_v59 = vsel %vm1834_vm0, %v2145_v13, 0.0  ;;  %5582 = vrsqrt.f32 %v2431_v4  ;;  %v2298_v49 = vadd.f32 %v2297_v29, %v2296_v45  ;;  %v323_v57 = vrot.slane %v322_v52, 1 }
 0x1ca   :  { %v2304_v62 = vrot.slane %v2303_v59, 4  ;;  %v762_v7 = vadd.f32 %v761_v56, %v760_v38  ;;  %v1998_v19 = vadd.f32 %v1997_v21, %v1996_v61  ;;  %v326_v33 = vsel %vm90_vm1, %v7439_v8, 0.0  ;;  %v7449_v38 = vpop.permute.xlu1 %1064 }
 0x1cb   :  { %v2299_v26 = vrot.slane %v2298_v49, 2  ;;  %v324_v41 = vadd.f32 %v323_v57, %v322_v52  ;;  %v327_v18 = vadd.f32 %v326_v33, %v325_v24  ;;  %v1993_v15 = vadd.f32 %v1992_v55, %v1991_v22 }
 0x1cc   :  { %v2305_v32 = vadd.f32 %v2304_v62, %v2303_v59  ;;  %v763_v39 = vrot.slane %v762_v7, 1  ;;  %v1999_v45 = vrot.slane %v1998_v19, 2  ;;  %v7447_v61 = vsel %vm1834_vm0, %v7305_v0, 0.0 }
 0x1cd   :  { %v5579_v13 = vpop.eup %5578  ;;  %v2300_v4 = vadd.f32 %v2299_v26, %v2298_v49  ;;  %v405_v56 = vmul.f32 0.0625, %v324_v41  ;;  %v328_v21 = vrot.slane %v327_v18, 4  ;;  %v1994_v62 = vrot.slane %v1993_v15, 1 }
 0x1ce   :  { %v2306_v29 = vrot.slane %v2305_v32, 2  ;;  %v970_v59 = vmul.f32 %v5579_v13, %v7339_v6  ;;  %v971_v52 = vmul.f32 %v5579_v13, %v7342_v2  ;;  %v764_v24 = vadd.f32 %v763_v39, %v762_v7  ;;  %v7466_v13 = vpop.permute.xlu0 %1062 }
 0x1cf   :  { %v2301_v57 = vrot.slane %v2300_v4, 1  ;;  %v7454_v55 = vsub.f32 %v7372_v58, %v405_v56  ;;  %v7457_v33 = vsub.f32 %v7383_v31, %v405_v56  ;;  %v1995_v26 = vadd.f32 %v1994_v62, %v1993_v15 }
 0x1d0   :  { %v2307_v22 = vadd.f32 %v2306_v29, %v2305_v32  ;;  %v5581_v20 = vpop.eup %5580  ;;  %1152 = vrot.lane.b32.xlu0 %v970_v59, %s5731_s3  ;;  %1154 = vrot.lane.b32.xlu1 %v971_v52, %s5731_s3  ;;  %v852_v49 = vmul.f32 0.0625, %v764_v24  ;;  %v2000_v6 = vadd.f32 %v1999_v45, %v1998_v19  ;;  %v329_v41 = vadd.f32 %v328_v21, %v327_v18  ;;  %v7470_v52 = vpop.permute.xlu1 %1066 }
 0x1d1   :  { %v7462_v2 = vmul.f32 %v5581_v20, %v7358_v16  ;;  %v2302_v7 = vadd.f32 %v2301_v57, %v2300_v4  ;;  %v526_v39 = vmul.f32 %v7454_v55, %v7454_v55  ;;  %v527_v29 = vmul.f32 %v7457_v33, %v7457_v33 }
 0x1d2   :  { %v2308_v32 = vrot.slane %v2307_v22, 1  ;;  %v884_v31 = vadd.f32 1e-05, %v852_v49  ;;  %v2082_v56 = vmul.f32 0.125, %v1995_v26  ;;  %v2001_v59 = vrot.slane %v2000_v6, 1  ;;  %v7482_v26 = vpop.permute.xlu0 %1068 }
 0x1d3   :  { %9127 = vst [vmem:[#allocation41_spill] sm:$0xff] %v7462_v2  ;;  %v5583_v19 = vpop.eup %5582  ;;  %5310 = vmatprep.mubr.msk.f32.mxu1 %vm1834_vm0, %v7462_v2  ;;  %v2400_v16 = vmul.f32 0.125, %v2302_v7  ;;  %v765_v18 = vsel %vm90_vm1, %v526_v39, 0.0  ;;  %v330_v15 = vrot.slane %v329_v41, 2  ;;  %v766_v4 = vsel %vm90_vm1, %v527_v29, 0.0  ;;  %v7499_v29 = vld [vmem:[%s9033_s0 + $0x1b0] sm:$0xff] }
 0x1d4   :  { %v2309_v20 = vadd.f32 %v2308_v32, %v2307_v22  ;;  %v7476_v45 = vmul.f32 %v5583_v19, %v7367_v35  ;;  %5584 = vrsqrt.f32 %v884_v31  ;;  %v7480_v21 = vsub.f32 %v7195_v25, %v2082_v56  ;;  %v7494_v25 = vld [vmem:[%s9034_s5] sm:$0xff] }
 0x1d5   :  { %v2432_v24 = vadd.f32 1e-05, %v2400_v16  ;;  %v767_v57 = vadd.f32 %v766_v4, %v765_v18  ;;  %v2002_v49 = vadd.f32 %v2001_v59, %v2000_v6  ;;  %v331_v35 = vadd.f32 %v330_v15, %v329_v41  ;;  %v7501_v41 = vpop.f32.mrb[0].mxu1  ;;  %5381 = vmatprep.subr.mxu1 %v7494_v25 }
 0x1d6   :  { %9128 = vst [vmem:[#allocation42_spill] sm:$0xff] %v7476_v45  ;;  %v2401_v62 = vmul.f32 0.125, %v2309_v20  ;;  %5311 = vmatmul.mubr.msk.f32.gmra.mrb[50].mxu1 %vm1834_vm0, %v7476_v45  ;;  %v2146_v22 = vmul.f32 %v7480_v21, %v7480_v21  ;;  %v2004_v7 = vrot.slane %v7447_v61, 4  ;;  %v2010_v32 = vsel %vm1834_vm0, %v7372_v58, 0.0  ;;  %9129 = vst [vmem:[#allocation43_spill] sm:$0xff] %v7501_v41  ;;  %v7506_v20 = vpop.permute.xlu1 %1070  ;;  %v7508_v18 = vpop.f32.mrb[1].mxu1 }
 0x1d7   :  { %5586 = vrsqrt.f32 %v2432_v24  ;;  %v768_v39 = vrot.slane %v767_v57, 4  ;;  %v2083_v31 = vmul.f32 0.125, %v2002_v49  ;;  %v332_v59 = vrot.slane %v331_v35, 1  ;;  %9130 = vst [vmem:[#allocation44_spill] sm:$0xff] %v7508_v18  ;;  %5382 = vmatpush3.msra.mxu1 %v7494_v25 }
 0x1d8   :  { %v2433_v6 = vadd.f32 1e-05, %v2401_v62  ;;  %v2310_v56 = vsel %vm1834_vm0, %v2146_v22, 0.0  ;;  %v2005_v19 = vadd.f32 %v2004_v7, %v7447_v61  ;;  %v2011_v16 = vrot.slane %v2010_v32, 4 }
 0x1d9   :  { %v769_v15 = vadd.f32 %v768_v39, %v767_v57  ;;  %v2311_v4 = vrot.slane %v2310_v56, 4  ;;  %v7512_v24 = vsub.f32 %v7251_v23, %v2083_v31  ;;  %v333_v62 = vadd.f32 %v332_v59, %v331_v35  ;;  %v7525_v57 = vpop.permute.xlu0 %1072  ;;  %v7527_v35 = vpop.f32.mrb[2].mxu1 }
 0x1da   :  { %5588 = vrsqrt.f32 %v2433_v6  ;;  %v2006_v49 = vrot.slane %v2005_v19, 2  ;;  %v2012_v45 = vadd.f32 %v2011_v16, %v2010_v32  ;;  %v334_v22 = vsel %vm90_vm1, %v7499_v29, 0.0  ;;  %v7521_v6 = vld [vmem:[%s9033_s0 + $0x1b8] sm:$0xff]  ;;  %9131 = vst [vmem:[#allocation45_spill] sm:$0xff] %v7527_v35 }
 0x1db   :  { %v770_v61 = vrot.slane %v769_v15, 2  ;;  %v2312_v7 = vadd.f32 %v2311_v4, %v2310_v56  ;;  %v2147_v2 = vmul.f32 %v7512_v24, %v7512_v24  ;;  %v335_v23 = vsel %vm90_vm1, %v7521_v6, 0.0  ;;  %v7529_v56 = vpop.f32.mrb[3].mxu1 }
 0x1dc   :  { %v406_v32 = vmul.f32 0.0625, %v333_v62  ;;  %v2007_v39 = vadd.f32 %v2006_v49, %v2005_v19  ;;  %v2013_v31 = vrot.slane %v2012_v45, 2  ;;  %v336_v59 = vadd.f32 %v335_v23, %v334_v22  ;;  %9132 = vst [vmem:[#allocation46_spill] sm:$0xff] %v7529_v56  ;;  %v7540_v62 = vpop.permute.xlu1 %1074 }
 0x1dd   :  { %v771_v16 = vadd.f32 %v770_v61, %v769_v15  ;;  %v2313_v4 = vrot.slane %v2312_v7, 2  ;;  %v2317_v36 = vsel %vm1834_vm0, %v2147_v2, 0.0  ;;  %v2017_v5 = vsel %vm1834_vm0, %v7428_v44, 0.0  ;;  %v7544_v61 = vpop.f32.mrb[4].mxu1 }
 0x1de   :  { %v5585_v47 = vpop.eup %5584  ;;  %v2318_v50 = vrot.slane %v2317_v36, 4  ;;  %v7535_v41 = vsub.f32 %v7428_v44, %v406_v32  ;;  %v7538_v35 = vsub.f32 %v7439_v8, %v406_v32  ;;  %v2008_v19 = vrot.slane %v2007_v39, 1  ;;  %9133 = vst [vmem:[#allocation47_spill] sm:$0xff] %v7544_v61  ;;  %v7550_v32 = vpop.f32.mrb[5].mxu1 }
 0x1df   :  { %v972_v49 = vmul.f32 %v5585_v47, %v7390_v27  ;;  %v973_v15 = vmul.f32 %v5585_v47, %v7393_v54  ;;  %v772_v22 = vrot.slane %v771_v16, 1  ;;  %v2314_v2 = vadd.f32 %v2313_v4, %v2312_v7  ;;  %9134 = vst [vmem:[#allocation48_spill] sm:$0xff] %v7550_v32  ;;  %v7554_v4 = vpop.permute.xlu0 %1076 }
 0x1e0   :  { %v2319_v23 = vadd.f32 %v2318_v50, %v2317_v36  ;;  %v528_v56 = vmul.f32 %v7535_v41, %v7535_v41  ;;  %v529_v18 = vmul.f32 %v7538_v35, %v7538_v35  ;;  %v2009_v8 = vadd.f32 %v2008_v19, %v2007_v39 }
 0x1e1   :  { %v5587_v40 = vpop.eup %5586  ;;  %1156 = vrot.lane.b32.xlu0 %v972_v49, %s5731_s3  ;;  %1158 = vrot.lane.b32.xlu1 %v973_v15, %s5731_s3  ;;  %v773_v47 = vadd.f32 %v772_v22, %v771_v16  ;;  %v2315_v27 = vrot.slane %v2314_v2, 1  ;;  %v2014_v54 = vadd.f32 %v2013_v31, %v2012_v45  ;;  %v337_v7 = vrot.slane %v336_v59, 4 }
 0x1e2   :  { %v7557_v50 = vmul.f32 %v5587_v40, %v7411_v42  ;;  %v2320_v36 = vrot.slane %v2319_v23, 2  ;;  %v774_v61 = vsel %vm90_vm1, %v528_v56, 0.0  ;;  %v775_v39 = vsel %vm90_vm1, %v529_v18, 0.0  ;;  %v7566_v42 = vpop.permute.xlu1 %1078 }
 0x1e3   :  { %v853_v32 = vmul.f32 0.0625, %v773_v47  ;;  %v2316_v3 = vadd.f32 %v2315_v27, %v2314_v2  ;;  %v776_v49 = vadd.f32 %v775_v39, %v774_v61  ;;  %v2084_v30 = vmul.f32 0.125, %v2009_v8  ;;  %v7575_v27 = vpop.permute.xlu0 %1080 }
 0x1e4   :  { %9135 = vst [vmem:[#allocation49_spill] sm:$0xff] %v7557_v50  ;;  %v5589_v19 = vpop.eup %5588  ;;  %5313 = vmatprep.mubr.msk.f32.mxu1 %vm1834_vm0, %v7557_v50  ;;  %v2321_v31 = vadd.f32 %v2320_v36, %v2319_v23  ;;  %v2015_v16 = vrot.slane %v2014_v54, 1  ;;  %v338_v40 = vadd.f32 %v337_v7, %v336_v59  ;;  %v2018_v47 = vrot.slane %v2017_v5, 4 }
 0x1e5   :  { %v7564_v45 = vmul.f32 %v5589_v19, %v7419_v14  ;;  %v885_v15 = vadd.f32 1e-05, %v853_v32  ;;  %v2402_v56 = vmul.f32 0.125, %v2316_v3  ;;  %v777_v22 = vrot.slane %v776_v49, 4 }
 0x1e6   :  { %v7569_v18 = vsub.f32 %v7305_v0, %v2084_v30  ;;  %v2322_v2 = vrot.slane %v2321_v31, 1  ;;  %v2016_v61 = vadd.f32 %v2015_v16, %v2014_v54  ;;  %v339_v8 = vrot.slane %v338_v40, 2  ;;  %v7580_v0 = vld [vmem:[%s9033_s0 + $0x1c0] sm:$0xff]  ;;  %v7582_v54 = vpop.f32.mrb[6].mxu1 }
 0x1e7   :  { %9136 = vst [vmem:[#allocation50_spill] sm:$0xff] %v7564_v45  ;;  %5314 = vmatmul.mubr.msk.f32.gmra.mrb[52].mxu1 %vm1834_vm0, %v7564_v45  ;;  %5590 = vrsqrt.f32 %v885_v15  ;;  %v2434_v14 = vadd.f32 1e-05, %v2402_v56  ;;  %v778_v23 = vadd.f32 %v777_v22, %v776_v49  ;;  %v2019_v30 = vadd.f32 %v2018_v47, %v2017_v5  ;;  %9137 = vst [vmem:[#allocation51_spill] sm:$0xff] %v7582_v54  ;;  %v7592_v15 = vpop.f32.mrb[7].mxu1  ;;  %v7601_v45 = vld [vmem:[%s9033_s0 + $0x1c8] sm:$0xff] }
 0x1e8   :  { %v2148_v59 = vmul.f32 %v7569_v18, %v7569_v18  ;;  %v2323_v3 = vadd.f32 %v2322_v2, %v2321_v31  ;;  %v2085_v32 = vmul.f32 0.125, %v2016_v61  ;;  %v340_v7 = vadd.f32 %v339_v8, %v338_v40  ;;  %v7590_v40 = vpop.permute.xlu1 %1082  ;;  %9138 = vst [vmem:[#allocation52_spill] sm:$0xff] %v7592_v15 }
 0x1e9   :  { %5592 = vrsqrt.f32 %v2434_v14  ;;  %v779_v36 = vrot.slane %v778_v23, 2  ;;  %v2024_v19 = vsel %vm1834_vm0, %v7499_v29, 0.0  ;;  %v2020_v22 = vrot.slane %v2019_v30, 2 }
 0x1ea   :  { %v2324_v39 = vsel %vm1834_vm0, %v2148_v59, 0.0  ;;  %v2403_v49 = vmul.f32 0.125, %v2323_v3  ;;  %v7588_v31 = vsub.f32 %v7372_v58, %v2085_v32  ;;  %v341_v5 = vrot.slane %v340_v7, 1 }
 0x1eb   :  { %v2325_v16 = vrot.slane %v2324_v39, 4  ;;  %v780_v56 = vadd.f32 %v779_v36, %v778_v23  ;;  %v2025_v2 = vrot.slane %v2024_v19, 4  ;;  %v343_v61 = vsel %vm90_vm1, %v7580_v0, 0.0  ;;  %v7605_v36 = vpop.permute.xlu0 %1084 }
 0x1ec   :  { %v2435_v8 = vadd.f32 1e-05, %v2403_v49  ;;  %v2149_v14 = vmul.f32 %v7588_v31, %v7588_v31  ;;  %v342_v59 = vadd.f32 %v341_v5, %v340_v7  ;;  %v2021_v58 = vadd.f32 %v2020_v22, %v2019_v30  ;;  %v7614_v15 = vpop.permute.xlu1 %1086 }
 0x1ed   :  { %v2326_v47 = vadd.f32 %v2325_v16, %v2324_v39  ;;  %v781_v3 = vrot.slane %v780_v56, 1  ;;  %v2026_v32 = vadd.f32 %v2025_v2, %v2024_v19  ;;  %v344_v23 = vsel %vm90_vm1, %v7601_v45, 0.0 }
 0x1ee   :  { %5594 = vrsqrt.f32 %v2435_v8  ;;  %v2331_v39 = vsel %vm1834_vm0, %v2149_v14, 0.0  ;;  %v407_v16 = vmul.f32 0.0625, %v342_v59  ;;  %v2022_v5 = vrot.slane %v2021_v58, 1 }
 0x1ef   :  { %v2327_v49 = vrot.slane %v2326_v47, 2  ;;  %v782_v50 = vadd.f32 %v781_v3, %v780_v56  ;;  %v2332_v7 = vrot.slane %v2331_v39, 4  ;;  %v2027_v30 = vrot.slane %v2026_v32, 2 }
 0x1f0   :  { %v7609_v22 = vsub.f32 %v7499_v29, %v407_v16  ;;  %v7612_v2 = vsub.f32 %v7521_v6, %v407_v16  ;;  %v345_v54 = vadd.f32 %v344_v23, %v343_v61  ;;  %v2023_v1 = vadd.f32 %v2022_v5, %v2021_v58  ;;  %v7622_v16 = vpop.permute.xlu0 %1088 }
 0x1f1   :  { %v2328_v19 = vadd.f32 %v2327_v49, %v2326_v47  ;;  %v5591_v34 = vpop.eup %5590  ;;  %v854_v8 = vmul.f32 0.0625, %v782_v50  ;;  %v2333_v63 = vadd.f32 %v2332_v7, %v2331_v39  ;;  %v2028_v14 = vadd.f32 %v2027_v30, %v2026_v32 }
 0x1f2   :  { %v974_v56 = vmul.f32 %v5591_v34, %v7454_v55  ;;  %v975_v59 = vmul.f32 %v5591_v34, %v7457_v33  ;;  %v530_v47 = vmul.f32 %v7609_v22, %v7609_v22  ;;  %v531_v61 = vmul.f32 %v7612_v2, %v7612_v2 }
 0x1f3   :  { %v2329_v3 = vrot.slane %v2328_v19, 1  ;;  %v5593_v49 = vpop.eup %5592  ;;  %v886_v28 = vadd.f32 1e-05, %v854_v8  ;;  %v2334_v6 = vrot.slane %v2333_v63, 2  ;;  %v2086_v23 = vmul.f32 0.125, %v2023_v1 }
 0x1f4   :  { %1160 = vrot.lane.b32.xlu0 %v974_v56, %s5731_s3  ;;  %1162 = vrot.lane.b32.xlu1 %v975_v59, %s5731_s3  ;;  %v7627_v55 = vmul.f32 %v5593_v49, %v7480_v21  ;;  %v783_v33 = vsel %vm90_vm1, %v530_v47, 0.0  ;;  %v2029_v50 = vrot.slane %v2028_v14, 1  ;;  %v784_v32 = vsel %vm90_vm1, %v531_v61, 0.0  ;;  %v988_v1 = vld [vmem:[%s9035_s1] sm:$0xf] }
 0x1f5   :  { %v2330_v34 = vadd.f32 %v2329_v3, %v2328_v19  ;;  %5596 = vrsqrt.f32 %v886_v28  ;;  %v2335_v58 = vadd.f32 %v2334_v6, %v2333_v63  ;;  %v7632_v39 = vsub.f32 %v7428_v44, %v2086_v23  ;;  %v7639_v19 = vpop.permute.xlu1 %1090  ;;  %v7641_v28 = vpop.f32.mrb[8].mxu1  ;;  %5133 = vmatprep.subr.msk.mxu0 %vm1317_vm2, %v988_v1 }
 0x1f6   :  { %9139 = vst [vmem:[#allocation53_spill] sm:$0xff] %v7627_v55  ;;  %5316 = vmatprep.mubr.msk.f32.mxu1 %vm1834_vm0, %v7627_v55  ;;  %v785_v7 = vadd.f32 %v784_v32, %v783_v33  ;;  %v2030_v5 = vadd.f32 %v2029_v50, %v2028_v14  ;;  %v346_v30 = vrot.slane %v345_v54, 4  ;;  %9140 = vst [vmem:[#allocation54_spill] sm:$0xff] %v7641_v28  ;;  %v2031_v8 = vsel %vm1834_vm0, %v7580_v0, 0.0  ;;  %v7647_v56 = vpop.f32.mrb[9].mxu1  ;;  %v7653_v33 = vpop.permute.xlu0 %1092 }
 0x1f7   :  { %v2404_v21 = vmul.f32 0.125, %v2330_v34  ;;  %v2336_v63 = vrot.slane %v2335_v58, 1  ;;  %v2150_v44 = vmul.f32 %v7632_v39, %v7632_v39  ;;  %v2032_v34 = vrot.slane %v2031_v8, 4  ;;  %5134 = vmatpush3.msk.msra.mxu0 %vm1317_vm2, %v988_v1 }
 0x1f8   :  { %v5595_v59 = vpop.eup %5594  ;;  %v786_v47 = vrot.slane %v785_v7, 4  ;;  %v2087_v49 = vmul.f32 0.125, %v2030_v5  ;;  %v347_v14 = vadd.f32 %v346_v30, %v345_v54  ;;  %v7661_v54 = vld [vmem:[%s9033_s0 + $0x1d0] sm:$0xff]  ;;  %5331 = vmatprep.subr.mxu0 %v7494_v25  ;;  %5136 = vmatmul.mubr.msk.f32.vlgmr.msra.gmra.mrb[0].mxu0 %vm1188_vm3, %v7466_v13  ;;  %v7687_v13 = vld [vmem:[%s9033_s0 + $0x1e0] sm:$0xff] }
 0x1f9   :  { %v2436_v3 = vadd.f32 1e-05, %v2404_v21  ;;  %v7650_v6 = vmul.f32 %v5595_v59, %v7512_v24  ;;  %v2337_v61 = vadd.f32 %v2336_v63, %v2335_v58  ;;  %v2338_v23 = vsel %vm1834_vm0, %v2150_v44, 0.0  ;;  %v7670_v63 = vpop.permute.xlu1 %1094  ;;  %5138 = vmatprep.mubr.msk.f32.mxu0 %vm1188_vm3, %v7449_v38  ;;  %5332 = vmatpush3.msra.mxu0 %v7494_v25  ;;  %v7696_v25 = vld [vmem:[%s9033_s0 + $0x1d8] sm:$0xff] }
 0x1fa   :  { %v787_v50 = vadd.f32 %v786_v47, %v785_v7  ;;  %v2339_v32 = vrot.slane %v2338_v23, 4  ;;  %v7656_v55 = vsub.f32 %v7499_v29, %v2087_v49  ;;  %v348_v58 = vrot.slane %v347_v14, 2 }
 0x1fb   :  { %9141 = vst [vmem:[#allocation55_spill] sm:$0xff] %v7650_v6  ;;  %5598 = vrsqrt.f32 %v2436_v3  ;;  %5317 = vmatmul.mubr.msk.f32.gmra.mrb[54].mxu1 %vm1834_vm0, %v7650_v6  ;;  %v2405_v24 = vmul.f32 0.125, %v2337_v61  ;;  %v2033_v1 = vadd.f32 %v2032_v34, %v2031_v8  ;;  %v2038_v21 = vsel %vm1834_vm0, %v7661_v54, 0.0 }
 0x1fc   :  { %v788_v7 = vrot.slane %v787_v50, 2  ;;  %v2340_v5 = vadd.f32 %v2339_v32, %v2338_v23  ;;  %v2151_v29 = vmul.f32 %v7656_v55, %v7656_v55  ;;  %v2039_v30 = vrot.slane %v2038_v21, 4  ;;  %5139 = vmatmul.mubr.msk.f32.gmra.mrb[2].mxu0 %vm1188_vm3, %v7470_v52 }
 0x1fd   :  { %v2437_v44 = vadd.f32 1e-05, %v2405_v24  ;;  %v349_v59 = vadd.f32 %v348_v58, %v347_v14  ;;  %v2034_v3 = vrot.slane %v2033_v1, 2  ;;  %v7677_v24 = vpop.permute.xlu0 %1096  ;;  %v352_v38 = vsel %vm90_vm1, %v7661_v54, 0.0  ;;  %5141 = vmatprep.mubr.msk.f32.mxu0 %vm1188_vm3, %v7482_v26 }
 0x1fe   :  { %v789_v47 = vadd.f32 %v788_v7, %v787_v50  ;;  %v2341_v49 = vrot.slane %v2340_v5, 2  ;;  %v2345_v61 = vsel %vm1834_vm0, %v2151_v29, 0.0  ;;  %v2040_v8 = vadd.f32 %v2039_v30, %v2038_v21  ;;  %v7700_v30 = vpop.permute.xlu1 %1098 }
 0x1ff   :  { %v5597_v34 = vpop.eup %5596  ;;  %5600 = vrsqrt.f32 %v2437_v44  ;;  %v2346_v23 = vrot.slane %v2345_v61, 4  ;;  %v350_v32 = vrot.slane %v349_v59, 1  ;;  %v2035_v6 = vadd.f32 %v2034_v3, %v2033_v1 }
 0x200   :  { %v976_v14 = vmul.f32 %v5597_v34, %v7535_v41  ;;  %v977_v50 = vmul.f32 %v5597_v34, %v7538_v35  ;;  %v790_v58 = vrot.slane %v789_v47, 1  ;;  %v2342_v7 = vadd.f32 %v2341_v49, %v2340_v5  ;;  %5142 = vmatmul.mubr.msk.f32.gmra.mrb[4].mxu0 %vm1188_vm3, %v7506_v20  ;;  %v7739_v20 = vld [vmem:[%s9033_s0 + $0x1f0] sm:$0xff] }
 0x201   :  { %v2347_v60 = vadd.f32 %v2346_v23, %v2345_v61  ;;  %v351_v21 = vadd.f32 %v350_v32, %v349_v59  ;;  %v2036_v29 = vrot.slane %v2035_v6, 1  ;;  %v2041_v1 = vrot.slane %v2040_v8, 2  ;;  %v7717_v52 = vpop.permute.xlu0 %1100  ;;  %5144 = vmatprep.mubr.msk.f32.mxu0 %vm1188_vm3, %v7525_v57 }
 0x202   :  { %1164 = vrot.lane.b32.xlu0 %v976_v14, %s5731_s3  ;;  %1166 = vrot.lane.b32.xlu1 %v977_v50, %s5731_s3  ;;  %v791_v41 = vadd.f32 %v790_v58, %v789_v47  ;;  %v2343_v35 = vrot.slane %v2342_v7, 1  ;;  %v353_v5 = vsel %vm90_vm1, %v7696_v25, 0.0  ;;  %v2045_v32 = vsel %vm1834_vm0, %v7687_v13, 0.0 }
 0x203   :  { %v2348_v44 = vrot.slane %v2347_v60, 2  ;;  %v408_v59 = vmul.f32 0.0625, %v351_v21  ;;  %v2037_v3 = vadd.f32 %v2036_v29, %v2035_v6  ;;  %v2042_v49 = vadd.f32 %v2041_v1, %v2040_v8 }
 0x204   :  { %v855_v61 = vmul.f32 0.0625, %v791_v41  ;;  %v2344_v34 = vadd.f32 %v2343_v35, %v2342_v7  ;;  %v354_v23 = vadd.f32 %v353_v5, %v352_v38  ;;  %v7732_v38 = vpop.permute.xlu1 %1102  ;;  %5145 = vmatmul.mubr.msk.f32.gmra.mrb[6].mxu0 %vm1188_vm3, %v7540_v62 }
 0x205   :  { %v5599_v47 = vpop.eup %5598  ;;  %v2349_v50 = vadd.f32 %v2348_v44, %v2347_v60  ;;  %v7712_v6 = vsub.f32 %v7580_v0, %v408_v59  ;;  %v7715_v8 = vsub.f32 %v7601_v45, %v408_v59  ;;  %v2088_v21 = vmul.f32 0.125, %v2037_v3  ;;  %5147 = vmatprep.mubr.msk.f32.mxu0 %vm1188_vm3, %v7554_v4 }
 0x206   :  { %v7709_v14 = vmul.f32 %v5599_v47, %v7569_v18  ;;  %v887_v58 = vadd.f32 1e-05, %v855_v61  ;;  %v2406_v7 = vmul.f32 0.125, %v2344_v34  ;;  %v2043_v29 = vrot.slane %v2042_v49, 1  ;;  %v7746_v61 = vpop.f32.mrb[10].mxu1 }
 0x207   :  { %v2350_v26 = vrot.slane %v2349_v50, 1  ;;  %v532_v18 = vmul.f32 %v7712_v6, %v7712_v6  ;;  %v533_v60 = vmul.f32 %v7715_v8, %v7715_v8  ;;  %v355_v1 = vrot.slane %v354_v23, 4  ;;  %9144 = vst [vmem:[#allocation58_spill] sm:$0xff] %v7746_v61 }
 0x208   :  { %9142 = vst [vmem:[#allocation56_spill] sm:$0xff] %v7709_v14  ;;  %5319 = vmatprep.mubr.msk.f32.mxu1 %vm1834_vm0, %v7709_v14  ;;  %5602 = vrsqrt.f32 %v887_v58  ;;  %v2438_v45 = vadd.f32 1e-05, %v2406_v7  ;;  %v7728_v41 = vsub.f32 %v7580_v0, %v2088_v21  ;;  %v2044_v35 = vadd.f32 %v2043_v29, %v2042_v49  ;;  %v7752_v21 = vpop.f32.mrb[11].mxu1  ;;  %5148 = vmatmul.mubr.msk.f32.gmra.mrb[8].mxu0 %vm1188_vm3, %v7566_v42 }
 0x209   :  { %v5601_v5 = vpop.eup %5600  ;;  %v2351_v44 = vadd.f32 %v2350_v26, %v2349_v50  ;;  %v792_v59 = vsel %vm90_vm1, %v532_v18, 0.0  ;;  %v793_v3 = vsel %vm90_vm1, %v533_v60, 0.0  ;;  %v356_v47 = vadd.f32 %v355_v1, %v354_v23  ;;  %v7750_v23 = vpop.permute.xlu0 %1104  ;;  %9145 = vst [vmem:[#allocation59_spill] sm:$0xff] %v7752_v21  ;;  %5150 = vmatprep.mubr.msk.f32.mxu0 %vm1188_vm3, %v7575_v27 }
 0x20a   :  { %v7742_v0 = vmul.f32 %v5601_v5, %v7588_v31  ;;  %5604 = vrsqrt.f32 %v2438_v45  ;;  %v794_v49 = vadd.f32 %v793_v3, %v792_v59  ;;  %v2152_v57 = vmul.f32 %v7728_v41, %v7728_v41  ;;  %v7769_v59 = vld [vmem:[%s9033_s0 + $0x1e8] sm:$0xff] }
 0x20b   :  { %v2407_v34 = vmul.f32 0.125, %v2351_v44  ;;  %v2089_v50 = vmul.f32 0.125, %v2044_v35  ;;  %v357_v58 = vrot.slane %v356_v47, 2  ;;  %v2046_v7 = vrot.slane %v2045_v32, 4 }
 0x20c   :  { %9143 = vst [vmem:[#allocation57_spill] sm:$0xff] %v7742_v0  ;;  %5320 = vmatmul.mubr.msk.f32.gmra.mrb[56].mxu1 %vm1834_vm0, %v7742_v0  ;;  %v795_v31 = vrot.slane %v794_v49, 4  ;;  %v2352_v29 = vsel %vm1834_vm0, %v2152_v57, 0.0  ;;  %v2052_v26 = vsel %vm1834_vm0, %v7739_v20, 0.0  ;;  %v361_v18 = vsel %vm90_vm1, %v7687_v13, 0.0  ;;  %v7773_v57 = vpop.permute.xlu1 %1106  ;;  %5151 = vmatmul.mubr.msk.f32.gmra.mrb[10].mxu0 %vm1188_vm3, %v7590_v40 }
 0x20d   :  { %v2439_v62 = vadd.f32 1e-05, %v2407_v34  ;;  %v2353_v60 = vrot.slane %v2352_v29, 4  ;;  %v7764_v1 = vsub.f32 %v7661_v54, %v2089_v50  ;;  %v358_v45 = vadd.f32 %v357_v58, %v356_v47  ;;  %5153 = vmatprep.mubr.msk.f32.mxu0 %vm1188_vm3, %v7605_v36 }
 0x20e   :  { %v796_v35 = vadd.f32 %v795_v31, %v794_v49  ;;  %v2047_v5 = vadd.f32 %v2046_v7, %v2045_v32  ;;  %v2053_v44 = vrot.slane %v2052_v26, 4  ;;  %v362_v3 = vsel %vm90_vm1, %v7769_v59, 0.0 }
 0x20f   :  { %5606 = vrsqrt.f32 %v2439_v62  ;;  %v2354_v4 = vadd.f32 %v2353_v60, %v2352_v29  ;;  %v2153_v34 = vmul.f32 %v7764_v1, %v7764_v1  ;;  %v359_v50 = vrot.slane %v358_v45, 1  ;;  %v7786_v62 = vpop.permute.xlu0 %1108 }
 0x210   :  { %v797_v32 = vrot.slane %v796_v35, 2  ;;  %v2048_v47 = vrot.slane %v2047_v5, 2  ;;  %v2054_v49 = vadd.f32 %v2053_v44, %v2052_v26  ;;  %v363_v58 = vadd.f32 %v362_v3, %v361_v18  ;;  %5154 = vmatmul.mubr.msk.f32.gmra.mrb[12].mxu0 %vm1188_vm3, %v7614_v15 }
 0x211   :  { %v2355_v7 = vrot.slane %v2354_v4, 2  ;;  %v2359_v31 = vsel %vm1834_vm0, %v2153_v34, 0.0  ;;  %v360_v0 = vadd.f32 %v359_v50, %v358_v45  ;;  %v7784_v29 = vsel %vm90_vm1, %v7739_v20, 0.0  ;;  %5156 = vmatprep.mubr.msk.f32.mxu0 %vm1188_vm3, %v7622_v16 }
 0x212   :  { %v5603_v60 = vpop.eup %5602  ;;  %v798_v14 = vadd.f32 %v797_v32, %v796_v35  ;;  %v2360_v42 = vrot.slane %v2359_v31, 4  ;;  %v2049_v61 = vadd.f32 %v2048_v47, %v2047_v5  ;;  %v2055_v21 = vrot.slane %v2054_v49, 2  ;;  %v7794_v35 = vpop.permute.xlu1 %1110 }
 0x213   :  { %v978_v26 = vmul.f32 %v5603_v60, %v7609_v22  ;;  %v979_v18 = vmul.f32 %v5603_v60, %v7612_v2  ;;  %v2356_v27 = vadd.f32 %v2355_v7, %v2354_v4  ;;  %v409_v44 = vmul.f32 0.0625, %v360_v0 }
 0x214   :  { %v5605_v45 = vpop.eup %5604  ;;  %v799_v3 = vrot.slane %v798_v14, 1  ;;  %v2361_v34 = vadd.f32 %v2360_v42, %v2359_v31  ;;  %v2050_v50 = vrot.slane %v2049_v61, 1  ;;  %v2056_v28 = vadd.f32 %v2055_v21, %v2054_v49  ;;  %5157 = vmatmul.mubr.msk.f32.gmra.mrb[14].mxu0 %vm1188_vm3, %v7639_v19 }
 0x215   :  { %1168 = vrot.lane.b32.xlu0 %v978_v26, %s5731_s3  ;;  %1170 = vrot.lane.b32.xlu1 %v979_v18, %s5731_s3  ;;  %v7799_v22 = vmul.f32 %v5605_v45, %v7632_v39  ;;  %v2357_v2 = vrot.slane %v2356_v27, 1  ;;  %v7802_v40 = vsub.f32 %v7661_v54, %v409_v44  ;;  %v7805_v0 = vsub.f32 %v7696_v25, %v409_v44  ;;  %v7815_v54 = vpop.permute.xlu0 %1112 }
 0x216   :  { %v800_v21 = vadd.f32 %v799_v3, %v798_v14  ;;  %v2362_v5 = vrot.slane %v2361_v34, 2  ;;  %v2051_v4 = vadd.f32 %v2050_v50, %v2049_v61  ;;  %v2057_v36 = vrot.slane %v2056_v28, 1  ;;  %v7824_v3 = vpop.permute.xlu1 %1114  ;;  %5159 = vmatprep.mubr.msk.f32.mxu0 %vm1188_vm3, %v7653_v33 }
 0x217   :  { %5322 = vmatprep.mubr.msk.f32.mxu1 %vm1834_vm0, %v7799_v22  ;;  %v2358_v32 = vadd.f32 %v2357_v2, %v2356_v27  ;;  %v534_v47 = vmul.f32 %v7802_v40, %v7802_v40  ;;  %v535_v39 = vmul.f32 %v7805_v0, %v7805_v0  ;;  %v364_v49 = vrot.slane %v363_v58, 4  ;;  %v7836_v2 = vld [vmem:[%s9033_s0 + $0x1f8] sm:$0xff] }
 0x218   :  { %v856_v25 = vmul.f32 0.0625, %v800_v21  ;;  %v2363_v14 = vadd.f32 %v2362_v5, %v2361_v34  ;;  %v2090_v61 = vmul.f32 0.125, %v2051_v4  ;;  %v2058_v7 = vadd.f32 %v2057_v36, %v2056_v28  ;;  %5160 = vmatmul.mubr.msk.f32.gmra.mrb[16].mxu0 %vm1188_vm3, %v7670_v63 }
 0x219   :  { %v5607_v31 = vpop.eup %5606  ;;  %v2408_v60 = vmul.f32 0.125, %v2358_v32  ;;  %v801_v42 = vsel %vm90_vm1, %v534_v47, 0.0  ;;  %v802_v26 = vsel %vm90_vm1, %v535_v39, 0.0  ;;  %v365_v18 = vadd.f32 %v364_v49, %v363_v58  ;;  %v7847_v36 = vpop.permute.xlu0 %1116  ;;  %5162 = vmatprep.mubr.msk.f32.mxu0 %vm1188_vm3, %v7677_v24 }
 0x21a   :  { %v7822_v27 = vmul.f32 %v5607_v31, %v7656_v55  ;;  %v888_v15 = vadd.f32 1e-05, %v856_v25  ;;  %v2364_v44 = vrot.slane %v2363_v14, 1  ;;  %v803_v45 = vadd.f32 %v802_v26, %v801_v42  ;;  %v7849_v32 = vpop.f32.mrb[12].mxu1  ;;  %v7861_v26 = vpop.permute.xlu1 %1118 }
 0x21b   :  { %v2440_v34 = vadd.f32 1e-05, %v2408_v60  ;;  %v7827_v28 = vsub.f32 %v7687_v13, %v2090_v61  ;;  %v2091_v16 = vmul.f32 0.125, %v2058_v7  ;;  %v366_v50 = vrot.slane %v365_v18, 2  ;;  %v7857_v61 = vpop.f32.mrb[13].mxu1 }
 0x21c   :  { %5323 = vmatmul.mubr.msk.f32.gmra.mrb[58].mxu1 %vm1834_vm0, %v7822_v27  ;;  %5608 = vrsqrt.f32 %v888_v15  ;;  %v2365_v55 = vadd.f32 %v2364_v44, %v2363_v14  ;;  %v804_v58 = vrot.slane %v803_v45, 4  ;;  %v371_v21 = vsel %vm90_vm1, %v7836_v2, 0.0  ;;  %5163 = vmatmul.mubr.msk.f32.gmra.mrb[18].mxu0 %vm1188_vm3, %v7700_v30 }
 0x21d   :  { %5610 = vrsqrt.f32 %v2440_v34  ;;  %v2154_v19 = vmul.f32 %v7827_v28, %v7827_v28  ;;  %v7845_v5 = vsub.f32 %v7739_v20, %v2091_v16  ;;  %v367_v4 = vadd.f32 %v366_v50, %v365_v18  ;;  %v7866_v16 = vpop.permute.xlu0 %1120  ;;  %5165 = vmatprep.mubr.msk.f32.mxu0 %vm1188_vm3, %v7717_v52 }
 0x21e   :  { %v2409_v47 = vmul.f32 0.125, %v2365_v55  ;;  %v805_v39 = vadd.f32 %v804_v58, %v803_v45  ;;  %v372_v49 = vadd.f32 %v371_v21, %v7784_v29  ;;  %v7876_v30 = vpop.permute.xlu1 %1122 }
 0x21f   :  { %v2366_v25 = vsel %vm1834_vm0, %v2154_v19, 0.0  ;;  %v2155_v33 = vmul.f32 %v7845_v5, %v7845_v5  ;;  %v368_v14 = vrot.slane %v367_v4, 1 }
 0x220   :  { %v2441_v7 = vadd.f32 1e-05, %v2409_v47  ;;  %v806_v31 = vrot.slane %v805_v39, 2  ;;  %v2367_v60 = vrot.slane %v2366_v25, 4  ;;  %v373_v42 = vrot.slane %v372_v49, 4  ;;  %5166 = vmatmul.mubr.msk.f32.gmra.mrb[20].mxu0 %vm1188_vm3, %v7732_v38 }
 0x221   :  { %v2373_v29 = vsel %vm1834_vm0, %v2155_v33, 0.0  ;;  %v369_v18 = vadd.f32 %v368_v14, %v367_v4  ;;  %5168 = vmatprep.mubr.msk.f32.mxu0 %vm1188_vm3, %v7750_v23 }
 0x222   :  { %5612 = vrsqrt.f32 %v2441_v7  ;;  %v807_v15 = vadd.f32 %v806_v31, %v805_v39  ;;  %v2368_v44 = vadd.f32 %v2367_v60, %v2366_v25  ;;  %v2374_v45 = vrot.slane %v2373_v29, 4 }
 0x223   :  { %v410_v34 = vmul.f32 0.0625, %v369_v18  ;;  %v374_v63 = vadd.f32 %v373_v42, %v372_v49 }
 0x224   :  { %v808_v50 = vrot.slane %v807_v15, 1  ;;  %v2369_v55 = vrot.slane %v2368_v44, 2  ;;  %v2375_v58 = vadd.f32 %v2374_v45, %v2373_v29  ;;  %v7895_v29 = vpop.permute.xlu0 %1124  ;;  %5169 = vmatmul.mubr.msk.f32.gmra.mrb[22].mxu0 %vm1188_vm3, %v7773_v57 }
 0x225   :  { %v7871_v24 = vsub.f32 %v7687_v13, %v410_v34  ;;  %v7874_v21 = vsub.f32 %v7769_v59, %v410_v34  ;;  %v375_v19 = vrot.slane %v374_v63, 2  ;;  %5171 = vmatprep.mubr.msk.f32.mxu0 %vm1188_vm3, %v7786_v62 }
 0x226   :  { %v5609_v4 = vpop.eup %5608  ;;  %v809_v47 = vadd.f32 %v808_v50, %v807_v15  ;;  %v2370_v39 = vadd.f32 %v2369_v55, %v2368_v44  ;;  %v2376_v49 = vrot.slane %v2375_v58, 2 }
 0x227   :  { %v5611_v25 = vpop.eup %5610  ;;  %v980_v33 = vmul.f32 %v5609_v4, %v7712_v6  ;;  %v981_v14 = vmul.f32 %v5609_v4, %v7715_v8  ;;  %v536_v52 = vmul.f32 %v7871_v24, %v7871_v24  ;;  %v537_v13 = vmul.f32 %v7874_v21, %v7874_v21 }
 0x228   :  { %v7887_v59 = vmul.f32 %v5611_v25, %v7728_v41  ;;  %v857_v7 = vmul.f32 0.0625, %v809_v47  ;;  %v2371_v31 = vrot.slane %v2370_v39, 1  ;;  %v2377_v60 = vadd.f32 %v2376_v49, %v2375_v58  ;;  %5172 = vmatmul.mubr.msk.f32.gmra.mrb[24].mxu0 %vm1188_vm3, %v7794_v35  ;;  %v1129_v62 = vpop.permute.xlu0 %1128 }
 0x229   :  { %1172 = vrot.lane.b32.xlu0 %v980_v33, %s5731_s3  ;;  %1174 = vrot.lane.b32.xlu1 %v981_v14, %s5731_s3  ;;  %v810_v6 = vsel %vm90_vm1, %v536_v52, 0.0  ;;  %v811_v8 = vsel %vm90_vm1, %v537_v13, 0.0  ;;  %v376_v42 = vadd.f32 %v375_v19, %v374_v63  ;;  %v1127_v63 = vpop.permute.xlu1 %1126  ;;  %v7906_v19 = vpop.f32.mrb[14].mxu1 }
 0x22a   :  { %5325 = vmatprep.mubr.msk.f32.mxu1 %vm1834_vm0, %v7887_v59  ;;  %v889_v41 = vadd.f32 1e-05, %v857_v7  ;;  %v2372_v38 = vadd.f32 %v2371_v31, %v2370_v39  ;;  %v2378_v18 = vrot.slane %v2377_v60, 1  ;;  %v812_v15 = vadd.f32 %v811_v8, %v810_v6  ;;  %v7908_v49 = vpop.f32.mrb[15].mxu1  ;;  %5174 = vmatprep.mubr.msk.f32.mxu0 %vm1188_vm3, %v7815_v54 }
 0x22b   :  { %v377_v44 = vrot.slane %v376_v42, 1 }
 0x22c   :  { %v5613_v23 = vpop.eup %5612  ;;  %5614 = vrsqrt.f32 %v889_v41  ;;  %v2410_v45 = vmul.f32 0.125, %v2372_v38  ;;  %v2379_v34 = vadd.f32 %v2378_v18, %v2377_v60  ;;  %v813_v50 = vrot.slane %v812_v15, 4  ;;  %5175 = vmatmul.mubr.msk.f32.gmra.mrb[26].mxu0 %vm1188_vm3, %v7824_v3 }
 0x22d   :  { %v7904_v55 = vmul.f32 %v5613_v23, %v7764_v1  ;;  %v378_v58 = vadd.f32 %v377_v44, %v376_v42  ;;  %v1131_v13 = vpop.permute.xlu1 %1130  ;;  %5177 = vmatprep.mubr.msk.f32.mxu0 %vm1188_vm3, %v7847_v36 }
 0x22e   :  { %v2442_v4 = vadd.f32 1e-05, %v2410_v45  ;;  %v2411_v47 = vmul.f32 0.125, %v2379_v34  ;;  %v814_v39 = vadd.f32 %v813_v50, %v812_v15  ;;  %v7952_v45 = vpop.f32.mrb[16].mxu1 }
 0x22f   :  { %5326 = vmatmul.mubr.msk.f32.gmra.mrb[60].mxu1 %vm1834_vm0, %v7904_v55  ;;  %v411_v57 = vmul.f32 0.0625, %v378_v58  ;;  %v7954_v50 = vpop.f32.mrb[17].mxu1 }
 0x230   :  { %5616 = vrsqrt.f32 %v2442_v4  ;;  %v2443_v25 = vadd.f32 1e-05, %v2411_v47  ;;  %v815_v1 = vrot.slane %v814_v39, 2  ;;  %5178 = vmatmul.mubr.msk.f32.gmra.mrb[28].mxu0 %vm1188_vm3, %v7861_v26 }
 0x231   :  { %v7917_v33 = vsub.f32 %v7739_v20, %v411_v57  ;;  %v7920_v14 = vsub.f32 %v7836_v2, %v411_v57  ;;  %v1133_v2 = vpop.permute.xlu0 %1132  ;;  %5180 = vmatprep.mubr.msk.f32.mxu0 %vm1188_vm3, %v7866_v16  ;;  %v1135_v36 = vpop.permute.xlu1 %1134 }
 0x232   :  { %5618 = vrsqrt.f32 %v2443_v25  ;;  %v816_v52 = vadd.f32 %v815_v1, %v814_v39 }
 0x233   :  { %v538_v7 = vmul.f32 %v7917_v33, %v7917_v33  ;;  %v539_v35 = vmul.f32 %v7920_v14, %v7920_v14 }
 0x234   :  { %v817_v31 = vrot.slane %v816_v52, 1  ;;  %5181 = vmatmul.mubr.msk.f32.gmra.mrb[30].mxu0 %vm1188_vm3, %v7876_v30 }
 0x235   :  { %v819_v20 = vsel %vm90_vm1, %v538_v7, 0.0  ;;  %v820_v54 = vsel %vm90_vm1, %v539_v35, 0.0  ;;  %5183 = vmatprep.mubr.msk.f32.mxu0 %vm1188_vm3, %v7895_v29  ;;  %v1139_v34 = vpop.permute.xlu1 %1138 }
 0x236   :  { %v5615_v60 = vpop.eup %5614  ;;  %v818_v6 = vadd.f32 %v817_v31, %v816_v52  ;;  %v821_v8 = vadd.f32 %v820_v54, %v819_v20 }
 0x237   :  { %v982_v42 = vmul.f32 %v5615_v60, %v7802_v40  ;;  %v983_v41 = vmul.f32 %v5615_v60, %v7805_v0  ;;  %v1137_v0 = vpop.permute.xlu0 %1136 }
 0x238   :  { %v858_v3 = vmul.f32 0.0625, %v818_v6  ;;  %v822_v38 = vrot.slane %v821_v8, 4  ;;  %5184 = vmatmul.mubr.msk.f32.gmra.mrb[32].mxu0 %vm1188_vm3, %v1127_v63 }
 0x239   :  { %1176 = vrot.lane.b32.xlu0 %v982_v42, %s5731_s3  ;;  %1178 = vrot.lane.b32.xlu1 %v983_v41, %s5731_s3  ;;  %v1143_v4 = vpop.permute.xlu1 %1142 }
 0x23a   :  { %v5617_v18 = vpop.eup %5616  ;;  %v890_v15 = vadd.f32 1e-05, %v858_v3  ;;  %v823_v44 = vadd.f32 %v822_v38, %v821_v8  ;;  %5186 = vmatprep.mubr.msk.f32.mxu0 %vm1188_vm3, %v1129_v62  ;;  %v7968_v62 = vpop.f32.mrb[18].mxu1  ;;  %v8005_v38 = vld [vmem:[%s9036_s4] ss:$0 sm:$0xff] }
 0x23b   :  { %v7941_v40 = vmul.f32 %v5617_v18, %v7827_v28  ;;  %v1141_v29 = vpop.permute.xlu0 %1140  ;;  %v7970_v52 = vpop.f32.mrb[19].mxu1 }
 0x23c   :  { %v5619_v26 = vpop.eup %5618  ;;  %5620 = vrsqrt.f32 %v890_v15  ;;  %v824_v23 = vrot.slane %v823_v44, 2  ;;  %5187 = vmatmul.mubr.msk.f32.gmra.mrb[34].mxu0 %vm1188_vm3, %v1131_v13 }
 0x23d   :  { %5328 = vmatprep.mubr.msk.f32.mxu1 %vm1834_vm0, %v7941_v40  ;;  %v7950_v16 = vmul.f32 %v5619_v26, %v7845_v5  ;;  %5189 = vmatprep.mubr.msk.f32.mxu0 %vm1188_vm3, %v1133_v2  ;;  %v1147_v1 = vpop.permute.xlu1 %1146 }
 0x23e   :  { %v825_v28 = vadd.f32 %v824_v23, %v823_v44 }
 0x23f   :  { %5329 = vmatmul.mubr.msk.f32.gmra.mrb[62].mxu1 %vm1834_vm0, %v7950_v16  ;;  %v1145_v63 = vpop.permute.xlu0 %1144 }
 0x240   :  { %v826_v30 = vrot.slane %v825_v28, 1  ;;  %5190 = vmatmul.mubr.msk.f32.gmra.mrb[36].mxu0 %vm1188_vm3, %v1135_v36 }
 0x241   :  { %5192 = vmatprep.mubr.msk.f32.mxu0 %vm1188_vm3, %v1137_v0  ;;  %v1151_v7 = vpop.permute.xlu1 %1150 }
 0x242   :  { %v827_v58 = vadd.f32 %v826_v30, %v825_v28 }
 0x244   :  { %v859_v5 = vmul.f32 0.0625, %v827_v58  ;;  %5193 = vmatmul.mubr.msk.f32.gmra.mrb[38].mxu0 %vm1188_vm3, %v1139_v34 }
 0x245   :  { %5195 = vmatprep.mubr.msk.f32.mxu0 %vm1188_vm3, %v1141_v29  ;;  %v1155_v8 = vpop.permute.xlu1 %1154 }
 0x246   :  { %v5621_v47 = vpop.eup %5620  ;;  %v891_v39 = vadd.f32 1e-05, %v859_v5 }
 0x247   :  { %v984_v57 = vmul.f32 %v5621_v47, %v7871_v24  ;;  %v985_v25 = vmul.f32 %v5621_v47, %v7874_v21  ;;  %v1149_v24 = vpop.permute.xlu0 %1148  ;;  %v7974_v21 = vpop.f32.mrb[20].mxu1 }
 0x248   :  { %5622 = vrsqrt.f32 %v891_v39  ;;  %v7976_v13 = vpop.f32.mrb[21].mxu1  ;;  %5196 = vmatmul.mubr.msk.f32.gmra.mrb[40].mxu0 %vm1188_vm3, %v1143_v4 }
 0x249   :  { %1180 = vrot.lane.b32.xlu0 %v984_v57, %s5731_s3  ;;  %1182 = vrot.lane.b32.xlu1 %v985_v25, %s5731_s3  ;;  %v7980_v35 = vpop.f32.mrb[22].mxu1 }
 0x24a   :  { %5198 = vmatprep.mubr.msk.f32.mxu0 %vm1188_vm3, %v1145_v63  ;;  %v7982_v20 = vpop.f32.mrb[23].mxu1 }
 0x24b   :  { %v1153_v60 = vpop.permute.xlu0 %1152  ;;  %v7990_v6 = vpop.f32.mrb[24].mxu1 }
 0x24c   :  { %5199 = vmatmul.mubr.msk.f32.gmra.mrb[42].mxu0 %vm1188_vm3, %v1147_v1  ;;  %v7992_v42 = vpop.f32.mrb[25].mxu1 }
 0x24d   :  { %5201 = vmatprep.mubr.msk.f32.mxu0 %vm1188_vm3, %v1149_v24 }
 0x250   :  { %5202 = vmatmul.mubr.msk.f32.gmra.mrb[44].mxu0 %vm1188_vm3, %v1151_v7 }
 0x251   :  { %5204 = vmatprep.mubr.msk.f32.mxu0 %vm1188_vm3, %v1153_v60 }
 0x252   :  { %v5623_v31 = vpop.eup %5622 }
 0x253   :  { %v986_v54 = vmul.f32 %v5623_v31, %v7917_v33  ;;  %v987_v2 = vmul.f32 %v5623_v31, %v7920_v14  ;;  %v1157_v33 = vpop.permute.xlu0 %1156  ;;  %v7996_v14 = vpop.f32.mrb[26].mxu1 }
 0x254   :  { %v7998_v41 = vpop.f32.mrb[27].mxu1  ;;  %5205 = vmatmul.mubr.msk.f32.gmra.mrb[46].mxu0 %vm1188_vm3, %v1155_v8  ;;  %v1159_v3 = vpop.permute.xlu1 %1158 }
 0x255   :  { %1184 = vrot.lane.b32.xlu0 %v986_v54, %s5731_s3  ;;  %1186 = vrot.lane.b32.xlu1 %v987_v2, %s5731_s3  ;;  %v5277_v36 = vpop.f32.mrb[28].mxu1 }
 0x256   :  { %5207 = vmatprep.mubr.msk.f32.mxu0 %vm1188_vm3, %v1157_v33  ;;  %v3496_v18 = vadd.f32 %v5277_v36, %v8005_v38  ;;  %v3490_v15 = vpop.f32.mrb[29].mxu1 }
 0x257   :  { %v3491_v44 = vadd.f32 %v8005_v38, %v3490_v15  ;;  %v5280_v23 = vpop.f32.mrb[30].mxu1 }
 0x258   :  { %5208 = vmatmul.mubr.msk.f32.gmra.mrb[48].mxu0 %vm1188_vm3, %v1159_v3  ;;  %v3859_v0 = vadd.f32 1.0, %v3496_v18  ;;  %v3506_v34 = vadd.f32 %v5280_v23, %v8005_v38  ;;  %v3500_v30 = vpop.f32.mrb[31].mxu1 }
 0x259   :  { %v3858_v26 = vadd.f32 1.0, %v3491_v44  ;;  %v3501_v58 = vadd.f32 %v8005_v38, %v3500_v30  ;;  %v5285_v47 = vpop.f32.mrb[32].mxu1 }
 0x25a   :  { %v8011_v28 = vmul.f32 %v3859_v0, %v7904_v55  ;;  %v3861_v5 = vadd.f32 1.0, %v3506_v34  ;;  %v3677_v63 = vadd.f32 %v5285_v47, %v8005_v38  ;;  %v3671_v1 = vpop.f32.mrb[33].mxu1 }
 0x25b   :  { %v8015_v29 = vmul.f32 %v3858_v26, %v7887_v59  ;;  %v3860_v4 = vadd.f32 1.0, %v3501_v58  ;;  %v3672_v59 = vadd.f32 %v8005_v38, %v3671_v1  ;;  %v5288_v7 = vpop.f32.mrb[34].mxu1 }
 0x25c   :  { %v8019_v25 = vmul.f32 %v3861_v5, %v7950_v16  ;;  %v3895_v24 = vadd.f32 1.0, %v3677_v63  ;;  %v3687_v54 = vadd.f32 %v5288_v7, %v8005_v38  ;;  %v3681_v2 = vpop.f32.mrb[35].mxu1 }
 0x25d   :  { %v8024_v55 = vmul.f32 %v3860_v4, %v7941_v40  ;;  %v3894_v31 = vadd.f32 1.0, %v3672_v59  ;;  %v3682_v16 = vadd.f32 %v8005_v38, %v3681_v2  ;;  %v5291_v3 = vpop.f32.mrb[36].mxu1 }
 0x25e   :  { %v3927_v8 = vmul.f32 %v3895_v24, %v5941_v48  ;;  %v3897_v33 = vadd.f32 1.0, %v3687_v54  ;;  %v3697_v36 = vadd.f32 %v5291_v3, %v8005_v38  ;;  %v3691_v18 = vpop.f32.mrb[37].mxu1 }
 0x25f   :  { %v3926_v60 = vmul.f32 %v3894_v31, %v5938_v43  ;;  %v3896_v40 = vadd.f32 1.0, %v3682_v16  ;;  %v3692_v44 = vadd.f32 %v8005_v38, %v3691_v18  ;;  %v5294_v23 = vpop.f32.mrb[38].mxu1 }
 0x260   :  { %v3929_v0 = vmul.f32 %v3897_v33, %v5956_v10  ;;  %v3899_v26 = vadd.f32 1.0, %v3697_v36  ;;  %v3707_v48 = vadd.f32 %v5294_v23, %v8005_v38  ;;  %v3701_v34 = vpop.f32.mrb[39].mxu1 }
 0x261   :  { %5383 = vmatprep.mubr.msk.f32.mxu1 %vm1834_vm0, %v3926_v60  ;;  %v3928_v15 = vmul.f32 %v3896_v40, %v5951_v9  ;;  %v3898_v43 = vadd.f32 1.0, %v3692_v44  ;;  %v3702_v58 = vadd.f32 %v8005_v38, %v3701_v34 }
 0x262   :  { %5384 = vmatmul.mubr.msk.f32.vlgmr.msra.gmra.mrb[64].mxu1 %vm1834_vm0, %v3927_v8  ;;  %v3931_v10 = vmul.f32 %v3899_v26, %v6070_v17  ;;  %v3901_v4 = vadd.f32 1.0, %v3707_v48  ;;  %v9148_v26 = vld [vmem:[#allocation4_spill] sm:$0xff] }
 0x263   :  { %5386 = vmatprep.mubr.msk.f32.mxu1 %vm1834_vm0, %v3928_v15  ;;  %v3930_v30 = vmul.f32 %v3898_v43, %v6015_v12  ;;  %v3900_v47 = vadd.f32 1.0, %v3702_v58 }
 0x264   :  { %v3933_v59 = vmul.f32 %v3901_v4, %v6100_v46 }
 0x265   :  { %v3932_v63 = vmul.f32 %v3900_v47, %v6082_v11  ;;  %v9150_v47 = vld [vmem:[#allocation6_spill] sm:$0xff] }
 0x266   :  { %v1161_v39 = vpop.permute.xlu0 %1160  ;;  %v1163_v57 = vpop.permute.xlu1 %1162  ;;  %5387 = vmatmul.mubr.msk.f32.gmra.mrb[66].mxu1 %vm1834_vm0, %v3929_v0 }
 0x267   :  { %5210 = vmatprep.mubr.msk.f32.mxu0 %vm1188_vm3, %v1161_v39  ;;  %v5297_v39 = vpop.f32.mrb[40].mxu1  ;;  %5389 = vmatprep.mubr.msk.f32.mxu1 %vm1834_vm0, %v3930_v30 }
 0x268   :  { %5211 = vmatmul.mubr.msk.f32.gmra.mrb[50].mxu0 %vm1188_vm3, %v1163_v57  ;;  %v3717_v57 = vadd.f32 %v5297_v39, %v8005_v38  ;;  %v3711_v12 = vpop.f32.mrb[41].mxu1 }
 0x269   :  { %v3712_v1 = vadd.f32 %v8005_v38, %v3711_v12  ;;  %v5300_v7 = vpop.f32.mrb[42].mxu1 }
 0x26a   :  { %5390 = vmatmul.mubr.msk.f32.gmra.mrb[68].mxu1 %vm1834_vm0, %v3931_v10  ;;  %v3903_v24 = vadd.f32 1.0, %v3717_v57  ;;  %v3727_v31 = vadd.f32 %v5300_v7, %v8005_v38  ;;  %v3721_v54 = vpop.f32.mrb[43].mxu1  ;;  %v9149_v10 = vld [vmem:[#allocation5_spill] sm:$0xff] }
 0x26b   :  { %v3902_v17 = vadd.f32 1.0, %v3712_v1  ;;  %5392 = vmatprep.mubr.msk.f32.mxu1 %vm1834_vm0, %v3932_v63  ;;  %v3722_v16 = vadd.f32 %v8005_v38, %v3721_v54 }
 0x26c   :  { %v3935_v11 = vmul.f32 %v3903_v24, %v6139_v53  ;;  %v3905_v60 = vadd.f32 1.0, %v3727_v31  ;;  %v9147_v53 = vld [vmem:[#allocation3_spill] sm:$0xff] }
 0x26d   :  { %v3934_v2 = vmul.f32 %v3902_v17, %v6128_v51  ;;  %v3904_v8 = vadd.f32 1.0, %v3722_v16  ;;  %v9146_v51 = vld [vmem:[#allocation2_spill] sm:$0xff]  ;;  %v9151_v31 = vld [vmem:[#allocation7_spill] sm:$0xff] }
 0x26e   :  { %5393 = vmatmul.mubr.msk.f32.gmra.mrb[70].mxu1 %vm1834_vm0, %v3933_v59  ;;  %v3937_v18 = vmul.f32 %v3905_v60, %v9146_v51  ;;  %v9153_v51 = vld [vmem:[#allocation9_spill] sm:$0xff] }
 0x26f   :  { %5395 = vmatprep.mubr.msk.f32.mxu1 %vm1834_vm0, %v3934_v2  ;;  %v3936_v3 = vmul.f32 %v3904_v8, %v6188_v37  ;;  %v9152_v2 = vld [vmem:[#allocation8_spill] sm:$0xff] }
 0x272   :  { %5396 = vmatmul.mubr.msk.f32.gmra.mrb[72].mxu1 %vm1834_vm0, %v3935_v11 }
 0x273   :  { %5398 = vmatprep.mubr.msk.f32.mxu1 %vm1834_vm0, %v3936_v3 }
 0x274   :  { %v1165_v9 = vpop.permute.xlu0 %1164  ;;  %v1167_v5 = vpop.permute.xlu1 %1166 }
 0x275   :  { %5213 = vmatprep.mubr.msk.f32.mxu0 %vm1188_vm3, %v1165_v9  ;;  %v5303_v33 = vpop.f32.mrb[44].mxu1 }
 0x276   :  { %5214 = vmatmul.mubr.msk.f32.gmra.mrb[52].mxu0 %vm1188_vm3, %v1167_v5  ;;  %v3737_v46 = vadd.f32 %v5303_v33, %v8005_v38  ;;  %v3731_v40 = vpop.f32.mrb[45].mxu1  ;;  %5399 = vmatmul.mubr.msk.f32.gmra.mrb[74].mxu1 %vm1834_vm0, %v3937_v18 }
 0x277   :  { %v3732_v36 = vadd.f32 %v8005_v38, %v3731_v40 }
 0x278   :  { %v3907_v15 = vadd.f32 1.0, %v3737_v46 }
 0x279   :  { %v3906_v44 = vadd.f32 1.0, %v3732_v36 }
 0x27a   :  { %v3939_v43 = vmul.f32 %v3907_v15, %v9148_v26  ;;  %v9154_v15 = vld [vmem:[#allocation10_spill] sm:$0xff] }
 0x27b   :  { %v3938_v0 = vmul.f32 %v3906_v44, %v9147_v53 }
 0x27d   :  { %5401 = vmatprep.mubr.msk.f32.mxu1 %vm1834_vm0, %v3938_v0 }
 0x27e   :  { %5402 = vmatmul.mubr.msk.f32.gmra.mrb[76].mxu1 %vm1834_vm0, %v3939_v43 }
 0x285   :  { %v5306_v23 = vpop.f32.mrb[46].mxu1 }
 0x286   :  { %v3747_v37 = vadd.f32 %v5306_v23, %v8005_v38  ;;  %v3741_v48 = vpop.f32.mrb[47].mxu1 }
 0x287   :  { %v1169_v34 = vpop.permute.xlu0 %1168  ;;  %v1171_v30 = vpop.permute.xlu1 %1170  ;;  %v3742_v58 = vadd.f32 %v8005_v38, %v3741_v48 }
 0x288   :  { %5216 = vmatprep.mubr.msk.f32.mxu0 %vm1188_vm3, %v1169_v34  ;;  %v3909_v9 = vadd.f32 1.0, %v3747_v37 }
 0x289   :  { %5217 = vmatmul.mubr.msk.f32.gmra.mrb[54].mxu0 %vm1188_vm3, %v1171_v30  ;;  %v3908_v5 = vadd.f32 1.0, %v3742_v58  ;;  %v9155_v30 = vld [vmem:[#allocation11_spill] sm:$0xff] }
 0x28a   :  { %v3941_v39 = vmul.f32 %v3909_v9, %v9150_v47  ;;  %v9156_v9 = vld [vmem:[#allocation44_spill] sm:$0xff]  ;;  %v9158_v47 = vld [vmem:[#allocation43_spill] sm:$0xff] }
 0x28b   :  { %v3940_v4 = vmul.f32 %v3908_v5, %v9149_v10  ;;  %v3351_v5 = vadd.f32 %v8005_v38, %v9156_v9  ;;  %v9157_v10 = vld [vmem:[#allocation12_spill] sm:$0xff]  ;;  %v3391_v9 = vadd.f32 %v8005_v38, %v7647_v56 }
 0x28d   :  { %5404 = vmatprep.mubr.msk.f32.mxu1 %vm1834_vm0, %v3940_v4 }
 0x28e   :  { %5405 = vmatmul.mubr.msk.f32.gmra.mrb[78].mxu1 %vm1834_vm0, %v3941_v39  ;;  %v3356_v39 = vadd.f32 %v9158_v47, %v8005_v38 }
 0x299   :  { %v5309_v57 = vpop.f32.mrb[48].mxu1 }
 0x29a   :  { %v3757_v12 = vadd.f32 %v5309_v57, %v8005_v38  ;;  %v3751_v63 = vpop.f32.mrb[49].mxu1  ;;  %v3830_v57 = vadd.f32 1.0, %v3351_v5 }
 0x29b   :  { %v3752_v1 = vadd.f32 %v8005_v38, %v3751_v63  ;;  %v1173_v59 = vpop.permute.xlu0 %1172  ;;  %v1175_v24 = vpop.permute.xlu1 %1174 }
 0x29c   :  { %v3911_v17 = vadd.f32 1.0, %v3757_v12  ;;  %5219 = vmatprep.mubr.msk.f32.mxu0 %vm1188_vm3, %v1173_v59  ;;  %v9159_v12 = vld [vmem:[#allocation46_spill] sm:$0xff]  ;;  %v9160_v59 = vld [vmem:[#allocation45_spill] sm:$0xff] }
 0x29d   :  { %v3910_v7 = vadd.f32 1.0, %v3752_v1  ;;  %5220 = vmatmul.mubr.msk.f32.gmra.mrb[56].mxu0 %vm1188_vm3, %v1175_v24  ;;  %v3361_v63 = vadd.f32 %v8005_v38, %v9159_v12  ;;  %v3831_v1 = vadd.f32 1.0, %v3356_v39  ;;  %v3366_v24 = vadd.f32 %v9160_v59, %v8005_v38  ;;  %v9170_v39 = vld [vmem:[#allocation28_spill] sm:$0xff] }
 0x29e   :  { %v3943_v16 = vmul.f32 %v3911_v17, %v9152_v2 }
 0x29f   :  { %v3942_v54 = vmul.f32 %v3910_v7, %v9151_v31  ;;  %v9161_v31 = vld [vmem:[#allocation24_spill] sm:$0xff]  ;;  %v3832_v2 = vadd.f32 1.0, %v3361_v63  ;;  %v9171_v63 = vld [vmem:[#allocation54_spill] sm:$0xff] }
 0x2a1   :  { %5407 = vmatprep.mubr.msk.f32.mxu1 %vm1834_vm0, %v3942_v54  ;;  %v3862_v54 = vmul.f32 %v3830_v57, %v9161_v31 }
 0x2a2   :  { %5408 = vmatmul.mubr.msk.f32.gmra.mrb[80].mxu1 %vm1834_vm0, %v3943_v16  ;;  %v9162_v16 = vld [vmem:[#allocation48_spill] sm:$0xff] }
 0x2a9   :  { %v5312_v11 = vpop.f32.mrb[50].mxu1 }
 0x2aa   :  { %v3767_v60 = vadd.f32 %v5312_v11, %v8005_v38  ;;  %v3761_v8 = vpop.f32.mrb[51].mxu1  ;;  %v3371_v11 = vadd.f32 %v8005_v38, %v9162_v16  ;;  %v9175_v16 = vld [vmem:[#allocation14_spill] sm:$0xff] }
 0x2ab   :  { %v1177_v33 = vpop.permute.xlu0 %1176  ;;  %v1179_v46 = vpop.permute.xlu1 %1178  ;;  %v3762_v40 = vadd.f32 %v8005_v38, %v3761_v8 }
 0x2ac   :  { %5222 = vmatprep.mubr.msk.f32.mxu0 %vm1188_vm3, %v1177_v33  ;;  %v3913_v3 = vadd.f32 1.0, %v3767_v60  ;;  %v9163_v60 = vld [vmem:[#allocation19_spill] sm:$0xff]  ;;  %v3833_v33 = vadd.f32 1.0, %v3366_v24  ;;  %v9172_v24 = vld [vmem:[#allocation29_spill] sm:$0xff] }
 0x2ad   :  { %5223 = vmatmul.mubr.msk.f32.gmra.mrb[58].mxu0 %vm1188_vm3, %v1179_v46  ;;  %v3912_v36 = vadd.f32 1.0, %v3762_v40  ;;  %v3863_v8 = vmul.f32 %v3831_v1, %v9163_v60  ;;  %v9164_v46 = vld [vmem:[#allocation47_spill] sm:$0xff]  ;;  %v3396_v1 = vadd.f32 %v9171_v63, %v8005_v38 }
 0x2ae   :  { %v3945_v44 = vmul.f32 %v3913_v3, %v9154_v15  ;;  %v3376_v40 = vadd.f32 %v9164_v46, %v8005_v38  ;;  %v9165_v3 = vld [vmem:[#allocation25_spill] sm:$0xff] }
 0x2af   :  { %v3944_v18 = vmul.f32 %v3912_v36, %v9153_v51  ;;  %v3864_v36 = vmul.f32 %v3832_v2, %v9165_v3  ;;  %v3834_v51 = vadd.f32 1.0, %v3371_v11  ;;  %v3839_v46 = vadd.f32 1.0, %v3396_v1 }
 0x2b1   :  { %5410 = vmatprep.mubr.msk.f32.mxu1 %vm1834_vm0, %v3944_v18  ;;  %v9166_v18 = vld [vmem:[#allocation52_spill] sm:$0xff] }
 0x2b2   :  { %5411 = vmatmul.mubr.msk.f32.gmra.mrb[82].mxu1 %vm1834_vm0, %v3945_v44  ;;  %v3381_v15 = vadd.f32 %v8005_v38, %v9166_v18 }
 0x2ba   :  { %v5315_v53 = vpop.f32.mrb[52].mxu1 }
 0x2bb   :  { %v3777_v0 = vadd.f32 %v5315_v53, %v8005_v38  ;;  %v3771_v26 = vpop.f32.mrb[53].mxu1  ;;  %v1181_v43 = vpop.permute.xlu0 %1180  ;;  %v9167_v53 = vld [vmem:[#allocation26_spill] sm:$0xff] }
 0x2bc   :  { %v1183_v23 = vpop.permute.xlu1 %1182  ;;  %v3772_v37 = vadd.f32 %v8005_v38, %v3771_v26  ;;  %5225 = vmatprep.mubr.msk.f32.mxu0 %vm1188_vm3, %v1181_v43  ;;  %v3835_v26 = vadd.f32 1.0, %v3376_v40  ;;  %v9168_v43 = vld [vmem:[#allocation51_spill] sm:$0xff]  ;;  %v9177_v40 = vld [vmem:[#allocation58_spill] sm:$0xff] }
 0x2bd   :  { %v3915_v48 = vadd.f32 1.0, %v3777_v0  ;;  %5226 = vmatmul.mubr.msk.f32.gmra.mrb[60].mxu0 %vm1188_vm3, %v1183_v23  ;;  %v3865_v0 = vmul.f32 %v3833_v33, %v9167_v53  ;;  %v3386_v23 = vadd.f32 %v9168_v43, %v8005_v38  ;;  %v3406_v3 = vadd.f32 %v9177_v40, %v8005_v38  ;;  %v9185_v40 = vld [vmem:[#allocation15_spill] sm:$0xff] }
 0x2be   :  { %v3914_v34 = vadd.f32 1.0, %v3772_v37  ;;  %v3867_v57 = vmul.f32 %v3835_v26, %v9170_v39 }
 0x2bf   :  { %v3947_v4 = vmul.f32 %v3915_v48, %v9157_v10  ;;  %v3837_v12 = vadd.f32 1.0, %v3386_v23  ;;  %v3841_v43 = vadd.f32 1.0, %v3406_v3  ;;  %v3416_v23 = vadd.f32 %v7849_v32, %v8005_v38 }
 0x2c0   :  { %v3946_v58 = vmul.f32 %v3914_v34, %v9155_v30  ;;  %v9169_v34 = vld [vmem:[#allocation27_spill] sm:$0xff]  ;;  %v3426_v32 = vadd.f32 %v7906_v19, %v8005_v38 }
 0x2c1   :  { %v3866_v30 = vmul.f32 %v3834_v51, %v9169_v34  ;;  %v9178_v51 = vld [vmem:[#allocation31_spill] sm:$0xff] }
 0x2c2   :  { %5413 = vmatprep.mubr.msk.f32.mxu1 %vm1834_vm0, %v3946_v58  ;;  %v3836_v58 = vadd.f32 1.0, %v3381_v15 }
 0x2c3   :  { %5414 = vmatmul.mubr.msk.f32.gmra.mrb[84].mxu1 %vm1834_vm0, %v3947_v4 }
 0x2c4   :  { %v3868_v56 = vmul.f32 %v3836_v58, %v9172_v24 }
 0x2c7   :  { %v1185_v17 = vpop.permute.xlu0 %1184  ;;  %v1187_v7 = vpop.permute.xlu1 %1186 }
 0x2c8   :  { %5228 = vmatprep.mubr.msk.f32.mxu0 %vm1188_vm3, %v1185_v17  ;;  %v3838_v17 = vadd.f32 1.0, %v3391_v9  ;;  %v9181_v9 = vld [vmem:[#allocation34_spill] sm:$0xff] }
 0x2c9   :  { %5229 = vmatmul.mubr.msk.f32.gmra.mrb[62].mxu0 %vm1188_vm3, %v1187_v7  ;;  %v9173_v7 = vld [vmem:[#allocation59_spill] sm:$0xff] }
 0x2ca   :  { %5333 = vmatprep.mubr.msk.f32.mxu0 %vm1834_vm0, %v3862_v54  ;;  %v3401_v31 = vadd.f32 %v8005_v38, %v9173_v7  ;;  %v9174_v54 = vld [vmem:[#allocation13_spill] sm:$0xff]  ;;  %v3870_v18 = vmul.f32 %v3838_v17, %v9178_v51  ;;  %v9183_v7 = vld [vmem:[#allocation36_spill] sm:$0xff] }
 0x2cb   :  { %v8134_v47 = vpop.f32.mrb[0].mxu0  ;;  %v9186_v51 = vld [vmem:[#allocation16_spill] sm:$0xff] }
 0x2cc   :  { %v8139_v59 = vpop.f32.mrb[1].mxu0  ;;  %v3840_v15 = vadd.f32 1.0, %v3401_v31 }
 0x2cd   :  { %5334 = vmatmul.mubr.msk.f32.vlgmr.msra.gmra.mrb[64].mxu0 %vm1834_vm0, %v3863_v8  ;;  %v9176_v8 = vld [vmem:[#allocation30_spill] sm:$0xff] }
 0x2ce   :  { %5336 = vmatprep.mubr.msk.f32.mxu0 %vm1834_vm0, %v3864_v36  ;;  %v5318_v44 = vpop.f32.mrb[54].mxu1  ;;  %v3869_v33 = vmul.f32 %v3837_v12, %v9176_v8 }
 0x2cf   :  { %v3787_v37 = vadd.f32 %v5318_v44, %v8005_v38  ;;  %v3781_v48 = vpop.f32.mrb[55].mxu1  ;;  %v8149_v60 = vpop.f32.mrb[2].mxu0  ;;  %v3411_v44 = vadd.f32 %v8005_v38, %v7857_v61  ;;  %v3421_v61 = vadd.f32 %v8005_v38, %v7908_v49  ;;  %v3431_v49 = vadd.f32 %v8005_v38, %v7954_v50 }
 0x2d0   :  { %v3782_v5 = vadd.f32 %v8005_v38, %v3781_v48  ;;  %v8155_v36 = vpop.f32.mrb[3].mxu0  ;;  %v9180_v48 = vld [vmem:[#allocation33_spill] sm:$0xff] }
 0x2d1   :  { %5337 = vmatmul.mubr.msk.f32.gmra.mrb[66].mxu0 %vm1834_vm0, %v3865_v0  ;;  %v3917_v10 = vadd.f32 1.0, %v3787_v37  ;;  %v9179_v0 = vld [vmem:[#allocation32_spill] sm:$0xff]  ;;  %v3872_v34 = vmul.f32 %v3840_v15, %v9180_v48  ;;  %v3844_v63 = vadd.f32 1.0, %v3421_v61 }
 0x2d2   :  { %5339 = vmatprep.mubr.msk.f32.mxu0 %vm1834_vm0, %v3866_v30  ;;  %v3916_v4 = vadd.f32 1.0, %v3782_v5  ;;  %v3871_v26 = vmul.f32 %v3839_v46, %v9179_v0  ;;  %v3842_v30 = vadd.f32 1.0, %v3411_v44  ;;  %v3873_v5 = vmul.f32 %v3841_v43, %v9181_v9  ;;  %v9189_v61 = vld [vmem:[#allocation40_spill] sm:$0xff] }
 0x2d3   :  { %v3949_v11 = vmul.f32 %v3917_v10, %v9175_v16  ;;  %v8162_v53 = vpop.f32.mrb[4].mxu0  ;;  %v3843_v10 = vadd.f32 1.0, %v3416_v23  ;;  %v3441_v46 = vadd.f32 %v8005_v38, %v7970_v52  ;;  %v9188_v52 = vld [vmem:[#allocation39_spill] sm:$0xff] }
 0x2d4   :  { %v3948_v2 = vmul.f32 %v3916_v4, %v9174_v54  ;;  %v8167_v37 = vpop.f32.mrb[5].mxu0  ;;  %v3845_v54 = vadd.f32 1.0, %v3426_v32  ;;  %v9190_v32 = vld [vmem:[#allocation41_spill] sm:$0xff] }
 0x2d5   :  { %5340 = vmatmul.mubr.msk.f32.gmra.mrb[68].mxu0 %vm1834_vm0, %v3867_v57  ;;  %v9182_v57 = vld [vmem:[#allocation35_spill] sm:$0xff]  ;;  %v3875_v31 = vmul.f32 %v3843_v10, %v9183_v7  ;;  %v3848_v48 = vadd.f32 1.0, %v3441_v46 }
 0x2d6   :  { %5342 = vmatprep.mubr.msk.f32.mxu0 %vm1834_vm0, %v3868_v56  ;;  %5416 = vmatprep.mubr.msk.f32.mxu1 %vm1834_vm0, %v3948_v2  ;;  %v3874_v12 = vmul.f32 %v3842_v30, %v9182_v57  ;;  %v3436_v2 = vadd.f32 %v7952_v45, %v8005_v38  ;;  %v9187_v45 = vld [vmem:[#allocation38_spill] sm:$0xff] }
 0x2d7   :  { %5417 = vmatmul.mubr.msk.f32.gmra.mrb[86].mxu1 %vm1834_vm0, %v3949_v11  ;;  %v8174_v58 = vpop.f32.mrb[6].mxu0  ;;  %v9184_v11 = vld [vmem:[#allocation37_spill] sm:$0xff]  ;;  %v3877_v44 = vmul.f32 %v3845_v54, %v9187_v45 }
 0x2d8   :  { %v8179_v39 = vpop.f32.mrb[7].mxu0  ;;  %v3876_v8 = vmul.f32 %v3844_v63, %v9184_v11  ;;  %v3847_v0 = vadd.f32 1.0, %v3436_v2  ;;  %v9191_v63 = vld [vmem:[#allocation42_spill] sm:$0xff] }
 0x2d9   :  { %5343 = vmatmul.mubr.msk.f32.gmra.mrb[70].mxu0 %vm1834_vm0, %v3869_v33  ;;  %v3846_v33 = vadd.f32 1.0, %v3431_v49 }
 0x2da   :  { %5345 = vmatprep.mubr.msk.f32.mxu0 %vm1834_vm0, %v3870_v18 }
 0x2db   :  { %v8188_v19 = vpop.f32.mrb[8].mxu0  ;;  %v3878_v23 = vmul.f32 %v3846_v33, %v9188_v52  ;;  %v9196_v52 = vld [vmem:[#allocation18_spill] sm:$0xff] }
 0x2dc   :  { %v8193_v50 = vpop.f32.mrb[9].mxu0 }
 0x2dd   :  { %5346 = vmatmul.mubr.msk.f32.gmra.mrb[72].mxu0 %vm1834_vm0, %v3871_v26  ;;  %v3446_v26 = vadd.f32 %v7968_v62, %v8005_v38  ;;  %v3879_v62 = vmul.f32 %v3847_v0, %v9189_v61  ;;  %v9195_v0 = vld [vmem:[#allocation17_spill] sm:$0xff] }
 0x2de   :  { %5348 = vmatprep.mubr.msk.f32.mxu0 %vm1834_vm0, %v3872_v34  ;;  %v3451_v34 = vadd.f32 %v8005_v38, %v7976_v13  ;;  %v3461_v13 = vadd.f32 %v8005_v38, %v7982_v20  ;;  %v3471_v20 = vadd.f32 %v8005_v38, %v7992_v42 }
 0x2df   :  { %v5321_v4 = vpop.f32.mrb[56].mxu1  ;;  %v8202_v15 = vpop.f32.mrb[10].mxu0  ;;  %v3849_v9 = vadd.f32 1.0, %v3446_v26 }
 0x2e0   :  { %v3797_v1 = vadd.f32 %v5321_v4, %v8005_v38  ;;  %v3791_v24 = vpop.f32.mrb[57].mxu1  ;;  %v8208_v43 = vpop.f32.mrb[11].mxu0  ;;  %v3880_v4 = vmul.f32 %v3848_v48, %v9190_v32  ;;  %v3850_v57 = vadd.f32 1.0, %v3451_v34  ;;  %v3854_v45 = vadd.f32 1.0, %v3471_v20 }
 0x2e1   :  { %5349 = vmatmul.mubr.msk.f32.gmra.mrb[74].mxu0 %vm1834_vm0, %v3873_v5  ;;  %v3792_v56 = vadd.f32 %v8005_v38, %v3791_v24  ;;  %v3456_v5 = vadd.f32 %v7974_v21, %v8005_v38  ;;  %v3881_v49 = vmul.f32 %v3849_v9, %v9191_v63  ;;  %v3466_v21 = vadd.f32 %v7980_v35, %v8005_v38 }
 0x2e2   :  { %5351 = vmatprep.mubr.msk.f32.mxu0 %vm1834_vm0, %v3874_v12  ;;  %v3919_v17 = vadd.f32 1.0, %v3797_v1 }
 0x2e3   :  { %v3918_v16 = vadd.f32 1.0, %v3792_v56  ;;  %v8216_v30 = vpop.f32.mrb[12].mxu0  ;;  %v3851_v1 = vadd.f32 1.0, %v3456_v5  ;;  %v3853_v46 = vadd.f32 1.0, %v3466_v21 }
 0x2e4   :  { %v3951_v18 = vmul.f32 %v3919_v17, %v9186_v51  ;;  %v8221_v10 = vpop.f32.mrb[13].mxu0  ;;  %v9192_v17 = vld [vmem:[#allocation49_spill] sm:$0xff] }
 0x2e5   :  { %5352 = vmatmul.mubr.msk.f32.gmra.mrb[76].mxu0 %vm1834_vm0, %v3875_v31  ;;  %v3950_v3 = vmul.f32 %v3918_v16, %v9185_v40  ;;  %v3882_v7 = vmul.f32 %v3850_v57, %v9192_v17  ;;  %v3852_v31 = vadd.f32 1.0, %v3461_v13  ;;  %v3476_v40 = vadd.f32 %v7990_v6, %v8005_v38  ;;  %v9194_v51 = vld [vmem:[#allocation53_spill] sm:$0xff]  ;;  %v9197_v6 = vld [vmem:[#allocation55_spill] sm:$0xff] }
 0x2e6   :  { %5354 = vmatprep.mubr.msk.f32.mxu0 %vm1834_vm0, %v3876_v8  ;;  %v9193_v8 = vld [vmem:[#allocation50_spill] sm:$0xff]  ;;  %v3885_v34 = vmul.f32 %v3853_v46, %v9197_v6  ;;  %v9199_v57 = vld [vmem:[#allocation57_spill] sm:$0xff] }
 0x2e7   :  { %5419 = vmatprep.mubr.msk.f32.mxu1 %vm1834_vm0, %v3950_v3  ;;  %v8228_v12 = vpop.f32.mrb[14].mxu0  ;;  %v3883_v33 = vmul.f32 %v3851_v1, %v9193_v8  ;;  %v3855_v61 = vadd.f32 1.0, %v3476_v40 }
 0x2e8   :  { %5420 = vmatmul.mubr.msk.f32.gmra.mrb[88].mxu1 %vm1834_vm0, %v3951_v18  ;;  %v8233_v56 = vpop.f32.mrb[15].mxu0  ;;  %v3884_v18 = vmul.f32 %v3852_v31, %v9194_v51 }
 0x2e9   :  { %5355 = vmatmul.mubr.msk.f32.gmra.mrb[78].mxu0 %vm1834_vm0, %v3877_v44  ;;  %v3481_v44 = vadd.f32 %v8005_v38, %v7998_v41  ;;  %v9198_v41 = vld [vmem:[#allocation56_spill] sm:$0xff]  ;;  %v3887_v13 = vmul.f32 %v3855_v61, %v9199_v57 }
 0x2ea   :  { %5357 = vmatprep.mubr.msk.f32.mxu0 %vm1834_vm0, %v3878_v23  ;;  %v3886_v5 = vmul.f32 %v3854_v45, %v9198_v41 }
 0x2eb   :  { %v8242_v35 = vpop.f32.mrb[16].mxu0  ;;  %v3856_v32 = vadd.f32 1.0, %v3481_v44 }
 0x2ec   :  { %v8247_v42 = vpop.f32.mrb[17].mxu0 }
 0x2ed   :  { %5358 = vmatmul.mubr.msk.f32.gmra.mrb[80].mxu0 %vm1834_vm0, %v3879_v62  ;;  %v3486_v62 = vadd.f32 %v7996_v14, %v8005_v38  ;;  %v3888_v14 = vmul.f32 %v3856_v32, %v7799_v22 }
 0x2ee   :  { %5360 = vmatprep.mubr.msk.f32.mxu0 %vm1834_vm0, %v3880_v4 }
 0x2ef   :  { %v5324_v24 = vpop.f32.mrb[58].mxu1  ;;  %v8256_v48 = vpop.f32.mrb[18].mxu0  ;;  %v3857_v63 = vadd.f32 1.0, %v3486_v62  ;;  %v9203_v62 = vld [vmem:[#allocation23_spill] sm:$0xff] }
 0x2f0   :  { %v3807_v54 = vadd.f32 %v5324_v24, %v8005_v38  ;;  %v3801_v2 = vpop.f32.mrb[59].mxu1  ;;  %v8262_v9 = vpop.f32.mrb[19].mxu0 }
 0x2f1   :  { %5361 = vmatmul.mubr.msk.f32.gmra.mrb[82].mxu0 %vm1834_vm0, %v3881_v49  ;;  %v3802_v16 = vadd.f32 %v8005_v38, %v3801_v2  ;;  %v3889_v21 = vmul.f32 %v3857_v63, %v7822_v27 }
 0x2f2   :  { %5363 = vmatprep.mubr.msk.f32.mxu0 %vm1834_vm0, %v3882_v7  ;;  %v3921_v11 = vadd.f32 1.0, %v3807_v54 }
 0x2f3   :  { %v3920_v3 = vadd.f32 1.0, %v3802_v16  ;;  %v8268_v4 = vpop.f32.mrb[20].mxu0 }
 0x2f4   :  { %v3953_v23 = vmul.f32 %v3921_v11, %v9196_v52  ;;  %v8271_v49 = vpop.f32.mrb[21].mxu0  ;;  %v9200_v11 = vld [vmem:[#allocation20_spill] sm:$0xff] }
 0x2f5   :  { %5364 = vmatmul.mubr.msk.f32.gmra.mrb[84].mxu0 %vm1834_vm0, %v3883_v33  ;;  %v3952_v26 = vmul.f32 %v3920_v3, %v9195_v0  ;;  %v9201_v33 = vld [vmem:[#allocation21_spill] sm:$0xff] }
 0x2f6   :  { %5366 = vmatprep.mubr.msk.f32.mxu0 %vm1834_vm0, %v3884_v18 }
 0x2f7   :  { %5422 = vmatprep.mubr.msk.f32.mxu1 %vm1834_vm0, %v3952_v26  ;;  %v8276_v1 = vpop.f32.mrb[22].mxu0 }
 0x2f8   :  { %5423 = vmatmul.mubr.msk.f32.gmra.mrb[90].mxu1 %vm1834_vm0, %v3953_v23  ;;  %v8279_v24 = vpop.f32.mrb[23].mxu0 }
 0x2f9   :  { %5367 = vmatmul.mubr.msk.f32.gmra.mrb[86].mxu0 %vm1834_vm0, %v3885_v34  ;;  %v9202_v34 = vld [vmem:[#allocation22_spill] sm:$0xff] }
 0x2fa   :  { %5369 = vmatprep.mubr.msk.f32.mxu0 %vm1834_vm0, %v3886_v5 }
 0x2fb   :  { %v8284_v7 = vpop.f32.mrb[24].mxu0 }
 0x2fc   :  { %v8287_v20 = vpop.f32.mrb[25].mxu0 }
 0x2fd   :  { %5370 = vmatmul.mubr.msk.f32.gmra.mrb[88].mxu0 %vm1834_vm0, %v3887_v13 }
 0x2fe   :  { %5372 = vmatprep.mubr.msk.f32.mxu0 %vm1834_vm0, %v3888_v14 }
 0x2ff   :  { %v8294_v16 = vpop.f32.mrb[26].mxu0 }
 0x301   :  { %5373 = vmatmul.mubr.msk.f32.gmra.mrb[90].mxu0 %vm1834_vm0, %v3889_v21 }
 0x302   :  { %5375 = vmatprep.mubr.msk.f32.mxu0 %vm1834_vm0, %v8015_v29  ;;  %v5327_v17 = vpop.f32.mrb[60].mxu1  ;;  %v8296_v29 = vpop.f32.mrb[27].mxu0 }
 0x303   :  { %v3817_v22 = vadd.f32 %v5327_v17, %v8005_v38  ;;  %v3811_v31 = vpop.f32.mrb[61].mxu1  ;;  %v8303_v40 = vpop.f32.mrb[28].mxu0 }
 0x304   :  { %v3812_v54 = vadd.f32 %v8005_v38, %v3811_v31 }
 0x305   :  { %5376 = vmatmul.mubr.msk.f32.gmra.mrb[92].mxu0 %vm1834_vm0, %v8011_v28  ;;  %v3923_v27 = vadd.f32 1.0, %v3817_v22  ;;  %v8306_v28 = vpop.f32.mrb[29].mxu0 }
 0x306   :  { %5378 = vmatprep.mubr.msk.f32.mxu0 %vm1834_vm0, %v8024_v55  ;;  %v3922_v2 = vadd.f32 1.0, %v3812_v54 }
 0x307   :  { %v3955_v46 = vmul.f32 %v3923_v27, %v9201_v33  ;;  %v8308_v55 = vpop.f32.mrb[30].mxu0 }
 0x308   :  { %v3954_v8 = vmul.f32 %v3922_v2, %v9200_v11  ;;  %v8310_v3 = vpop.f32.mrb[31].mxu0  ;;  %v8357_v11 = vld [vmem:[%s9037_s2] ss:$0 sm:$0xff] }
 0x309   :  { %5379 = vmatmul.mubr.msk.f32.gmra.mrb[94].mxu0 %vm1834_vm0, %v8019_v25 }
 0x30a   :  { %5425 = vmatprep.mubr.msk.f32.mxu1 %vm1834_vm0, %v3954_v8  ;;  %v1403_v8 = vadd.f32 %v8149_v60, %v8357_v11 }
 0x30b   :  { %5426 = vmatmul.mubr.msk.f32.gmra.mrb[92].mxu1 %vm1834_vm0, %v3955_v46  ;;  %v8312_v18 = vpop.f32.mrb[32].mxu0  ;;  %v1393_v46 = vadd.f32 %v8134_v47, %v8357_v11  ;;  %v5667_v47 = vld [vmem:[%s9033_s0 + $0x18] sm:$0xff] }
 0x30c   :  { %v8315_v44 = vpop.f32.mrb[33].mxu0 }
 0x30f   :  { %v8318_v23 = vpop.f32.mrb[34].mxu0 }
 0x310   :  { %v8320_v6 = vpop.f32.mrb[35].mxu0 }
 0x312   :  { %v5330_v51 = vpop.f32.mrb[62].mxu1 }
 0x313   :  { %v3827_v45 = vadd.f32 %v5330_v51, %v8005_v38  ;;  %v3821_v25 = vpop.f32.mrb[63].mxu1  ;;  %v8325_v5 = vpop.f32.mrb[36].mxu0 }
 0x314   :  { %v3822_v0 = vadd.f32 %v8005_v38, %v3821_v25  ;;  %v8328_v32 = vpop.f32.mrb[37].mxu0  ;;  %v1423_v25 = vadd.f32 %v8174_v58, %v8357_v11 }
 0x315   :  { %v3925_v26 = vadd.f32 1.0, %v3827_v45  ;;  %v1709_v45 = vadd.f32 1.0, %v1403_v8 }
 0x316   :  { %v3924_v52 = vadd.f32 1.0, %v3822_v0  ;;  %v1707_v0 = vadd.f32 1.0, %v1393_v46 }
 0x317   :  { %v3957_v41 = vmul.f32 %v3925_v26, %v9203_v62  ;;  %v8330_v57 = vpop.f32.mrb[38].mxu0  ;;  %v1413_v26 = vadd.f32 %v8162_v53, %v8357_v11  ;;  %v1443_v62 = vadd.f32 %v8202_v15, %v8357_v11  ;;  %v5668_v53 = vld [vmem:[%s9033_s0 + $0x8] sm:$0xff]  ;;  %v5669_v15 = vld [vmem:[%s9033_s0 + $0x38] sm:$0xff] }
 0x318   :  { %v3956_v61 = vmul.f32 %v3924_v52, %v9202_v34  ;;  %v8332_v38 = vpop.f32.mrb[39].mxu0  ;;  %v8374_v52 = vld [vmem:[%s9038_s6] ss:$0 sm:$0xff]  ;;  %v1773_v34 = vmul.f32 %v5667_v47, %v1709_v45  ;;  %v1771_v8 = vmul.f32 %v5668_v53, %v1707_v0 }
 0x319   :  { %v1711_v46 = vadd.f32 1.0, %v1413_v26  ;;  %v1717_v47 = vadd.f32 1.0, %v1443_v62 }
 0x31a   :  { %5428 = vmatprep.mubr.msk.f32.mxu1 %vm1834_vm0, %v3956_v61  ;;  %v1713_v61 = vadd.f32 1.0, %v1423_v25 }
 0x31b   :  { %5429 = vmatmul.mubr.msk.f32.gmra.mrb[94].mxu1 %vm1834_vm0, %v3957_v41  ;;  %v8334_v13 = vpop.f32.mrb[40].mxu0 }
 0x31c   :  { %v8336_v63 = vpop.f32.mrb[41].mxu0 }
 0x31f   :  { %v8338_v14 = vpop.f32.mrb[42].mxu0 }
 0x320   :  { %v8340_v21 = vpop.f32.mrb[43].mxu0 }
 0x323   :  { %v8342_v17 = vpop.f32.mrb[44].mxu0 }
 0x324   :  { %v8344_v22 = vpop.f32.mrb[45].mxu0 }
 0x325   :  { %9204 = vst [vmem:[#allocation2_spill] sm:$0xff] %v8344_v22  ;;  %v1463_v22 = vadd.f32 %v8228_v12, %v8357_v11 }
 0x327   :  { %v8346_v31 = vpop.f32.mrb[46].mxu0 }
 0x328   :  { %v8348_v54 = vpop.f32.mrb[47].mxu0 }
 0x329   :  { %9205 = vst [vmem:[#allocation3_spill] sm:$0xff] %v8348_v54 }
 0x32b   :  { %v8350_v27 = vpop.f32.mrb[48].mxu0 }
 0x32c   :  { %v8352_v2 = vpop.f32.mrb[49].mxu0 }
 0x32d   :  { %9206 = vst [vmem:[#allocation4_spill] sm:$0xff] %v8352_v2  ;;  %v1433_v2 = vadd.f32 %v8188_v19, %v8357_v11 }
 0x335   :  { %v5385_v60 = vpop.f32.mrb[64].mxu1 }
 0x336   :  { %v4455_v58 = vadd.f32 %v5385_v60, %v8374_v52  ;;  %v4449_v41 = vpop.f32.mrb[65].mxu1  ;;  %v1777_v60 = vmul.f32 %v5669_v15, %v1713_v61  ;;  %v1453_v61 = vadd.f32 %v8216_v30, %v8357_v11  ;;  %v1721_v30 = vadd.f32 1.0, %v1463_v22  ;;  %v5672_v15 = vld [vmem:[%s9033_s0 + $0x48] sm:$0xff] }
 0x337   :  { %v1473_v22 = vadd.f32 %v8242_v35, %v8357_v11 }
 0x338   :  { %v4673_v54 = vadd.f32 %v4455_v58, %v1773_v34  ;;  %v1715_v34 = vadd.f32 1.0, %v1433_v2  ;;  %v5671_v2 = vld [vmem:[%s9033_s0 + $0x58] sm:$0xff] }
 0x339   :  { %v5388_v25 = vpop.f32.mrb[66].mxu1 }
 0x33a   :  { %4705 = vst.msk [vmem:[%s9039_s7 + $0x18] sm:$0xff] %vm1188_vm3, %v4673_v54  ;;  %v4465_v19 = vadd.f32 %v5388_v25, %v8374_v52  ;;  %v4459_v0 = vpop.f32.mrb[67].mxu1 }
 0x33b   :  { %v8361_v33 = vpop.f32.mrb[50].mxu0  ;;  %v4460_v12 = vadd.f32 %v8374_v52, %v4459_v0 }
 0x33c   :  { %v8365_v51 = vpop.f32.mrb[51].mxu0  ;;  %v4675_v62 = vadd.f32 %v4465_v19, %v1777_v60  ;;  %v1779_v60 = vmul.f32 %v5672_v15, %v1715_v34  ;;  %v1719_v19 = vadd.f32 1.0, %v1453_v61  ;;  %v1503_v61 = vadd.f32 %v8276_v1, %v8357_v11 }
 0x33d   :  { %9207 = vst [vmem:[#allocation5_spill] sm:$0xff] %v8365_v51  ;;  %v4450_v51 = vadd.f32 %v8374_v52, %v4449_v41  ;;  %v5391_v53 = vpop.f32.mrb[68].mxu1 }
 0x33e   :  { %4707 = vst.msk [vmem:[%s9039_s7 + $0x38] sm:$0xff] %vm1188_vm3, %v4675_v62  ;;  %v4469_v25 = vpop.f32.mrb[69].mxu1 }
 0x33f   :  { %v4672_v45 = vadd.f32 %v4450_v51, %v1771_v8  ;;  %v5670_v51 = vld [vmem:[%s9033_s0 + $0x28] sm:$0xff]  ;;  %v1781_v8 = vmul.f32 %v5671_v2, %v1717_v47  ;;  %v1723_v2 = vadd.f32 1.0, %v1473_v22 }
 0x340   :  { %v1775_v26 = vmul.f32 %v5670_v51, %v1711_v46  ;;  %v1483_v46 = vadd.f32 %v8256_v48, %v8357_v11  ;;  %v4470_v48 = vadd.f32 %v8374_v52, %v4469_v25  ;;  %v5675_v25 = vld [vmem:[%s9033_s0 + $0x98] sm:$0xff] }
 0x341   :  { %4704 = vst.msk [vmem:[%s9039_s7 + $0x8] sm:$0xff] %vm1188_vm3, %v4672_v45  ;;  %v4475_v45 = vadd.f32 %v5391_v53, %v8374_v52  ;;  %v5394_v51 = vpop.f32.mrb[70].mxu1 }
 0x342   :  { %v4674_v41 = vadd.f32 %v4460_v12, %v1775_v26  ;;  %v4676_v0 = vadd.f32 %v4470_v48, %v1779_v60  ;;  %v5673_v26 = vld [vmem:[%s9033_s0 + $0x78] sm:$0xff]  ;;  %v1725_v34 = vadd.f32 1.0, %v1483_v46  ;;  %v4485_v35 = vadd.f32 %v5394_v51, %v8374_v52  ;;  %v4479_v62 = vpop.f32.mrb[71].mxu1  ;;  %v5676_v48 = vld [vmem:[%s9033_s0 + $0x88] sm:$0xff] }
 0x343   :  { %v4677_v47 = vadd.f32 %v4475_v45, %v1781_v8  ;;  %v1785_v12 = vmul.f32 %v5673_v26, %v1721_v30  ;;  %v1493_v8 = vadd.f32 %v8268_v4, %v8357_v11  ;;  %v4480_v1 = vadd.f32 %v8374_v52, %v4479_v62 }
 0x344   :  { %4706 = vst.msk [vmem:[%s9039_s7 + $0x28] sm:$0xff] %vm1188_vm3, %v4674_v41  ;;  %v5674_v41 = vld [vmem:[%s9033_s0 + $0x68] sm:$0xff]  ;;  %4708 = vst.msk [vmem:[%s9039_s7 + $0x48] sm:$0xff] %vm1188_vm3, %v4676_v0  ;;  %v1789_v15 = vmul.f32 %v5675_v25, %v1725_v34  ;;  %v1729_v60 = vadd.f32 1.0, %v1503_v61  ;;  %v1513_v51 = vadd.f32 %v8284_v7, %v8357_v11  ;;  %v5677_v61 = vld [vmem:[%s9033_s0 + $0xb8] sm:$0xff] }
 0x345   :  { %4709 = vst.msk [vmem:[%s9039_s7 + $0x58] sm:$0xff] %vm1188_vm3, %v4677_v47  ;;  %v1783_v53 = vmul.f32 %v5674_v41, %v1719_v19  ;;  %v4679_v30 = vadd.f32 %v4485_v35, %v1785_v12  ;;  %v5397_v45 = vpop.f32.mrb[72].mxu1  ;;  %v1523_v19 = vadd.f32 %v8294_v16, %v8357_v11  ;;  %v1787_v47 = vmul.f32 %v5676_v48, %v1723_v2 }
 0x346   :  { %v4495_v4 = vadd.f32 %v5397_v45, %v8374_v52  ;;  %v4489_v22 = vpop.f32.mrb[73].mxu1  ;;  %v1727_v0 = vadd.f32 1.0, %v1493_v8  ;;  %v1793_v35 = vmul.f32 %v5677_v61, %v1729_v60  ;;  %v1731_v8 = vadd.f32 1.0, %v1513_v51  ;;  %v5681_v61 = vld [vmem:[%s9033_s0 + $0xf8] sm:$0xff] }
 0x347   :  { %v4678_v46 = vadd.f32 %v4480_v1, %v1783_v53  ;;  %4711 = vst.msk [vmem:[%s9039_s7 + $0x78] sm:$0xff] %vm1188_vm3, %v4679_v30  ;;  %v4490_v16 = vadd.f32 %v8374_v52, %v4489_v22  ;;  %v1733_v62 = vadd.f32 1.0, %v1523_v19  ;;  %v5678_v53 = vld [vmem:[%s9033_s0 + $0xa8] sm:$0xff]  ;;  %v1533_v19 = vadd.f32 %v8303_v40, %v8357_v11 }
 0x348   :  { %v4681_v26 = vadd.f32 %v4495_v4, %v1789_v15  ;;  %v1791_v2 = vmul.f32 %v5678_v53, %v1727_v0  ;;  %v5679_v15 = vld [vmem:[%s9033_s0 + $0xd8] sm:$0xff] }
 0x349   :  { %v8408_v54 = vpop.f32.mrb[52].mxu0  ;;  %4710 = vst.msk [vmem:[%s9039_s7 + $0x68] sm:$0xff] %vm1188_vm3, %v4678_v46  ;;  %v4680_v12 = vadd.f32 %v4490_v16, %v1787_v47  ;;  %v5400_v34 = vpop.f32.mrb[74].mxu1  ;;  %v1543_v46 = vadd.f32 %v8308_v55, %v8357_v11  ;;  %v1797_v60 = vmul.f32 %v5679_v15, %v1733_v62  ;;  %v5680_v55 = vld [vmem:[%s9033_s0 + $0xc8] sm:$0xff] }
 0x34a   :  { %v8410_v58 = vpop.f32.mrb[53].mxu0  ;;  %4713 = vst.msk [vmem:[%s9039_s7 + $0x98] sm:$0xff] %vm1188_vm3, %v4681_v26  ;;  %v4505_v7 = vadd.f32 %v5400_v34, %v8374_v52  ;;  %v4499_v41 = vpop.f32.mrb[75].mxu1  ;;  %v1795_v48 = vmul.f32 %v5680_v55, %v1731_v8 }
 0x34b   :  { %4712 = vst.msk [vmem:[%s9039_s7 + $0x88] sm:$0xff] %vm1188_vm3, %v4680_v12  ;;  %v4500_v1 = vadd.f32 %v8374_v52, %v4499_v41  ;;  %v1737_v16 = vadd.f32 1.0, %v1543_v46  ;;  %v1735_v12 = vadd.f32 1.0, %v1533_v19  ;;  %v5682_v41 = vld [vmem:[%s9033_s0 + $0xe8] sm:$0xff]  ;;  %v1553_v46 = vadd.f32 %v8312_v18, %v8357_v11 }
 0x34c   :  { %v4683_v30 = vadd.f32 %v4505_v7, %v1793_v35 }
 0x34d   :  { %v4682_v45 = vadd.f32 %v4500_v1, %v1791_v2  ;;  %v1801_v35 = vmul.f32 %v5681_v61, %v1737_v16  ;;  %v1799_v53 = vmul.f32 %v5682_v41, %v1735_v12  ;;  %v1573_v12 = vadd.f32 %v8325_v5, %v8357_v11  ;;  %v5685_v41 = vld [vmem:[%s9033_s0 + $0x138] sm:$0xff] }
 0x34e   :  { %4715 = vst.msk [vmem:[%s9039_s7 + $0xb8] sm:$0xff] %vm1188_vm3, %v4683_v30  ;;  %v1563_v30 = vadd.f32 %v8318_v23, %v8357_v11  ;;  %v5684_v23 = vld [vmem:[%s9033_s0 + $0x108] sm:$0xff] }
 0x34f   :  { %4714 = vst.msk [vmem:[%s9039_s7 + $0xa8] sm:$0xff] %vm1188_vm3, %v4682_v45 }
 0x351   :  { %v5403_v25 = vpop.f32.mrb[76].mxu1 }
 0x352   :  { %v4515_v4 = vadd.f32 %v5403_v25, %v8374_v52  ;;  %v4509_v22 = vpop.f32.mrb[77].mxu1  ;;  %v1741_v25 = vadd.f32 1.0, %v1563_v30 }
 0x353   :  { %v4510_v40 = vadd.f32 %v8374_v52, %v4509_v22 }
 0x354   :  { %v4685_v51 = vadd.f32 %v4515_v4, %v1797_v60  ;;  %v1739_v60 = vadd.f32 1.0, %v1553_v46  ;;  %v5683_v4 = vld [vmem:[%s9033_s0 + $0x118] sm:$0xff] }
 0x355   :  { %v4684_v26 = vadd.f32 %v4510_v40, %v1795_v48  ;;  %v1805_v22 = vmul.f32 %v5683_v4, %v1741_v25  ;;  %v1603_v25 = vadd.f32 %v8338_v14, %v8357_v11  ;;  %v5688_v14 = vld [vmem:[%s9033_s0 + $0x148] sm:$0xff] }
 0x356   :  { %4717 = vst.msk [vmem:[%s9039_s7 + $0xd8] sm:$0xff] %vm1188_vm3, %v4685_v51  ;;  %v1803_v18 = vmul.f32 %v5684_v23, %v1739_v60  ;;  %v1593_v60 = vadd.f32 %v8334_v13, %v8357_v11  ;;  %v5687_v23 = vld [vmem:[%s9033_s0 + $0x158] sm:$0xff] }
 0x357   :  { %4716 = vst.msk [vmem:[%s9039_s7 + $0xc8] sm:$0xff] %vm1188_vm3, %v4684_v26  ;;  %v1583_v26 = vadd.f32 %v8330_v57, %v8357_v11  ;;  %v5686_v57 = vld [vmem:[%s9033_s0 + $0x128] sm:$0xff] }
 0x35c   :  { %v8503_v47 = vpop.f32.mrb[54].mxu0 }
 0x35d   :  { %v8510_v0 = vpop.f32.mrb[55].mxu0 }
 0x361   :  { %v5406_v34 = vpop.f32.mrb[78].mxu1 }
 0x362   :  { %v4525_v62 = vadd.f32 %v5406_v34, %v8374_v52  ;;  %v4519_v7 = vpop.f32.mrb[79].mxu1 }
 0x363   :  { %v4520_v2 = vadd.f32 %v8374_v52, %v4519_v7 }
 0x364   :  { %v4687_v8 = vadd.f32 %v4525_v62, %v1801_v35  ;;  %v1745_v35 = vadd.f32 1.0, %v1583_v26  ;;  %v1743_v62 = vadd.f32 1.0, %v1573_v12  ;;  %v1398_v12 = vadd.f32 %v8357_v11, %v8155_v36 }
 0x365   :  { %v4686_v1 = vadd.f32 %v4520_v2, %v1799_v53  ;;  %v1418_v36 = vadd.f32 %v8357_v11, %v8179_v39  ;;  %v5690_v39 = vld [vmem:[%s9033_s0] sm:$0xff] }
 0x366   :  { %4719 = vst.msk [vmem:[%s9039_s7 + $0xf8] sm:$0xff] %vm1188_vm3, %v4687_v8  ;;  %v1809_v53 = vmul.f32 %v5685_v41, %v1745_v35  ;;  %v1807_v5 = vmul.f32 %v5686_v57, %v1743_v62  ;;  %v1388_v62 = vadd.f32 %v8357_v11, %v8139_v59  ;;  %v1708_v41 = vadd.f32 1.0, %v1398_v12  ;;  %v5689_v57 = vld [vmem:[%s9033_s0 + $0x10] sm:$0xff] }
 0x367   :  { %4718 = vst.msk [vmem:[%s9039_s7 + $0xe8] sm:$0xff] %vm1188_vm3, %v4686_v1  ;;  %v1408_v59 = vadd.f32 %v8357_v11, %v8167_v37  ;;  %v1428_v37 = vadd.f32 %v8357_v11, %v8193_v50  ;;  %v5691_v50 = vld [vmem:[%s9033_s0 + $0x30] sm:$0xff] }
 0x370   :  { %v8540_v45 = vpop.f32.mrb[56].mxu0 }
 0x371   :  { %v8542_v15 = vpop.f32.mrb[57].mxu0 }
 0x375   :  { %v5409_v19 = vpop.f32.mrb[80].mxu1 }
 0x376   :  { %v4535_v55 = vadd.f32 %v5409_v19, %v8374_v52  ;;  %v4529_v48 = vpop.f32.mrb[81].mxu1 }
 0x377   :  { %v4530_v40 = vadd.f32 %v8374_v52, %v4529_v48 }
 0x378   :  { %v4689_v51 = vadd.f32 %v4535_v55, %v1805_v22  ;;  %v1749_v22 = vadd.f32 1.0, %v1603_v25  ;;  %v1747_v55 = vadd.f32 1.0, %v1593_v60 }
 0x379   :  { %v4688_v16 = vadd.f32 %v4530_v40, %v1803_v18 }
 0x37a   :  { %4721 = vst.msk [vmem:[%s9039_s7 + $0x118] sm:$0xff] %vm1188_vm3, %v4689_v51  ;;  %v1813_v18 = vmul.f32 %v5687_v23, %v1749_v22  ;;  %v1811_v13 = vmul.f32 %v5688_v14, %v1747_v55  ;;  %v1710_v22 = vadd.f32 1.0, %v1408_v59 }
 0x37b   :  { %4720 = vst.msk [vmem:[%s9039_s7 + $0x108] sm:$0xff] %vm1188_vm3, %v4688_v16 }
 0x380   :  { %v8564_v34 = vpop.f32.mrb[58].mxu0 }
 0x381   :  { %v8566_v61 = vpop.f32.mrb[59].mxu0 }
 0x385   :  { %v5412_v7 = vpop.f32.mrb[82].mxu1 }
 0x386   :  { %v4545_v2 = vadd.f32 %v5412_v7, %v8374_v52  ;;  %v4539_v8 = vpop.f32.mrb[83].mxu1 }
 0x387   :  { %v4540_v1 = vadd.f32 %v8374_v52, %v4539_v8 }
 0x388   :  { %v4691_v30 = vadd.f32 %v4545_v2, %v1809_v53  ;;  %v1706_v2 = vadd.f32 1.0, %v1388_v62 }
 0x389   :  { %v4690_v46 = vadd.f32 %v4540_v1, %v1807_v5  ;;  %v1772_v5 = vmul.f32 %v5689_v57, %v1708_v41  ;;  %v1712_v1 = vadd.f32 1.0, %v1418_v36  ;;  %v5693_v57 = vld [vmem:[%s9033_s0 + $0x50] sm:$0xff] }
 0x38a   :  { %4723 = vst.msk [vmem:[%s9039_s7 + $0x138] sm:$0xff] %vm1188_vm3, %v4691_v30  ;;  %v1438_v30 = vadd.f32 %v8357_v11, %v8208_v43  ;;  %v1770_v60 = vmul.f32 %v5690_v39, %v1706_v2  ;;  %v1623_v43 = vadd.f32 %v8346_v31, %v8357_v11 }
 0x38b   :  { %4722 = vst.msk [vmem:[%s9039_s7 + $0x128] sm:$0xff] %vm1188_vm3, %v4690_v46 }
 0x38c   :  { %v1753_v62 = vadd.f32 1.0, %v1623_v43 }
 0x390   :  { %v8588_v19 = vpop.f32.mrb[60].mxu0 }
 0x391   :  { %v8590_v4 = vpop.f32.mrb[61].mxu0 }
 0x396   :  { %v5415_v48 = vpop.f32.mrb[84].mxu1 }
 0x397   :  { %v4555_v40 = vadd.f32 %v5415_v48, %v8374_v52  ;;  %v4549_v51 = vpop.f32.mrb[85].mxu1  ;;  %v1448_v48 = vadd.f32 %v8357_v11, %v8221_v10 }
 0x398   :  { %v4550_v16 = vadd.f32 %v8374_v52, %v4549_v51 }
 0x399   :  { %v4693_v26 = vadd.f32 %v4555_v40, %v1813_v18  ;;  %v1458_v18 = vadd.f32 %v8357_v11, %v8233_v56  ;;  %v1613_v40 = vadd.f32 %v8342_v17, %v8357_v11  ;;  %v5692_v56 = vld [vmem:[%s9033_s0 + $0x20] sm:$0xff] }
 0x39a   :  { %v4692_v35 = vadd.f32 %v4550_v16, %v1811_v13  ;;  %v1776_v13 = vmul.f32 %v5691_v50, %v1712_v1  ;;  %v1716_v16 = vadd.f32 1.0, %v1438_v30  ;;  %v1774_v17 = vmul.f32 %v5692_v56, %v1710_v22 }
 0x39b   :  { %4725 = vst.msk [vmem:[%s9039_s7 + $0x158] sm:$0xff] %vm1188_vm3, %v4693_v26  ;;  %v1714_v26 = vadd.f32 1.0, %v1428_v37  ;;  %v1720_v36 = vadd.f32 1.0, %v1458_v18  ;;  %v1751_v2 = vadd.f32 1.0, %v1613_v40  ;;  %v1478_v1 = vadd.f32 %v8357_v11, %v8262_v9  ;;  %v5695_v37 = vld [vmem:[%s9033_s0 + $0x60] sm:$0xff]  ;;  %v5697_v40 = vld [vmem:[%s9033_s0 + $0x70] sm:$0xff] }
 0x39c   :  { %4724 = vst.msk [vmem:[%s9039_s7 + $0x148] sm:$0xff] %vm1188_vm3, %v4692_v35  ;;  %v8612_v7 = vpop.f32.mrb[62].mxu0  ;;  %v1718_v35 = vadd.f32 1.0, %v1448_v48  ;;  %v5696_v48 = vld [vmem:[%s9033_s0 + $0x178] sm:$0xff]  ;;  %v1498_v56 = vadd.f32 %v8357_v11, %v8279_v24 }
 0x39d   :  { %v8616_v53 = vpop.f32.mrb[63].mxu0  ;;  %v1817_v43 = vmul.f32 %v5696_v48, %v1753_v62  ;;  %v1488_v62 = vadd.f32 %v8357_v11, %v8271_v49  ;;  %v5699_v49 = vld [vmem:[%s9033_s0 + $0x90] sm:$0xff] }
 0x3a0   :  { %v5335_v8 = vpop.f32.mrb[64].mxu0 }
 0x3a1   :  { %v4134_v46 = vadd.f32 %v5335_v8, %v8374_v52  ;;  %v4128_v25 = vpop.f32.mrb[65].mxu0 }
 0x3a2   :  { %v4129_v55 = vadd.f32 %v8374_v52, %v4128_v25  ;;  %v5694_v25 = vld [vmem:[%s9033_s0 + $0x40] sm:$0xff] }
 0x3a3   :  { %v4609_v23 = vadd.f32 %v4134_v46, %v1772_v5  ;;  %v1780_v5 = vmul.f32 %v5693_v57, %v1716_v16  ;;  %v1778_v39 = vmul.f32 %v5694_v25, %v1714_v26  ;;  %v1728_v57 = vadd.f32 1.0, %v1498_v56 }
 0x3a4   :  { %v4608_v51 = vadd.f32 %v4129_v55, %v1770_v60  ;;  %v5338_v14 = vpop.f32.mrb[66].mxu0  ;;  %v1468_v60 = vadd.f32 %v8357_v11, %v8247_v42  ;;  %v1782_v55 = vmul.f32 %v5695_v37, %v1718_v35 }
 0x3a5   :  { %4641 = vst.msk [vmem:[%s9039_s7 + $0x10] sm:$0xff] %vm1188_vm3, %v4609_v23  ;;  %v4144_v10 = vadd.f32 %v5338_v14, %v8374_v52  ;;  %v4138_v31 = vpop.f32.mrb[67].mxu0  ;;  %v5698_v14 = vld [vmem:[%s9033_s0 + $0x168] sm:$0xff] }
 0x3a6   :  { %4640 = vst.msk [vmem:[%s9039_s7] sm:$0xff] %vm1188_vm3, %v4608_v51  ;;  %v4139_v12 = vadd.f32 %v8374_v52, %v4138_v31  ;;  %v1784_v51 = vmul.f32 %v5697_v40, %v1720_v36  ;;  %v1815_v50 = vmul.f32 %v5698_v14, %v1751_v2  ;;  %v1724_v31 = vadd.f32 1.0, %v1478_v1 }
 0x3a7   :  { %v4611_v41 = vadd.f32 %v4144_v10, %v1776_v13  ;;  %v1722_v35 = vadd.f32 1.0, %v1468_v60  ;;  %v1508_v60 = vadd.f32 %v8357_v11, %v8287_v20  ;;  %v5701_v20 = vld [vmem:[%s9033_s0 + $0xb0] sm:$0xff] }
 0x3a8   :  { %v4610_v59 = vadd.f32 %v4139_v12, %v1774_v17  ;;  %v5341_v8 = vpop.f32.mrb[68].mxu0 }
 0x3a9   :  { %4643 = vst.msk [vmem:[%s9039_s7 + $0x30] sm:$0xff] %vm1188_vm3, %v4611_v41  ;;  %v4154_v30 = vadd.f32 %v5341_v8, %v8374_v52  ;;  %v4148_v46 = vpop.f32.mrb[69].mxu0  ;;  %v1788_v8 = vmul.f32 %v5699_v49, %v1724_v31  ;;  %v5706_v49 = vld [vmem:[%s9033_s0 + $0xf0] sm:$0xff] }
 0x3aa   :  { %4642 = vst.msk [vmem:[%s9039_s7 + $0x20] sm:$0xff] %vm1188_vm3, %v4610_v59  ;;  %v4149_v9 = vadd.f32 %v8374_v52, %v4148_v46  ;;  %v5418_v22 = vpop.f32.mrb[86].mxu1  ;;  %v5700_v46 = vld [vmem:[%s9033_s0 + $0x80] sm:$0xff] }
 0x3ab   :  { %v4613_v23 = vadd.f32 %v4154_v30, %v1780_v5  ;;  %v4565_v42 = vadd.f32 %v5418_v22, %v8374_v52  ;;  %v4559_v18 = vpop.f32.mrb[87].mxu1  ;;  %v1518_v5 = vadd.f32 %v8357_v11, %v8296_v29  ;;  %v1786_v25 = vmul.f32 %v5700_v46, %v1722_v35 }
 0x3ac   :  { %v4612_v13 = vadd.f32 %v4149_v9, %v1778_v39  ;;  %v5344_v16 = vpop.f32.mrb[70].mxu0  ;;  %v4560_v10 = vadd.f32 %v8374_v52, %v4559_v18  ;;  %v1726_v39 = vadd.f32 1.0, %v1488_v62  ;;  %v1528_v9 = vadd.f32 %v8357_v11, %v8306_v28 }
 0x3ad   :  { %4645 = vst.msk [vmem:[%s9039_s7 + $0x50] sm:$0xff] %vm1188_vm3, %v4613_v23  ;;  %v4164_v17 = vadd.f32 %v5344_v16, %v8374_v52  ;;  %v4158_v26 = vpop.f32.mrb[71].mxu0  ;;  %v4695_v12 = vadd.f32 %v4565_v42, %v1817_v43  ;;  %v1538_v22 = vadd.f32 %v8357_v11, %v8310_v3  ;;  %v1792_v23 = vmul.f32 %v5701_v20, %v1728_v57 }
 0x3ae   :  { %4644 = vst.msk [vmem:[%s9039_s7 + $0x40] sm:$0xff] %vm1188_vm3, %v4612_v13  ;;  %v4159_v24 = vadd.f32 %v8374_v52, %v4158_v26  ;;  %v4694_v41 = vadd.f32 %v4560_v10, %v1815_v50  ;;  %v1732_v42 = vadd.f32 1.0, %v1518_v5  ;;  %v1633_v18 = vadd.f32 %v8350_v27, %v8357_v11 }
 0x3af   :  { %v4615_v36 = vadd.f32 %v4164_v17, %v1784_v51  ;;  %4727 = vst.msk [vmem:[%s9039_s7 + $0x178] sm:$0xff] %vm1188_vm3, %v4695_v12  ;;  %v1730_v51 = vadd.f32 1.0, %v1508_v60  ;;  %v1734_v14 = vadd.f32 1.0, %v1528_v9  ;;  %v1736_v50 = vadd.f32 1.0, %v1538_v22  ;;  %v5703_v17 = vld [vmem:[%s9033_s0 + $0xd0] sm:$0xff]  ;;  %v5708_v9 = vld [vmem:[%s9033_s0 + $0x188] sm:$0xff] }
 0x3b0   :  { %v4614_v2 = vadd.f32 %v4159_v24, %v1782_v55  ;;  %v5347_v59 = vpop.f32.mrb[72].mxu0  ;;  %4726 = vst.msk [vmem:[%s9039_s7 + $0x168] sm:$0xff] %vm1188_vm3, %v4694_v41  ;;  %v1643_v55 = vadd.f32 %v8361_v33, %v8357_v11  ;;  %v5702_v33 = vld [vmem:[%s9033_s0 + $0xa0] sm:$0xff]  ;;  %v1558_v16 = vadd.f32 %v8357_v11, %v8320_v6  ;;  %v1796_v26 = vmul.f32 %v5703_v17, %v1732_v42  ;;  %v9209_v17 = vld [vmem:[#allocation3_spill] sm:$0xff] }
 0x3b1   :  { %4647 = vst.msk [vmem:[%s9039_s7 + $0x70] sm:$0xff] %vm1188_vm3, %v4615_v36  ;;  %v4174_v1 = vadd.f32 %v5347_v59, %v8374_v52  ;;  %v4168_v30 = vpop.f32.mrb[73].mxu0  ;;  %v1790_v40 = vmul.f32 %v5702_v33, %v1726_v39  ;;  %v1755_v12 = vadd.f32 1.0, %v1633_v18  ;;  %v5704_v6 = vld [vmem:[%s9033_s0 + $0xc0] sm:$0xff]  ;;  %v1548_v41 = vadd.f32 %v8357_v11, %v8315_v44 }
 0x3b2   :  { %4646 = vst.msk [vmem:[%s9039_s7 + $0x60] sm:$0xff] %vm1188_vm3, %v4614_v2  ;;  %v4169_v29 = vadd.f32 %v8374_v52, %v4168_v30  ;;  %v1757_v10 = vadd.f32 1.0, %v1643_v55  ;;  %v1794_v24 = vmul.f32 %v5704_v6, %v1730_v51  ;;  %v5705_v2 = vld [vmem:[%s9033_s0 + $0xe0] sm:$0xff]  ;;  %v1740_v44 = vadd.f32 1.0, %v1558_v16 }
 0x3b3   :  { %v4617_v37 = vadd.f32 %v4174_v1, %v1788_v8  ;;  %v1798_v59 = vmul.f32 %v5705_v2, %v1734_v14  ;;  %v1800_v8 = vmul.f32 %v5706_v49, %v1736_v50  ;;  %v5707_v1 = vld [vmem:[%s9033_s0 + $0x198] sm:$0xff]  ;;  %v1819_v22 = vmul.f32 %v5708_v9, %v1755_v12  ;;  %v5710_v50 = vld [vmem:[%s9033_s0 + $0x100] sm:$0xff] }
 0x3b4   :  { %v4616_v48 = vadd.f32 %v4169_v29, %v1786_v25  ;;  %v5350_v43 = vpop.f32.mrb[74].mxu0  ;;  %v1821_v30 = vmul.f32 %v5707_v1, %v1757_v10  ;;  %v1578_v29 = vadd.f32 %v8357_v11, %v8332_v38  ;;  %v1568_v20 = vadd.f32 %v8357_v11, %v8328_v32  ;;  %v5709_v32 = vld [vmem:[%s9033_s0 + $0x110] sm:$0xff]  ;;  %v9210_v1 = vld [vmem:[#allocation5_spill] sm:$0xff] }
 0x3b5   :  { %4649 = vst.msk [vmem:[%s9039_s7 + $0x90] sm:$0xff] %vm1188_vm3, %v4617_v37  ;;  %v4184_v28 = vadd.f32 %v5350_v43, %v8374_v52  ;;  %v4178_v3 = vpop.f32.mrb[75].mxu0  ;;  %v1738_v43 = vadd.f32 1.0, %v1548_v41  ;;  %v1804_v33 = vmul.f32 %v5709_v32, %v1740_v44  ;;  %v1598_v51 = vadd.f32 %v8357_v11, %v8340_v21 }
 0x3b6   :  { %4648 = vst.msk [vmem:[%s9039_s7 + $0x80] sm:$0xff] %vm1188_vm3, %v4616_v48  ;;  %v4179_v27 = vadd.f32 %v8374_v52, %v4178_v3  ;;  %v1742_v16 = vadd.f32 1.0, %v1568_v20  ;;  %v1588_v21 = vadd.f32 %v8357_v11, %v8336_v63  ;;  %v5711_v63 = vld [vmem:[%s9033_s0 + $0x130] sm:$0xff] }
 0x3b7   :  { %v4619_v13 = vadd.f32 %v4184_v28, %v1792_v23  ;;  %v1748_v41 = vadd.f32 1.0, %v1598_v51 }
 0x3b8   :  { %v4618_v31 = vadd.f32 %v4179_v27, %v1790_v40  ;;  %v5353_v56 = vpop.f32.mrb[76].mxu0  ;;  %v1744_v40 = vadd.f32 1.0, %v1578_v29 }
 0x3b9   :  { %4651 = vst.msk [vmem:[%s9039_s7 + $0xb0] sm:$0xff] %vm1188_vm3, %v4619_v13  ;;  %v4194_v35 = vadd.f32 %v5353_v56, %v8374_v52  ;;  %v4188_v62 = vpop.f32.mrb[77].mxu0  ;;  %v1802_v13 = vmul.f32 %v5710_v50, %v1738_v43  ;;  %v9211_v43 = vld [vmem:[#allocation4_spill] sm:$0xff] }
 0x3ba   :  { %4650 = vst.msk [vmem:[%s9039_s7 + $0xa0] sm:$0xff] %vm1188_vm3, %v4618_v31  ;;  %v4189_v36 = vadd.f32 %v8374_v52, %v4188_v62  ;;  %v9208_v31 = vld [vmem:[#allocation2_spill] sm:$0xff]  ;;  %v1628_v20 = vadd.f32 %v8357_v11, %v9211_v43  ;;  %v1673_v43 = vadd.f32 %v8540_v45, %v8357_v11 }
 0x3bb   :  { %v4621_v57 = vadd.f32 %v4194_v35, %v1796_v26  ;;  %v5421_v5 = vpop.f32.mrb[88].mxu1  ;;  %v1608_v56 = vadd.f32 %v8357_v11, %v9208_v31  ;;  %v1618_v26 = vadd.f32 %v8357_v11, %v9209_v17  ;;  %v1663_v35 = vadd.f32 %v8503_v47, %v8357_v11  ;;  %v5712_v47 = vld [vmem:[%s9033_s0 + $0x120] sm:$0xff] }
 0x3bc   :  { %v4620_v46 = vadd.f32 %v4189_v36, %v1794_v24  ;;  %v5356_v25 = vpop.f32.mrb[78].mxu0  ;;  %v4575_v39 = vadd.f32 %v5421_v5, %v8374_v52  ;;  %v4569_v60 = vpop.f32.mrb[89].mxu1  ;;  %v1808_v24 = vmul.f32 %v5711_v63, %v1744_v40  ;;  %v1653_v36 = vadd.f32 %v8408_v54, %v8357_v11  ;;  %v5717_v40 = vld [vmem:[%s9033_s0 + $0x1b8] sm:$0xff]  ;;  %v5724_v45 = vld [vmem:[%s9033_s0 + $0x1c0] sm:$0xff] }
 0x3bd   :  { %4653 = vst.msk [vmem:[%s9039_s7 + $0xd0] sm:$0xff] %vm1188_vm3, %v4621_v57  ;;  %v4204_v37 = vadd.f32 %v5356_v25, %v8374_v52  ;;  %v4198_v55 = vpop.f32.mrb[79].mxu0  ;;  %v4570_v48 = vadd.f32 %v8374_v52, %v4569_v60  ;;  %v1806_v49 = vmul.f32 %v5712_v47, %v1742_v16  ;;  %v1750_v57 = vadd.f32 1.0, %v1608_v56  ;;  %v5713_v60 = vld [vmem:[%s9033_s0 + $0x150] sm:$0xff]  ;;  %v5718_v16 = vld [vmem:[%s9033_s0 + $0x1a8] sm:$0xff] }
 0x3be   :  { %4652 = vst.msk [vmem:[%s9039_s7 + $0xc0] sm:$0xff] %vm1188_vm3, %v4620_v46  ;;  %v4199_v38 = vadd.f32 %v8374_v52, %v4198_v55  ;;  %v4697_v23 = vadd.f32 %v4575_v39, %v1821_v30  ;;  %v1752_v5 = vadd.f32 1.0, %v1618_v26  ;;  %v1638_v30 = vadd.f32 %v8357_v11, %v9210_v1  ;;  %v5714_v55 = vld [vmem:[%s9033_s0 + $0x140] sm:$0xff] }
 0x3bf   :  { %v4623_v42 = vadd.f32 %v4204_v37, %v1800_v8  ;;  %v4696_v18 = vadd.f32 %v4570_v48, %v1819_v22  ;;  %v1746_v8 = vadd.f32 1.0, %v1588_v21  ;;  %v1761_v46 = vadd.f32 1.0, %v1663_v35 }
 0x3c0   :  { %v4622_v28 = vadd.f32 %v4199_v38, %v1798_v59  ;;  %v5359_v3 = vpop.f32.mrb[80].mxu0  ;;  %4729 = vst.msk [vmem:[%s9039_s7 + $0x198] sm:$0xff] %vm1188_vm3, %v4697_v23  ;;  %v1812_v29 = vmul.f32 %v5713_v60, %v1748_v41  ;;  %v1759_v9 = vadd.f32 1.0, %v1653_v36  ;;  %v5715_v23 = vld [vmem:[%s9033_s0 + $0x160] sm:$0xff]  ;;  %v1754_v26 = vadd.f32 1.0, %v1628_v20 }
 0x3c1   :  { %4655 = vst.msk [vmem:[%s9039_s7 + $0xf0] sm:$0xff] %vm1188_vm3, %v4623_v42  ;;  %v4214_v27 = vadd.f32 %v5359_v3, %v8374_v52  ;;  %v4208_v14 = vpop.f32.mrb[81].mxu0  ;;  %4728 = vst.msk [vmem:[%s9039_s7 + $0x188] sm:$0xff] %vm1188_vm3, %v4696_v18  ;;  %v1810_v48 = vmul.f32 %v5714_v55, %v1746_v8  ;;  %v1814_v42 = vmul.f32 %v5715_v23, %v1750_v57  ;;  %v5716_v18 = vld [vmem:[%s9033_s0 + $0x170] sm:$0xff] }
 0x3c2   :  { %4654 = vst.msk [vmem:[%s9039_s7 + $0xe0] sm:$0xff] %vm1188_vm3, %v4622_v28  ;;  %v4209_v10 = vadd.f32 %v8374_v52, %v4208_v14  ;;  %v1816_v28 = vmul.f32 %v5716_v18, %v1752_v5  ;;  %v1825_v51 = vmul.f32 %v5717_v40, %v1761_v46  ;;  %v1823_v21 = vmul.f32 %v5718_v16, %v1759_v9 }
 0x3c3   :  { %v4625_v12 = vadd.f32 %v4214_v27, %v1804_v33  ;;  %v1756_v33 = vadd.f32 1.0, %v1638_v30  ;;  %v5721_v30 = vld [vmem:[%s9033_s0 + $0x1b0] sm:$0xff]  ;;  %v1683_v55 = vadd.f32 %v8564_v34, %v8357_v11 }
 0x3c4   :  { %v4624_v62 = vadd.f32 %v4209_v10, %v1802_v13  ;;  %v5362_v6 = vpop.f32.mrb[82].mxu0  ;;  %v1658_v10 = vadd.f32 %v8357_v11, %v8510_v0 }
 0x3c5   :  { %4657 = vst.msk [vmem:[%s9039_s7 + $0x110] sm:$0xff] %vm1188_vm3, %v4625_v12  ;;  %v4224_v2 = vadd.f32 %v5362_v6, %v8374_v52  ;;  %v4218_v59 = vpop.f32.mrb[83].mxu0  ;;  %v1648_v12 = vadd.f32 %v8357_v11, %v8410_v58  ;;  %v5719_v58 = vld [vmem:[%s9033_s0 + $0x190] sm:$0xff] }
 0x3c6   :  { %4656 = vst.msk [vmem:[%s9039_s7 + $0x100] sm:$0xff] %vm1188_vm3, %v4624_v62  ;;  %v4219_v54 = vadd.f32 %v8374_v52, %v4218_v59  ;;  %v1820_v41 = vmul.f32 %v5719_v58, %v1756_v33  ;;  %v1760_v36 = vadd.f32 1.0, %v1658_v10  ;;  %v1765_v33 = vadd.f32 1.0, %v1683_v55  ;;  %v5726_v10 = vld [vmem:[%s9033_s0 + $0x1e0] sm:$0xff] }
 0x3c7   :  { %v4627_v44 = vadd.f32 %v4224_v2, %v1808_v24  ;;  %v1678_v2 = vadd.f32 %v8357_v11, %v8566_v61  ;;  %v1668_v61 = vadd.f32 %v8357_v11, %v8542_v15 }
 0x3c8   :  { %v4626_v25 = vadd.f32 %v4219_v54, %v1806_v49  ;;  %v5365_v39 = vpop.f32.mrb[84].mxu0  ;;  %v5720_v49 = vld [vmem:[%s9033_s0 + $0x180] sm:$0xff]  ;;  %v1758_v54 = vadd.f32 1.0, %v1648_v12  ;;  %v1824_v46 = vmul.f32 %v5721_v30, %v1760_v36 }
 0x3c9   :  { %4659 = vst.msk [vmem:[%s9039_s7 + $0x130] sm:$0xff] %vm1188_vm3, %v4627_v44  ;;  %v4234_v22 = vadd.f32 %v5365_v39, %v8374_v52  ;;  %v4228_v37 = vpop.f32.mrb[85].mxu0  ;;  %v1818_v8 = vmul.f32 %v5720_v49, %v1754_v26  ;;  %v1698_v39 = vadd.f32 %v8357_v11, %v8616_v53  ;;  %v5727_v26 = vld [vmem:[%s9033_s0 + $0x1d8] sm:$0xff] }
 0x3ca   :  { %4658 = vst.msk [vmem:[%s9039_s7 + $0x120] sm:$0xff] %vm1188_vm3, %v4626_v25  ;;  %v4229_v38 = vadd.f32 %v8374_v52, %v4228_v37  ;;  %v1764_v25 = vadd.f32 1.0, %v1678_v2  ;;  %v1688_v37 = vadd.f32 %v8357_v11, %v8590_v4  ;;  %v5723_v4 = vld [vmem:[%s9033_s0 + $0x1d0] sm:$0xff]  ;;  %v1829_v12 = vmul.f32 %v5727_v26, %v1765_v33 }
 0x3cb   :  { %v4629_v3 = vadd.f32 %v4234_v22, %v1812_v29  ;;  %v5424_v32 = vpop.f32.mrb[90].mxu1  ;;  %v5722_v29 = vld [vmem:[%s9033_s0 + $0x1a0] sm:$0xff]  ;;  %v1762_v22 = vadd.f32 1.0, %v1668_v61  ;;  %v1703_v2 = vadd.f32 %v8612_v7, %v8357_v11 }
 0x3cc   :  { %v4628_v27 = vadd.f32 %v4229_v38, %v1810_v48  ;;  %v5368_v14 = vpop.f32.mrb[86].mxu0  ;;  %v4585_v50 = vadd.f32 %v5424_v32, %v8374_v52  ;;  %v4579_v13 = vpop.f32.mrb[91].mxu1  ;;  %v1822_v9 = vmul.f32 %v5722_v29, %v1758_v54  ;;  %v1828_v23 = vmul.f32 %v5723_v4, %v1764_v25  ;;  %v5729_v54 = vld [vmem:[%s9033_s0 + $0x1f8] sm:$0xff] }
 0x3cd   :  { %4661 = vst.msk [vmem:[%s9039_s7 + $0x150] sm:$0xff] %vm1188_vm3, %v4629_v3  ;;  %v4244_v31 = vadd.f32 %v5368_v14, %v8374_v52  ;;  %v4238_v56 = vpop.f32.mrb[87].mxu0  ;;  %v4580_v17 = vadd.f32 %v8374_v52, %v4579_v13  ;;  %v1766_v3 = vadd.f32 1.0, %v1688_v37 }
 0x3ce   :  { %4660 = vst.msk [vmem:[%s9039_s7 + $0x140] sm:$0xff] %vm1188_vm3, %v4628_v27  ;;  %v4239_v0 = vadd.f32 %v8374_v52, %v4238_v56  ;;  %v4699_v35 = vadd.f32 %v4585_v50, %v1825_v51  ;;  %v1763_v51 = vadd.f32 1.0, %v1673_v43  ;;  %v5725_v50 = vld [vmem:[%s9033_s0 + $0x1f0] sm:$0xff] }
 0x3cf   :  { %v4631_v62 = vadd.f32 %v4244_v31, %v1816_v28  ;;  %v4698_v6 = vadd.f32 %v4580_v17, %v1823_v21  ;;  %v1826_v28 = vmul.f32 %v5724_v45, %v1762_v22  ;;  %v1830_v31 = vmul.f32 %v5726_v10, %v1766_v3 }
 0x3d0   :  { %v4630_v63 = vadd.f32 %v4239_v0, %v1814_v42  ;;  %v5371_v24 = vpop.f32.mrb[88].mxu0  ;;  %4731 = vst.msk [vmem:[%s9039_s7 + $0x1b8] sm:$0xff] %vm1188_vm3, %v4699_v35  ;;  %v1768_v42 = vadd.f32 1.0, %v1698_v39 }
 0x3d1   :  { %4663 = vst.msk [vmem:[%s9039_s7 + $0x170] sm:$0xff] %vm1188_vm3, %v4631_v62  ;;  %v4254_v59 = vadd.f32 %v5371_v24, %v8374_v52  ;;  %v4248_v47 = vpop.f32.mrb[89].mxu0  ;;  %4730 = vst.msk [vmem:[%s9039_s7 + $0x1a8] sm:$0xff] %vm1188_vm3, %v4698_v6  ;;  %v5728_v6 = vld [vmem:[%s9033_s0 + $0x1c8] sm:$0xff] }
 0x3d2   :  { %4662 = vst.msk [vmem:[%s9039_s7 + $0x160] sm:$0xff] %vm1188_vm3, %v4630_v63  ;;  %v4249_v57 = vadd.f32 %v8374_v52, %v4248_v47  ;;  %v1832_v13 = vmul.f32 %v5725_v50, %v1768_v42  ;;  %v1827_v63 = vmul.f32 %v5728_v6, %v1763_v51  ;;  %v1769_v47 = vadd.f32 1.0, %v1703_v2 }
 0x3d3   :  { %v4633_v5 = vadd.f32 %v4254_v59, %v1820_v41  ;;  %v1693_v59 = vadd.f32 %v8588_v19, %v8357_v11 }
 0x3d4   :  { %v4632_v44 = vadd.f32 %v4249_v57, %v1818_v8  ;;  %v5374_v1 = vpop.f32.mrb[90].mxu0  ;;  %v1833_v61 = vmul.f32 %v5729_v54, %v1769_v47 }
 0x3d5   :  { %4665 = vst.msk [vmem:[%s9039_s7 + $0x190] sm:$0xff] %vm1188_vm3, %v4633_v5  ;;  %v4264_v15 = vadd.f32 %v5374_v1, %v8374_v52  ;;  %v4258_v60 = vpop.f32.mrb[91].mxu0  ;;  %v1767_v49 = vadd.f32 1.0, %v1693_v59 }
 0x3d6   :  { %4664 = vst.msk [vmem:[%s9039_s7 + $0x180] sm:$0xff] %vm1188_vm3, %v4632_v44  ;;  %v4259_v53 = vadd.f32 %v8374_v52, %v4258_v60  ;;  %v5730_v44 = vld [vmem:[%s9033_s0 + $0x1e8] sm:$0xff] }
 0x3d7   :  { %v4635_v48 = vadd.f32 %v4264_v15, %v1824_v46  ;;  %v1831_v1 = vmul.f32 %v5730_v44, %v1767_v49 }
 0x3d8   :  { %v4634_v20 = vadd.f32 %v4259_v53, %v1822_v9  ;;  %v5377_v38 = vpop.f32.mrb[92].mxu0 }
 0x3d9   :  { %4667 = vst.msk [vmem:[%s9039_s7 + $0x1b0] sm:$0xff] %vm1188_vm3, %v4635_v48  ;;  %v4274_v18 = vadd.f32 %v5377_v38, %v8374_v52  ;;  %v4268_v34 = vpop.f32.mrb[93].mxu0 }
 0x3da   :  { %4666 = vst.msk [vmem:[%s9039_s7 + $0x1a0] sm:$0xff] %vm1188_vm3, %v4634_v20  ;;  %v4269_v32 = vadd.f32 %v8374_v52, %v4268_v34 }
 0x3db   :  { %v4637_v40 = vadd.f32 %v4274_v18, %v1828_v23 }
 0x3dc   :  { %v4636_v27 = vadd.f32 %v4269_v32, %v1826_v28  ;;  %v5380_v14 = vpop.f32.mrb[94].mxu0 }
 0x3dd   :  { %4669 = vst.msk [vmem:[%s9039_s7 + $0x1d0] sm:$0xff] %vm1188_vm3, %v4637_v40  ;;  %v4284_v16 = vadd.f32 %v5380_v14, %v8374_v52  ;;  %v4278_v21 = vpop.f32.mrb[95].mxu0 }
 0x3de   :  { %4668 = vst.msk [vmem:[%s9039_s7 + $0x1c0] sm:$0xff] %vm1188_vm3, %v4636_v27  ;;  %v4279_v56 = vadd.f32 %v8374_v52, %v4278_v21  ;;  %v5427_v17 = vpop.f32.mrb[92].mxu1 }
 0x3df   :  { %v4639_v0 = vadd.f32 %v4284_v16, %v1832_v13  ;;  %v4595_v35 = vadd.f32 %v5427_v17, %v8374_v52  ;;  %v4589_v62 = vpop.f32.mrb[93].mxu1 }
 0x3e0   :  { %v4638_v24 = vadd.f32 %v4279_v56, %v1830_v31  ;;  %v4590_v58 = vadd.f32 %v8374_v52, %v4589_v62 }
 0x3e1   :  { %4671 = vst.msk [vmem:[%s9039_s7 + $0x1f0] sm:$0xff] %vm1188_vm3, %v4639_v0  ;;  %v4701_v41 = vadd.f32 %v4595_v35, %v1829_v12 }
 0x3e2   :  { %4670 = vst.msk [vmem:[%s9039_s7 + $0x1e0] sm:$0xff] %vm1188_vm3, %v4638_v24  ;;  %v4700_v36 = vadd.f32 %v4590_v58, %v1827_v63 }
 0x3e3   :  { %4733 = vst.msk [vmem:[%s9039_s7 + $0x1d8] sm:$0xff] %vm1188_vm3, %v4701_v41 }
 0x3e4   :  { %4732 = vst.msk [vmem:[%s9039_s7 + $0x1c8] sm:$0xff] %vm1188_vm3, %v4700_v36 }
 0x3ee   :  { %v5430_v8 = vpop.f32.mrb[94].mxu1 }
 0x3ef   :  { %v4605_v57 = vadd.f32 %v5430_v8, %v8374_v52  ;;  %v4599_v5 = vpop.f32.mrb[95].mxu1 }
 0x3f0   :  { %v4600_v7 = vadd.f32 %v8374_v52, %v4599_v5 }
 0x3f1   :  { %v4703_v30 = vadd.f32 %v4605_v57, %v1833_v61 }
 0x3f2   :  { %v4702_v11 = vadd.f32 %v4600_v7, %v1831_v1 }
 0x3f3   :  { %4735 = vst.msk [vmem:[%s9039_s7 + $0x1f8] sm:$0xff] %vm1188_vm3, %v4703_v30 }
 0x3f4   :  { %4734 = vst.msk [vmem:[%s9039_s7 + $0x1e8] sm:$0xff] %vm1188_vm3, %v4702_v11 }

</bundles_post_ra>
